<compile_context>
chip_gen: v6e
topology: v6e:2x2x1
jax: 0.10.0
libtpu: 0.0.40
codegen_flags: <defaults>
</compile_context>

<pallas_src>
import functools

import jax
import jax.numpy as jnp
import numpy as np
from jax import lax
from jax.experimental import pallas as pl
from jax.experimental.pallas import tpu as pltpu


def _down_kernel(Hp, Wp,
                 x_ref, w1_ref, b1_ref, w2_ref, b2_ref,
                 out_ref, pad1_ref, pad2_ref):
    """One grid step == one batch element.

    x_ref   : (M, 4*Cin)  bf16   pooling phases on lanes, padded pitch P=Wp+2
    w1_ref  : (3, 3, Cin, Cmid)  bf16  conv1 weights (HWIO, BN scale folded in)
    w2_ref  : (3, 3, Cmid, Cout) bf16  conv2 weights (HWIO, BN scale folded in)
    b1/b2   : (1, C)      f32    folded BatchNorm shift
    out_ref : (M, Cout)   f32    flat output plane at padded pitch P
    pad1/2  : (R, C)      bf16   flat conv-input buffers, R = (Hp+2)*P + 8
    """
    P = Wp + 2                      # padded row pitch (1 left + 1 right zero)
    M = Hp * P                      # flat plane rows at padded pitch
    Cin = w1_ref.shape[2]
    Cmid = w1_ref.shape[3]
    bf16 = jnp.bfloat16

    # --- re-zero vertical-padding / tail row blocks (cheap, every step) -----
    pad1_ref[pl.ds(0, P + 1), :] = jnp.zeros((P + 1, Cin), bf16)
    pad1_ref[pl.ds((Hp + 1) * P, P + 8), :] = jnp.zeros((P + 8, Cin), bf16)
    pad2_ref[pl.ds(0, P + 1), :] = jnp.zeros((P + 1, Cmid), bf16)
    pad2_ref[pl.ds((Hp + 1) * P, P + 8), :] = jnp.zeros((P + 8, Cmid), bf16)

    # --- MaxPool2d(2): 3 plane-wide maxes over the 4 lane-resident phases ----
    # Pad columns are zero in every phase, so pooled pad columns come out zero,
    # which is exactly the conv's horizontal zero-padding.
    xv = x_ref[...]                                        # (M, 4*Cin) bf16
    pooled = jnp.maximum(
        jnp.maximum(xv[:, 0 * Cin:1 * Cin], xv[:, 1 * Cin:2 * Cin]),
        jnp.maximum(xv[:, 2 * Cin:3 * Cin], xv[:, 3 * Cin:4 * Cin]))
    pad1_ref[pl.ds(P + 1, M), :] = pooled                  # ONE contiguous store

    # Pad-slot rows of a padded-pitch plane (columns >= Wp of each row).
    col = lax.broadcasted_iota(jnp.int32, (M, 1), 0) % P
    col_valid = col < Wp

    def conv3x3(pad_ref, w_ref):
        """3x3 conv as 9 plane-wide bf16 MXU matmuls over shifted flat views."""
        acc = None
        for ky in range(3):
            for kx in range(3):
                lhs = pad_ref[pl.ds(ky * P + kx, M), :]    # (M, C) bf16
                t = jnp.dot(lhs, w_ref[ky, kx],
                            preferred_element_type=jnp.float32)
                acc = t if acc is None else acc + t
        return acc

    # --- Conv1 (+folded BN shift) + ReLU -> pad2 interior (bf16) ------------
    # Pad-slot rows must be zero: they are conv2's horizontal-padding zeros.
    y1 = jnp.maximum(conv3x3(pad1_ref, w1_ref) + b1_ref[...], 0.0)
    pad2_ref[pl.ds(P + 1, M), :] = jnp.where(col_valid, y1.astype(bf16), 0.0)

    # --- Conv2 (+folded BN shift) + ReLU -> output ---------------------------
    # Pad-slot rows carry garbage; the wrapper slices them off.
    y2 = jnp.maximum(conv3x3(pad2_ref, w2_ref) + b2_ref[...], 0.0)
    out_ref[...] = y2                                      # ONE contiguous store


def down_pallas(x_nchw, w1_oihw, scale1, shift1, w2_oihw, scale2, shift2):
    """Down(in_channels, out_channels) forward. Input/output are NCHW f32."""
    N, Cin, H, W = x_nchw.shape
    Hp, Wp = H // 2, W // 2
    P = Wp + 2
    M = Hp * P
    R = (Hp + 2) * P + 8
    Cmid = w1_oihw.shape[0]
    Cout = w2_oihw.shape[0]

    # Glue: NCHW f32 -> pooling-phases-on-lanes bf16, flat padded-pitch plane.
    xb = x_nchw.astype(jnp.bfloat16).reshape(N, Cin, Hp, 2, Wp, 2)
    xb = jnp.transpose(xb, (0, 2, 4, 3, 5, 1)).reshape(N, Hp, Wp, 4 * Cin)
    xb = jnp.pad(xb, ((0, 0), (0, 0), (0, 2), (0, 0)))     # 2 zero pad columns
    xb = xb.reshape(N, M, 4 * Cin)

    # PyTorch OIHW conv weights -> HWIO with BN scale folded in, bf16.
    w1 = (jnp.transpose(w1_oihw, (2, 3, 1, 0))
          * scale1.reshape(1, 1, 1, Cmid)).astype(jnp.bfloat16)
    w2 = (jnp.transpose(w2_oihw, (2, 3, 1, 0))
          * scale2.reshape(1, 1, 1, Cout)).astype(jnp.bfloat16)
    b1 = shift1.reshape(1, Cmid).astype(jnp.float32)
    b2 = shift2.reshape(1, Cout).astype(jnp.float32)

    # Scoped-VMEM budget from actual block/scratch footprint (+headroom),
    # capped at 64 MiB (safe on every generation incl. v7x).
    blk = (M * 4 * Cin * 2) + (M * Cout * 4) \
        + 9 * (Cin * Cmid + Cmid * Cout) * 2 + (Cmid + Cout) * 4
    scratch = R * (Cin + Cmid) * 2
    vmem_limit = int(min(64 * 1024 * 1024,
                         max(32 * 1024 * 1024, 4 * blk + 2 * scratch)))

    kernel = functools.partial(_down_kernel, Hp, Wp)

    out_flat = pl.pallas_call(
        kernel,
        out_shape=jax.ShapeDtypeStruct((N, M, Cout), jnp.float32),
        grid_spec=pltpu.PrefetchScalarGridSpec(
            num_scalar_prefetch=0,
            grid=(N,),
            in_specs=[
                pl.BlockSpec((None, M, 4 * Cin), lambda n: (n, 0, 0)),
                pl.BlockSpec((3, 3, Cin, Cmid), lambda n: (0, 0, 0, 0)),
                pl.BlockSpec((1, Cmid), lambda n: (0, 0)),
                pl.BlockSpec((3, 3, Cmid, Cout), lambda n: (0, 0, 0, 0)),
                pl.BlockSpec((1, Cout), lambda n: (0, 0)),
            ],
            out_specs=pl.BlockSpec((None, M, Cout), lambda n: (n, 0, 0)),
            scratch_shapes=[pltpu.VMEM((R, Cin), jnp.bfloat16),
                            pltpu.VMEM((R, Cmid), jnp.bfloat16)]),
        compiler_params=pltpu.CompilerParams(
            dimension_semantics=("parallel",),
            vmem_limit_bytes=vmem_limit),
    )(xb, w1, b1, w2, b2)

    out = out_flat.reshape(N, Hp, P, Cout)[:, :, :Wp, :]   # drop pad columns
    return jnp.transpose(out, (0, 3, 1, 2))                # back to NCHW


def down_ref(x, w1, g1, be1, m1, v1, w2, g2, be2, m2, v2, eps=1e-5):
    """Pure-JAX NCHW reference (inference-mode BN) for sanity checking."""
    p = lax.reduce_window(x, -jnp.inf, lax.max, (1, 1, 2, 2), (1, 1, 2, 2), 'VALID')

    def conv_bn_relu(h, w, g, be, m, v):
        y = lax.conv_general_dilated(h, w, (1, 1), 'SAME',
                                     dimension_numbers=('NCHW', 'OIHW', 'NCHW'))
        sc = (g / jnp.sqrt(v + eps))[None, :, None, None]
        y = (y - m[None, :, None, None]) * sc + be[None, :, None, None]
        return jnp.maximum(y, 0.0)

    h1 = conv_bn_relu(p, w1, g1, be1, m1, v1)
    return conv_bn_relu(h1, w2, g2, be2, m2, v2)


if __name__ == "__main__":
    key = jax.random.PRNGKey(0)
    ks = jax.random.split(key, 12)

    N, Cin, H, W = 2, 4, 16, 16
    Cout = 8
    Cmid = Cout                     # DoubleConv(in, out, mid_channels=out)
    eps = 1e-5

    x = jax.random.normal(ks[0], (N, Cin, H, W), jnp.float32)

    # Conv weights (PyTorch OIHW, bias=False) and BatchNorm parameters.
    w1 = 0.1 * jax.random.normal(ks[1], (Cmid, Cin, 3, 3), jnp.float32)
    g1 = 1.0 + 0.1 * jax.random.normal(ks[2], (Cmid,), jnp.float32)
    be1 = 0.1 * jax.random.normal(ks[3], (Cmid,), jnp.float32)
    m1 = 0.1 * jax.random.normal(ks[4], (Cmid,), jnp.float32)
    v1 = jnp.abs(jax.random.normal(ks[5], (Cmid,), jnp.float32)) + 0.5

    w2 = 0.1 * jax.random.normal(ks[6], (Cout, Cmid, 3, 3), jnp.float32)
    g2 = 1.0 + 0.1 * jax.random.normal(ks[7], (Cout,), jnp.float32)
    be2 = 0.1 * jax.random.normal(ks[8], (Cout,), jnp.float32)
    m2 = 0.1 * jax.random.normal(ks[9], (Cout,), jnp.float32)
    v2 = jnp.abs(jax.random.normal(ks[10], (Cout,), jnp.float32)) + 0.5

    # Fold inference-mode BatchNorm into per-channel scale / shift.
    scale1 = g1 / jnp.sqrt(v1 + eps)
    shift1 = be1 - m1 * scale1
    scale2 = g2 / jnp.sqrt(v2 + eps)
    shift2 = be2 - m2 * scale2

    out = down_pallas(x, w1, scale1, shift1, w2, scale2, shift2)
    out = jax.block_until_ready(out)

    ref = down_ref(x, w1, g1, be1, m1, v1, w2, g2, be2, m2, v2, eps)
    np.testing.assert_allclose(np.asarray(out), np.asarray(ref), rtol=5e-2, atol=5e-2)

    print("KERNEL_OK")
</pallas_src>

<mosaic_0001>
module attributes {stable_mosaic.version = 11 : i64} {
  func.func @_down_kernel(%arg0: i32, %arg1: memref<1x80x16xbf16, #tpu.memory_space<vmem>>, %arg2: memref<3x3x4x8xbf16, #tpu.memory_space<vmem>>, %arg3: memref<1x8xf32, #tpu.memory_space<vmem>>, %arg4: memref<3x3x8x8xbf16, #tpu.memory_space<vmem>>, %arg5: memref<1x8xf32, #tpu.memory_space<vmem>>, %arg6: memref<1x80x8xf32, #tpu.memory_space<vmem>>, %arg7: memref<108x4xbf16, #tpu.memory_space<vmem>>, %arg8: memref<108x8xbf16, #tpu.memory_space<vmem>>) attributes {dimension_semantics = [#tpu.dimension_semantics<parallel>], iteration_bounds = array<i64: 2>, scalar_prefetch = 0 : i64, scratch_operands = 2 : i64, tpu.core_type = #tpu.core_type<tc>, window_params = [{transform_indices = @transform_0, window_bounds = array<i64: 1, 80, 16>}, {pipeline_mode = #tpu.pipeline_mode<synchronous>, transform_indices = @transform_1, window_bounds = array<i64: 3, 3, 4, 8>}, {pipeline_mode = #tpu.pipeline_mode<synchronous>, transform_indices = @transform_2, window_bounds = array<i64: 1, 8>}, {pipeline_mode = #tpu.pipeline_mode<synchronous>, transform_indices = @transform_3, window_bounds = array<i64: 3, 3, 8, 8>}, {pipeline_mode = #tpu.pipeline_mode<synchronous>, transform_indices = @transform_4, window_bounds = array<i64: 1, 8>}, {transform_indices = @transform_5, window_bounds = array<i64: 1, 80, 8>}]} {
    %cst = arith.constant 0.000000e+00 : bf16
    %0 = vector.broadcast %cst : bf16 to vector<11x4xbf16>
    %c0 = arith.constant 0 : index
    %c0_0 = arith.constant 0 : index
    %1 = vector.load %arg7[%c0, %c0_0] : memref<108x4xbf16, #tpu.memory_space<vmem>>, vector<11x4xbf16>
    tpu.vector_store %arg7[%c0, %c0_0], %0 {strides = array<i32>} : memref<108x4xbf16, #tpu.memory_space<vmem>>, vector<11x4xbf16>,
    %cst_1 = arith.constant 0.000000e+00 : bf16
    %2 = vector.broadcast %cst_1 : bf16 to vector<18x4xbf16>
    %c90 = arith.constant 90 : index
    %c0_2 = arith.constant 0 : index
    %3 = vector.load %arg7[%c90, %c0_2] : memref<108x4xbf16, #tpu.memory_space<vmem>>, vector<18x4xbf16>
    tpu.vector_store %arg7[%c90, %c0_2], %2 {strides = array<i32>} : memref<108x4xbf16, #tpu.memory_space<vmem>>, vector<18x4xbf16>,
    %cst_3 = arith.constant 0.000000e+00 : bf16
    %4 = vector.broadcast %cst_3 : bf16 to vector<11x8xbf16>
    %c0_4 = arith.constant 0 : index
    %c0_5 = arith.constant 0 : index
    %5 = vector.load %arg8[%c0_4, %c0_5] : memref<108x8xbf16, #tpu.memory_space<vmem>>, vector<11x8xbf16>
    tpu.vector_store %arg8[%c0_4, %c0_5], %4 {strides = array<i32>} : memref<108x8xbf16, #tpu.memory_space<vmem>>, vector<11x8xbf16>,
    %cst_6 = arith.constant 0.000000e+00 : bf16
    %6 = vector.broadcast %cst_6 : bf16 to vector<18x8xbf16>
    %c90_7 = arith.constant 90 : index
    %c0_8 = arith.constant 0 : index
    %7 = vector.load %arg8[%c90_7, %c0_8] : memref<108x8xbf16, #tpu.memory_space<vmem>>, vector<18x8xbf16>
    tpu.vector_store %arg8[%c90_7, %c0_8], %6 {strides = array<i32>} : memref<108x8xbf16, #tpu.memory_space<vmem>>, vector<18x8xbf16>,
    %c0_9 = arith.constant 0 : index
    %c0_10 = arith.constant 0 : index
    %c0_11 = arith.constant 0 : index
    %8 = vector.load %arg1[%c0_9, %c0_10, %c0_11] : memref<1x80x16xbf16, #tpu.memory_space<vmem>>, vector<1x80x16xbf16>
    %9 = vector.shape_cast %8 : vector<1x80x16xbf16> to vector<80x16xbf16>
    %10 = vector.extract_strided_slice %9 {offsets = [0, 0], sizes = [80, 4], strides = [1, 1]} : vector<80x16xbf16> to vector<80x4xbf16>
    %11 = vector.extract_strided_slice %9 {offsets = [0, 4], sizes = [80, 4], strides = [1, 1]} : vector<80x16xbf16> to vector<80x4xbf16>
    %12 = arith.maximumf %10, %11 : vector<80x4xbf16>
    %13 = vector.extract_strided_slice %9 {offsets = [0, 8], sizes = [80, 4], strides = [1, 1]} : vector<80x16xbf16> to vector<80x4xbf16>
    %14 = vector.extract_strided_slice %9 {offsets = [0, 12], sizes = [80, 4], strides = [1, 1]} : vector<80x16xbf16> to vector<80x4xbf16>
    %15 = arith.maximumf %13, %14 : vector<80x4xbf16>
    %16 = arith.maximumf %12, %15 : vector<80x4xbf16>
    %c11 = arith.constant 11 : index
    %c0_12 = arith.constant 0 : index
    %17 = vector.load %arg7[%c11, %c0_12] : memref<108x4xbf16, #tpu.memory_space<vmem>>, vector<80x4xbf16>
    tpu.vector_store %arg7[%c11, %c0_12], %16 {strides = array<i32>} : memref<108x4xbf16, #tpu.memory_space<vmem>>, vector<80x4xbf16>,
    %18 = tpu.iota {dimensions = array<i32: 0>} : vector<80x1xi32>
    %c10_i32 = arith.constant 10 : i32
    %c0_i32 = arith.constant 0 : i32
    %19 = arith.cmpi eq, %c10_i32, %c0_i32 : i32
    %c1_i32 = arith.constant 1 : i32
    %20 = arith.select %19, %c1_i32, %c10_i32 : i32
    %21 = vector.broadcast %20 : i32 to vector<80x1xi32>
    %22 = arith.remsi %18, %21 : vector<80x1xi32>
    %c0_i32_13 = arith.constant 0 : i32
    %23 = vector.broadcast %c0_i32_13 : i32 to vector<80x1xi32>
    %24 = arith.cmpi ne, %22, %23 : vector<80x1xi32>
    %c0_i32_14 = arith.constant 0 : i32
    %25 = vector.broadcast %c0_i32_14 : i32 to vector<80x1xi32>
    %26 = arith.cmpi slt, %22, %25 : vector<80x1xi32>
    %c0_i32_15 = arith.constant 0 : i32
    %27 = arith.cmpi slt, %20, %c0_i32_15 : i32
    %28 = vector.broadcast %27 : i1 to vector<80x1xi1>
    %29 = vector.broadcast %28 : vector<80x1xi1> to vector<80x1xi1>
    %30 = arith.xori %26, %29 : vector<80x1xi1>
    %31 = arith.andi %30, %24 : vector<80x1xi1>
    %32 = vector.broadcast %20 : i32 to vector<80x1xi32>
    %33 = arith.addi %22, %32 : vector<80x1xi32>
    %34 = arith.select %31, %33, %22 : vector<80x1xi1>, vector<80x1xi32>
    %c8_i32 = arith.constant 8 : i32
    %35 = vector.broadcast %c8_i32 : i32 to vector<80x1xi32>
    %36 = arith.cmpi slt, %34, %35 : vector<80x1xi32>
    %c0_16 = arith.constant 0 : index
    %c0_17 = arith.constant 0 : index
    %37 = vector.load %arg7[%c0_16, %c0_17] : memref<108x4xbf16, #tpu.memory_space<vmem>>, vector<80x4xbf16>
    %c0_18 = arith.constant 0 : index
    %c0_19 = arith.constant 0 : index
    %c0_20 = arith.constant 0 : index
    %c0_21 = arith.constant 0 : index
    %38 = vector.load %arg2[%c0_18, %c0_19, %c0_20, %c0_21] : memref<3x3x4x8xbf16, #tpu.memory_space<vmem>>, vector<1x1x4x8xbf16>
    %39 = vector.shape_cast %38 : vector<1x1x4x8xbf16> to vector<4x8xbf16>
    %cst_22 = arith.constant dense<0.000000e+00> : vector<80x8xf32>
    %40 = tpu.matmul %37, %39, %cst_22 {dimension_numbers = #tpu.dot_dimension_numbers<[1], [0], [0], [1], [0, 0, 1, 1], [], []>} : vector<80x4xbf16>, vector<4x8xbf16>, vector<80x8xf32> -> vector<80x8xf32>
    %c1 = arith.constant 1 : index
    %c0_23 = arith.constant 0 : index
    %41 = vector.load %arg7[%c1, %c0_23] : memref<108x4xbf16, #tpu.memory_space<vmem>>, vector<80x4xbf16>
    %c0_24 = arith.constant 0 : index
    %c1_25 = arith.constant 1 : index
    %c0_26 = arith.constant 0 : index
    %c0_27 = arith.constant 0 : index
    %42 = vector.load %arg2[%c0_24, %c1_25, %c0_26, %c0_27] : memref<3x3x4x8xbf16, #tpu.memory_space<vmem>>, vector<1x1x4x8xbf16>
    %43 = vector.shape_cast %42 : vector<1x1x4x8xbf16> to vector<4x8xbf16>
    %cst_28 = arith.constant dense<0.000000e+00> : vector<80x8xf32>
    %44 = tpu.matmul %41, %43, %cst_28 {dimension_numbers = #tpu.dot_dimension_numbers<[1], [0], [0], [1], [0, 0, 1, 1], [], []>} : vector<80x4xbf16>, vector<4x8xbf16>, vector<80x8xf32> -> vector<80x8xf32>
    %45 = arith.addf %40, %44 : vector<80x8xf32>
    %c2 = arith.constant 2 : index
    %c0_29 = arith.constant 0 : index
    %46 = vector.load %arg7[%c2, %c0_29] : memref<108x4xbf16, #tpu.memory_space<vmem>>, vector<80x4xbf16>
    %c0_30 = arith.constant 0 : index
    %c2_31 = arith.constant 2 : index
    %c0_32 = arith.constant 0 : index
    %c0_33 = arith.constant 0 : index
    %47 = vector.load %arg2[%c0_30, %c2_31, %c0_32, %c0_33] : memref<3x3x4x8xbf16, #tpu.memory_space<vmem>>, vector<1x1x4x8xbf16>
    %48 = vector.shape_cast %47 : vector<1x1x4x8xbf16> to vector<4x8xbf16>
    %cst_34 = arith.constant dense<0.000000e+00> : vector<80x8xf32>
    %49 = tpu.matmul %46, %48, %cst_34 {dimension_numbers = #tpu.dot_dimension_numbers<[1], [0], [0], [1], [0, 0, 1, 1], [], []>} : vector<80x4xbf16>, vector<4x8xbf16>, vector<80x8xf32> -> vector<80x8xf32>
    %50 = arith.addf %45, %49 : vector<80x8xf32>
    %c10 = arith.constant 10 : index
    %c0_35 = arith.constant 0 : index
    %51 = vector.load %arg7[%c10, %c0_35] : memref<108x4xbf16, #tpu.memory_space<vmem>>, vector<80x4xbf16>
    %c1_36 = arith.constant 1 : index
    %c0_37 = arith.constant 0 : index
    %c0_38 = arith.constant 0 : index
    %c0_39 = arith.constant 0 : index
    %52 = vector.load %arg2[%c1_36, %c0_37, %c0_38, %c0_39] : memref<3x3x4x8xbf16, #tpu.memory_space<vmem>>, vector<1x1x4x8xbf16>
    %53 = vector.shape_cast %52 : vector<1x1x4x8xbf16> to vector<4x8xbf16>
    %cst_40 = arith.constant dense<0.000000e+00> : vector<80x8xf32>
    %54 = tpu.matmul %51, %53, %cst_40 {dimension_numbers = #tpu.dot_dimension_numbers<[1], [0], [0], [1], [0, 0, 1, 1], [], []>} : vector<80x4xbf16>, vector<4x8xbf16>, vector<80x8xf32> -> vector<80x8xf32>
    %55 = arith.addf %50, %54 : vector<80x8xf32>
    %c11_41 = arith.constant 11 : index
    %c0_42 = arith.constant 0 : index
    %56 = vector.load %arg7[%c11_41, %c0_42] : memref<108x4xbf16, #tpu.memory_space<vmem>>, vector<80x4xbf16>
    %c1_43 = arith.constant 1 : index
    %c1_44 = arith.constant 1 : index
    %c0_45 = arith.constant 0 : index
    %c0_46 = arith.constant 0 : index
    %57 = vector.load %arg2[%c1_43, %c1_44, %c0_45, %c0_46] : memref<3x3x4x8xbf16, #tpu.memory_space<vmem>>, vector<1x1x4x8xbf16>
    %58 = vector.shape_cast %57 : vector<1x1x4x8xbf16> to vector<4x8xbf16>
    %cst_47 = arith.constant dense<0.000000e+00> : vector<80x8xf32>
    %59 = tpu.matmul %56, %58, %cst_47 {dimension_numbers = #tpu.dot_dimension_numbers<[1], [0], [0], [1], [0, 0, 1, 1], [], []>} : vector<80x4xbf16>, vector<4x8xbf16>, vector<80x8xf32> -> vector<80x8xf32>
    %60 = arith.addf %55, %59 : vector<80x8xf32>
    %c12 = arith.constant 12 : index
    %c0_48 = arith.constant 0 : index
    %61 = vector.load %arg7[%c12, %c0_48] : memref<108x4xbf16, #tpu.memory_space<vmem>>, vector<80x4xbf16>
    %c1_49 = arith.constant 1 : index
    %c2_50 = arith.constant 2 : index
    %c0_51 = arith.constant 0 : index
    %c0_52 = arith.constant 0 : index
    %62 = vector.load %arg2[%c1_49, %c2_50, %c0_51, %c0_52] : memref<3x3x4x8xbf16, #tpu.memory_space<vmem>>, vector<1x1x4x8xbf16>
    %63 = vector.shape_cast %62 : vector<1x1x4x8xbf16> to vector<4x8xbf16>
    %cst_53 = arith.constant dense<0.000000e+00> : vector<80x8xf32>
    %64 = tpu.matmul %61, %63, %cst_53 {dimension_numbers = #tpu.dot_dimension_numbers<[1], [0], [0], [1], [0, 0, 1, 1], [], []>} : vector<80x4xbf16>, vector<4x8xbf16>, vector<80x8xf32> -> vector<80x8xf32>
    %65 = arith.addf %60, %64 : vector<80x8xf32>
    %c20 = arith.constant 20 : index
    %c0_54 = arith.constant 0 : index
    %66 = vector.load %arg7[%c20, %c0_54] : memref<108x4xbf16, #tpu.memory_space<vmem>>, vector<80x4xbf16>
    %c2_55 = arith.constant 2 : index
    %c0_56 = arith.constant 0 : index
    %c0_57 = arith.constant 0 : index
    %c0_58 = arith.constant 0 : index
    %67 = vector.load %arg2[%c2_55, %c0_56, %c0_57, %c0_58] : memref<3x3x4x8xbf16, #tpu.memory_space<vmem>>, vector<1x1x4x8xbf16>
    %68 = vector.shape_cast %67 : vector<1x1x4x8xbf16> to vector<4x8xbf16>
    %cst_59 = arith.constant dense<0.000000e+00> : vector<80x8xf32>
    %69 = tpu.matmul %66, %68, %cst_59 {dimension_numbers = #tpu.dot_dimension_numbers<[1], [0], [0], [1], [0, 0, 1, 1], [], []>} : vector<80x4xbf16>, vector<4x8xbf16>, vector<80x8xf32> -> vector<80x8xf32>
    %70 = arith.addf %65, %69 : vector<80x8xf32>
    %c21 = arith.constant 21 : index
    %c0_60 = arith.constant 0 : index
    %71 = vector.load %arg7[%c21, %c0_60] : memref<108x4xbf16, #tpu.memory_space<vmem>>, vector<80x4xbf16>
    %c2_61 = arith.constant 2 : index
    %c1_62 = arith.constant 1 : index
    %c0_63 = arith.constant 0 : index
    %c0_64 = arith.constant 0 : index
    %72 = vector.load %arg2[%c2_61, %c1_62, %c0_63, %c0_64] : memref<3x3x4x8xbf16, #tpu.memory_space<vmem>>, vector<1x1x4x8xbf16>
    %73 = vector.shape_cast %72 : vector<1x1x4x8xbf16> to vector<4x8xbf16>
    %cst_65 = arith.constant dense<0.000000e+00> : vector<80x8xf32>
    %74 = tpu.matmul %71, %73, %cst_65 {dimension_numbers = #tpu.dot_dimension_numbers<[1], [0], [0], [1], [0, 0, 1, 1], [], []>} : vector<80x4xbf16>, vector<4x8xbf16>, vector<80x8xf32> -> vector<80x8xf32>
    %75 = arith.addf %70, %74 : vector<80x8xf32>
    %c22 = arith.constant 22 : index
    %c0_66 = arith.constant 0 : index
    %76 = vector.load %arg7[%c22, %c0_66] : memref<108x4xbf16, #tpu.memory_space<vmem>>, vector<80x4xbf16>
    %c2_67 = arith.constant 2 : index
    %c2_68 = arith.constant 2 : index
    %c0_69 = arith.constant 0 : index
    %c0_70 = arith.constant 0 : index
    %77 = vector.load %arg2[%c2_67, %c2_68, %c0_69, %c0_70] : memref<3x3x4x8xbf16, #tpu.memory_space<vmem>>, vector<1x1x4x8xbf16>
    %78 = vector.shape_cast %77 : vector<1x1x4x8xbf16> to vector<4x8xbf16>
    %cst_71 = arith.constant dense<0.000000e+00> : vector<80x8xf32>
    %79 = tpu.matmul %76, %78, %cst_71 {dimension_numbers = #tpu.dot_dimension_numbers<[1], [0], [0], [1], [0, 0, 1, 1], [], []>} : vector<80x4xbf16>, vector<4x8xbf16>, vector<80x8xf32> -> vector<80x8xf32>
    %80 = arith.addf %75, %79 : vector<80x8xf32>
    %c0_72 = arith.constant 0 : index
    %c0_73 = arith.constant 0 : index
    %81 = vector.load %arg3[%c0_72, %c0_73] : memref<1x8xf32, #tpu.memory_space<vmem>>, vector<1x8xf32>
    %82 = vector.broadcast %81 : vector<1x8xf32> to vector<80x8xf32>
    %83 = arith.addf %80, %82 : vector<80x8xf32>
    %cst_74 = arith.constant 0.000000e+00 : f32
    %84 = vector.broadcast %cst_74 : f32 to vector<80x8xf32>
    %85 = arith.maximumf %83, %84 : vector<80x8xf32>
    %86 = arith.truncf %85 : vector<80x8xf32> to vector<80x8xbf16>
    %cst_75 = arith.constant 0.000000e+00 : f32
    %87 = arith.truncf %cst_75 : f32 to bf16
    %88 = vector.shape_cast %36 : vector<80x1xi1> to vector<80x1xi1>
    %89 = vector.broadcast %88 : vector<80x1xi1> to vector<80x8xi1>
    %90 = vector.broadcast %87 : bf16 to vector<80x8xbf16>
    %91 = arith.select %89, %86, %90 : vector<80x8xi1>, vector<80x8xbf16>
    %c11_76 = arith.constant 11 : index
    %c0_77 = arith.constant 0 : index
    %92 = vector.load %arg8[%c11_76, %c0_77] : memref<108x8xbf16, #tpu.memory_space<vmem>>, vector<80x8xbf16>
    tpu.vector_store %arg8[%c11_76, %c0_77], %91 {strides = array<i32>} : memref<108x8xbf16, #tpu.memory_space<vmem>>, vector<80x8xbf16>,
    %c0_78 = arith.constant 0 : index
    %c0_79 = arith.constant 0 : index
    %93 = vector.load %arg8[%c0_78, %c0_79] : memref<108x8xbf16, #tpu.memory_space<vmem>>, vector<80x8xbf16>
    %c0_80 = arith.constant 0 : index
    %c0_81 = arith.constant 0 : index
    %c0_82 = arith.constant 0 : index
    %c0_83 = arith.constant 0 : index
    %94 = vector.load %arg4[%c0_80, %c0_81, %c0_82, %c0_83] : memref<3x3x8x8xbf16, #tpu.memory_space<vmem>>, vector<1x1x8x8xbf16>
    %95 = vector.shape_cast %94 : vector<1x1x8x8xbf16> to vector<8x8xbf16>
    %cst_84 = arith.constant dense<0.000000e+00> : vector<80x8xf32>
    %96 = tpu.matmul %93, %95, %cst_84 {dimension_numbers = #tpu.dot_dimension_numbers<[1], [0], [0], [1], [0, 0, 1, 1], [], []>} : vector<80x8xbf16>, vector<8x8xbf16>, vector<80x8xf32> -> vector<80x8xf32>
    %c1_85 = arith.constant 1 : index
    %c0_86 = arith.constant 0 : index
    %97 = vector.load %arg8[%c1_85, %c0_86] : memref<108x8xbf16, #tpu.memory_space<vmem>>, vector<80x8xbf16>
    %c0_87 = arith.constant 0 : index
    %c1_88 = arith.constant 1 : index
    %c0_89 = arith.constant 0 : index
    %c0_90 = arith.constant 0 : index
    %98 = vector.load %arg4[%c0_87, %c1_88, %c0_89, %c0_90] : memref<3x3x8x8xbf16, #tpu.memory_space<vmem>>, vector<1x1x8x8xbf16>
    %99 = vector.shape_cast %98 : vector<1x1x8x8xbf16> to vector<8x8xbf16>
    %cst_91 = arith.constant dense<0.000000e+00> : vector<80x8xf32>
    %100 = tpu.matmul %97, %99, %cst_91 {dimension_numbers = #tpu.dot_dimension_numbers<[1], [0], [0], [1], [0, 0, 1, 1], [], []>} : vector<80x8xbf16>, vector<8x8xbf16>, vector<80x8xf32> -> vector<80x8xf32>
    %101 = arith.addf %96, %100 : vector<80x8xf32>
    %c2_92 = arith.constant 2 : index
    %c0_93 = arith.constant 0 : index
    %102 = vector.load %arg8[%c2_92, %c0_93] : memref<108x8xbf16, #tpu.memory_space<vmem>>, vector<80x8xbf16>
    %c0_94 = arith.constant 0 : index
    %c2_95 = arith.constant 2 : index
    %c0_96 = arith.constant 0 : index
    %c0_97 = arith.constant 0 : index
    %103 = vector.load %arg4[%c0_94, %c2_95, %c0_96, %c0_97] : memref<3x3x8x8xbf16, #tpu.memory_space<vmem>>, vector<1x1x8x8xbf16>
    %104 = vector.shape_cast %103 : vector<1x1x8x8xbf16> to vector<8x8xbf16>
    %cst_98 = arith.constant dense<0.000000e+00> : vector<80x8xf32>
    %105 = tpu.matmul %102, %104, %cst_98 {dimension_numbers = #tpu.dot_dimension_numbers<[1], [0], [0], [1], [0, 0, 1, 1], [], []>} : vector<80x8xbf16>, vector<8x8xbf16>, vector<80x8xf32> -> vector<80x8xf32>
    %106 = arith.addf %101, %105 : vector<80x8xf32>
    %c10_99 = arith.constant 10 : index
    %c0_100 = arith.constant 0 : index
    %107 = vector.load %arg8[%c10_99, %c0_100] : memref<108x8xbf16, #tpu.memory_space<vmem>>, vector<80x8xbf16>
    %c1_101 = arith.constant 1 : index
    %c0_102 = arith.constant 0 : index
    %c0_103 = arith.constant 0 : index
    %c0_104 = arith.constant 0 : index
    %108 = vector.load %arg4[%c1_101, %c0_102, %c0_103, %c0_104] : memref<3x3x8x8xbf16, #tpu.memory_space<vmem>>, vector<1x1x8x8xbf16>
    %109 = vector.shape_cast %108 : vector<1x1x8x8xbf16> to vector<8x8xbf16>
    %cst_105 = arith.constant dense<0.000000e+00> : vector<80x8xf32>
    %110 = tpu.matmul %107, %109, %cst_105 {dimension_numbers = #tpu.dot_dimension_numbers<[1], [0], [0], [1], [0, 0, 1, 1], [], []>} : vector<80x8xbf16>, vector<8x8xbf16>, vector<80x8xf32> -> vector<80x8xf32>
    %111 = arith.addf %106, %110 : vector<80x8xf32>
    %c11_106 = arith.constant 11 : index
    %c0_107 = arith.constant 0 : index
    %112 = vector.load %arg8[%c11_106, %c0_107] : memref<108x8xbf16, #tpu.memory_space<vmem>>, vector<80x8xbf16>
    %c1_108 = arith.constant 1 : index
    %c1_109 = arith.constant 1 : index
    %c0_110 = arith.constant 0 : index
    %c0_111 = arith.constant 0 : index
    %113 = vector.load %arg4[%c1_108, %c1_109, %c0_110, %c0_111] : memref<3x3x8x8xbf16, #tpu.memory_space<vmem>>, vector<1x1x8x8xbf16>
    %114 = vector.shape_cast %113 : vector<1x1x8x8xbf16> to vector<8x8xbf16>
    %cst_112 = arith.constant dense<0.000000e+00> : vector<80x8xf32>
    %115 = tpu.matmul %112, %114, %cst_112 {dimension_numbers = #tpu.dot_dimension_numbers<[1], [0], [0], [1], [0, 0, 1, 1], [], []>} : vector<80x8xbf16>, vector<8x8xbf16>, vector<80x8xf32> -> vector<80x8xf32>
    %116 = arith.addf %111, %115 : vector<80x8xf32>
    %c12_113 = arith.constant 12 : index
    %c0_114 = arith.constant 0 : index
    %117 = vector.load %arg8[%c12_113, %c0_114] : memref<108x8xbf16, #tpu.memory_space<vmem>>, vector<80x8xbf16>
    %c1_115 = arith.constant 1 : index
    %c2_116 = arith.constant 2 : index
    %c0_117 = arith.constant 0 : index
    %c0_118 = arith.constant 0 : index
    %118 = vector.load %arg4[%c1_115, %c2_116, %c0_117, %c0_118] : memref<3x3x8x8xbf16, #tpu.memory_space<vmem>>, vector<1x1x8x8xbf16>
    %119 = vector.shape_cast %118 : vector<1x1x8x8xbf16> to vector<8x8xbf16>
    %cst_119 = arith.constant dense<0.000000e+00> : vector<80x8xf32>
    %120 = tpu.matmul %117, %119, %cst_119 {dimension_numbers = #tpu.dot_dimension_numbers<[1], [0], [0], [1], [0, 0, 1, 1], [], []>} : vector<80x8xbf16>, vector<8x8xbf16>, vector<80x8xf32> -> vector<80x8xf32>
    %121 = arith.addf %116, %120 : vector<80x8xf32>
    %c20_120 = arith.constant 20 : index
    %c0_121 = arith.constant 0 : index
    %122 = vector.load %arg8[%c20_120, %c0_121] : memref<108x8xbf16, #tpu.memory_space<vmem>>, vector<80x8xbf16>
    %c2_122 = arith.constant 2 : index
    %c0_123 = arith.constant 0 : index
    %c0_124 = arith.constant 0 : index
    %c0_125 = arith.constant 0 : index
    %123 = vector.load %arg4[%c2_122, %c0_123, %c0_124, %c0_125] : memref<3x3x8x8xbf16, #tpu.memory_space<vmem>>, vector<1x1x8x8xbf16>
    %124 = vector.shape_cast %123 : vector<1x1x8x8xbf16> to vector<8x8xbf16>
    %cst_126 = arith.constant dense<0.000000e+00> : vector<80x8xf32>
    %125 = tpu.matmul %122, %124, %cst_126 {dimension_numbers = #tpu.dot_dimension_numbers<[1], [0], [0], [1], [0, 0, 1, 1], [], []>} : vector<80x8xbf16>, vector<8x8xbf16>, vector<80x8xf32> -> vector<80x8xf32>
    %126 = arith.addf %121, %125 : vector<80x8xf32>
    %c21_127 = arith.constant 21 : index
    %c0_128 = arith.constant 0 : index
    %127 = vector.load %arg8[%c21_127, %c0_128] : memref<108x8xbf16, #tpu.memory_space<vmem>>, vector<80x8xbf16>
    %c2_129 = arith.constant 2 : index
    %c1_130 = arith.constant 1 : index
    %c0_131 = arith.constant 0 : index
    %c0_132 = arith.constant 0 : index
    %128 = vector.load %arg4[%c2_129, %c1_130, %c0_131, %c0_132] : memref<3x3x8x8xbf16, #tpu.memory_space<vmem>>, vector<1x1x8x8xbf16>
    %129 = vector.shape_cast %128 : vector<1x1x8x8xbf16> to vector<8x8xbf16>
    %cst_133 = arith.constant dense<0.000000e+00> : vector<80x8xf32>
    %130 = tpu.matmul %127, %129, %cst_133 {dimension_numbers = #tpu.dot_dimension_numbers<[1], [0], [0], [1], [0, 0, 1, 1], [], []>} : vector<80x8xbf16>, vector<8x8xbf16>, vector<80x8xf32> -> vector<80x8xf32>
    %131 = arith.addf %126, %130 : vector<80x8xf32>
    %c22_134 = arith.constant 22 : index
    %c0_135 = arith.constant 0 : index
    %132 = vector.load %arg8[%c22_134, %c0_135] : memref<108x8xbf16, #tpu.memory_space<vmem>>, vector<80x8xbf16>
    %c2_136 = arith.constant 2 : index
    %c2_137 = arith.constant 2 : index
    %c0_138 = arith.constant 0 : index
    %c0_139 = arith.constant 0 : index
    %133 = vector.load %arg4[%c2_136, %c2_137, %c0_138, %c0_139] : memref<3x3x8x8xbf16, #tpu.memory_space<vmem>>, vector<1x1x8x8xbf16>
    %134 = vector.shape_cast %133 : vector<1x1x8x8xbf16> to vector<8x8xbf16>
    %cst_140 = arith.constant dense<0.000000e+00> : vector<80x8xf32>
    %135 = tpu.matmul %132, %134, %cst_140 {dimension_numbers = #tpu.dot_dimension_numbers<[1], [0], [0], [1], [0, 0, 1, 1], [], []>} : vector<80x8xbf16>, vector<8x8xbf16>, vector<80x8xf32> -> vector<80x8xf32>
    %136 = arith.addf %131, %135 : vector<80x8xf32>
    %c0_141 = arith.constant 0 : index
    %c0_142 = arith.constant 0 : index
    %137 = vector.load %arg5[%c0_141, %c0_142] : memref<1x8xf32, #tpu.memory_space<vmem>>, vector<1x8xf32>
    %138 = vector.broadcast %137 : vector<1x8xf32> to vector<80x8xf32>
    %139 = arith.addf %136, %138 : vector<80x8xf32>
    %cst_143 = arith.constant 0.000000e+00 : f32
    %140 = vector.broadcast %cst_143 : f32 to vector<80x8xf32>
    %141 = arith.maximumf %139, %140 : vector<80x8xf32>
    %c0_144 = arith.constant 0 : index
    %c0_145 = arith.constant 0 : index
    %c0_146 = arith.constant 0 : index
    %142 = vector.load %arg6[%c0_144, %c0_145, %c0_146] : memref<1x80x8xf32, #tpu.memory_space<vmem>>, vector<1x80x8xf32>
    %143 = vector.shape_cast %142 : vector<1x80x8xf32> to vector<80x8xf32>
    %144 = vector.shape_cast %141 : vector<80x8xf32> to vector<1x80x8xf32>
    tpu.vector_store %arg6[%c0_144, %c0_145, %c0_146], %144 {strides = array<i32>} : memref<1x80x8xf32, #tpu.memory_space<vmem>>, vector<1x80x8xf32>,
    return
  }
  func.func @transform_0(%arg0: i32) -> (i32, i32, i32) {
    %c0_i32 = arith.constant 0 : i32
    %c0_i32_0 = arith.constant 0 : i32
    %c0_i32_1 = arith.constant 0 : i32
    return %arg0, %c0_i32, %c0_i32_0 : i32, i32, i32
  }
  func.func @transform_1(%arg0: i32) -> (i32, i32, i32, i32) {
    %c0_i32 = arith.constant 0 : i32
    %c0_i32_0 = arith.constant 0 : i32
    %c0_i32_1 = arith.constant 0 : i32
    %c0_i32_2 = arith.constant 0 : i32
    %c0_i32_3 = arith.constant 0 : i32
    return %c0_i32, %c0_i32_0, %c0_i32_1, %c0_i32_2 : i32, i32, i32, i32
  }
  func.func @transform_2(%arg0: i32) -> (i32, i32) {
    %c0_i32 = arith.constant 0 : i32
    %c0_i32_0 = arith.constant 0 : i32
    %c0_i32_1 = arith.constant 0 : i32
    return %c0_i32, %c0_i32_0 : i32, i32
  }
  func.func @transform_3(%arg0: i32) -> (i32, i32, i32, i32) {
    %c0_i32 = arith.constant 0 : i32
    %c0_i32_0 = arith.constant 0 : i32
    %c0_i32_1 = arith.constant 0 : i32
    %c0_i32_2 = arith.constant 0 : i32
    %c0_i32_3 = arith.constant 0 : i32
    return %c0_i32, %c0_i32_0, %c0_i32_1, %c0_i32_2 : i32, i32, i32, i32
  }
  func.func @transform_4(%arg0: i32) -> (i32, i32) {
    %c0_i32 = arith.constant 0 : i32
    %c0_i32_0 = arith.constant 0 : i32
    %c0_i32_1 = arith.constant 0 : i32
    return %c0_i32, %c0_i32_0 : i32, i32
  }
  func.func @transform_5(%arg0: i32) -> (i32, i32, i32) {
    %c0_i32 = arith.constant 0 : i32
    %c0_i32_0 = arith.constant 0 : i32
    %c0_i32_1 = arith.constant 0 : i32
    return %arg0, %c0_i32, %c0_i32_0 : i32, i32, i32
  }
}

</mosaic_0001>

<bundles_post_ra>
// kernel: tpu_custom_call.1
= control target key start
LH: loop header
LB: loop body
LE: loop exit
PB: predicated region body
PF: predicated region fallthrough
CT: control target
= control target key end

     0   :  { %s4316_s18 = smov 0   ;;  %s5663_s0 = inlined_call_operand.vmem [shape: bf16[2,80,16], index: 0, kind: input, shape index: {}]   ;;  %s5664_s1 = inlined_call_operand.vmem [shape: bf16[3,3,4,8], index: 1, kind: input, shape index: {}]   ;;  %s5665_s2 = inlined_call_operand.vmem [shape: f32[1,8], index: 2, kind: input, shape index: {}]   ;;  %s5666_s3 = inlined_call_operand.vmem [shape: bf16[3,3,8,8], index: 3, kind: input, shape index: {}]   ;;  %s5667_s4 = inlined_call_operand.vmem [shape: f32[1,8], index: 4, kind: input, shape index: {}]   ;;  %s5668_s5 = inlined_call_operand.vmem [shape: f32[2,80,8], index: 5, kind: output, shape index: {}]  }
   0x1 LB: > { %s3511_s19 = sadd.s32 4294967295, %s4279_s18   ;;  %p3515_p0 = scmp.ge.s32.totalorder %s4279_s18, 1  ;;  %s4279_s18 = sphi %s4316_s18, %s15_s18  }
   0x2   : > { %p187_p1 = scmp.lt.s32.totalorder %s4279_s18, 3 }
   0x4   : > { %p188_p2 = pnand %p3515_p0, %p187_p1 }
   0x5   : > { %p215_p3 = scmp.lt.s32.totalorder (!%p188_p2), %s3511_s19, 1  ;;  %s4281_s24 = smov (!%p188_p2), 124  }
   0x6   : > { %191 = sbr.rel (%p188_p2) target bundleno = 1071 (0x42f), region = 40  ;;  %s4283_s25 = smov (!%p188_p2), 120  }
   0xb   : > { %s5781_s19 = smov (!%p215_p3, %s3511_s19), 1  ;;  %vm230_vm0 = vcmask 25600   ;;  %vm231_vm1 = vsmask.f32 1280  ;;  %v233_v8 = vld [vmem:[#allocation2 + $0x4] sm:$0x3] }
   0xc   : > { %s4193_s20 = smul.u32 40, %s5781_s19  ;;  %vm4347_vm2 = vmand %vm230_vm0, %vm231_vm1  ;;  %vm236_vm3 = vcmask 27649   ;;  %vm243_vm4 = vcmask 58368   ;;  %v245_v10 = vld [vmem:[#allocation3 + $0x4] sm:$0x3]  ;;  %vm248_vm5 = vcmask 60417  }
   0xd   : > { %v234_v11 = vsel %vm4347_vm2, 0, %v233_v8  ;;  %v4282_v12 = vmov 0   ;;  %vm4356_vm6 = vmand %vm243_vm4, %vm231_vm1  ;;  %vm476_vm7 = vsmask.f32 7942  ;;  %vm228_vm9 = vcmask 27648   ;;  %s4194_s16 = smul.u32 80, %s5781_s19 }
   0xe   : > { %s4330_s23 = scalar_lea.vmem %s5663_s0, %s4193_s20  ;;  %237 = vst.msk [vmem:[#allocation2 + $0x2c] sm:$0xe] %vm236_vm3, %v4282_v12  ;;  %235 = vst [vmem:[#allocation2 + $0x4] sm:$0x3] %v234_v11  ;;  %v246_v14 = vsel %vm4356_vm6, 0, %v245_v10  ;;  %vm777_vm10 = vcmask 1041408  }
   0xf   : > { %v253_v0 = vld [vmem:[%s4330_s23] sm:$0xf]  ;;  %v255_v1 = vld [vmem:[%s4330_s23 + $0x8] sm:$0xf]  ;;  %v254_v2 = vld [vmem:[%s4330_s23 + $0x4] sm:$0xf] }
  0x10   : > { %273 = vrot.lane.b32.xlu0 %v253_v0, %s4281_s24  ;;  %277 = vrot.lane.b32.xlu1 %v255_v1, %s4281_s24  ;;  %v256_v3 = vld [vmem:[%s4330_s23 + $0xc] sm:$0xf]  ;;  %v257_v4 = vld [vmem:[%s4330_s23 + $0x10] sm:$0xf]  ;;  %249 = vst.msk [vmem:[#allocation3 + $0x2c] sm:$0xe] %vm248_vm5, %v4282_v12  ;;  %vm4368_vm8 = vmand %vm248_vm5, %vm476_vm7 }
  0x11   : > { %v258_v5 = vld [vmem:[%s4330_s23 + $0x14] sm:$0xf]  ;;  %v259_v6 = vld [vmem:[%s4330_s23 + $0x18] sm:$0xf]  ;;  %v260_v7 = vld [vmem:[%s4330_s23 + $0x1c] sm:$0xf] }
  0x12   : > { %v261_v15 = vld [vmem:[%s4330_s23 + $0x20] sm:$0xf]  ;;  %v262_v16 = vld [vmem:[%s4330_s23 + $0x24] sm:$0xf]  ;;  %247 = vst [vmem:[#allocation3 + $0x4] sm:$0x3] %v246_v14  ;;  %vm477_vm13 = vmand %vm236_vm3, %vm476_vm7  ;;  %s5615_s23 = scalar_lea.vmem %s5668_s5, %s4194_s16 }
  0x13   : > { %229 = vst.msk [vmem:[#allocation2] sm:$0xf] %vm228_vm9, %v4282_v12  ;;  %238 = vst.msk [vmem:[#allocation2 + $0x30] sm:$0xf] %vm228_vm9, %v4282_v12  ;;  %v684_v26 = vld [vmem:[%s5664_s1] sm:$0x3] }
  0x14   : > { %275 = vrot.lane.b32.xlu0 %v254_v2, %s4281_s24  ;;  %279 = vrot.lane.b32.xlu1 %v256_v3, %s4281_s24  ;;  %v4284_v29 = vmov 0.0   ;;  %v865_v30 = vsel %vm777_vm10, %v684_v26, 0  ;;  %vm5675_vm11 = vmmov 0   ;;  %v3518_v41 = vld [vmem:[%s5664_s1 + $0x2] sm:$0x3]  ;;  %vm761_vm15 = vcmask 31744  }
  0x15   : > { %3819 = vmatprep.subr.bf16.mxu1 %v4284_v29  ;;  %3797 = vmatprep.subr.bf16.mxu0 %v4284_v29  ;;  %v779_v42 = vsel %vm777_vm10, %v3518_v41, 0  ;;  %vm363_vm12 = vsmask.f32 5392  ;;  %v478_v53 = vld [vmem:[#allocation2 + $0x4] sm:$0xe]  ;;  %vm5669_vm5 = vcmask 1044480  }
  0x16   : > { %3820 = vmatpush3.bf16.msra.mxu1 %v865_v30  ;;  %3821 = vmatprep.mubr.msk.bf16.mxu1 %vm5675_vm11, %v4284_v29  ;;  %vm4419_vm14 = vmor %vm231_vm1, %vm363_vm12  ;;  %vm5674_vm0 = vsmask.f32 7424  ;;  %vm5673_vm1 = vcmask 1046528   ;;  %vm5671_vm3 = vsmask.f32 6400  ;;  %vm241_vm7 = vcmask 60416  }
  0x17   : > { %3863 = vmatprep.subr.bf16.mxu1 %v4284_v29  ;;  %3799 = vmatprep.mubr.msk.bf16.mxu0 %vm5675_vm11, %v4284_v29  ;;  %vm5670_vm4 = vsmask.f32 5376  ;;  %242 = vst.msk [vmem:[#allocation3] sm:$0xf] %vm241_vm7, %v4282_v12  ;;  %250 = vst.msk [vmem:[#allocation3 + $0x30] sm:$0xf] %vm241_vm7, %v4282_v12 }
  0x18   : > { %281 = vrot.lane.b32.xlu0 %v257_v4, %s4281_s24  ;;  %283 = vrot.lane.b32.xlu1 %v258_v5, %s4281_s24 }
  0x19   : > { %3798 = vmatpush3.bf16.msra.mxu0 %v779_v42 }
  0x1a   : > { %3841 = vmatprep.subr.bf16.mxu0 %v4284_v29 }
  0x1c   : > { %285 = vrot.lane.b32.xlu0 %v259_v6, %s4281_s24  ;;  %287 = vrot.lane.b32.xlu1 %v260_v7, %s4281_s24 }
  0x20   : > { %289 = vrot.lane.b32.xlu0 %v261_v15, %s4281_s24  ;;  %291 = vrot.lane.b32.xlu1 %v262_v16, %s4281_s24 }
  0x82   : > { %v274_v18 = vpop.permute.xlu0 %273  ;;  %v278_v19 = vpop.permute.xlu1 %277 }
  0x83   : > { %v303_v20 = vmax.bf16 %v274_v18, %v253_v0  ;;  %v305_v21 = vmax.bf16 %v278_v19, %v255_v1 }
  0x85   : > { %323 = vrot.lane.b32.xlu0 %v303_v20, %s4283_s25 }
  0x86   : > { %v276_v22 = vpop.permute.xlu0 %275  ;;  %v280_v23 = vpop.permute.xlu1 %279 }
  0x87   : > { %v304_v24 = vmax.bf16 %v276_v22, %v254_v2  ;;  %v306_v25 = vmax.bf16 %v280_v23, %v256_v3 }
  0x89   : > { %327 = vrot.lane.b32.xlu0 %v305_v21, %s4283_s25  ;;  %325 = vrot.lane.b32.xlu1 %v304_v24, %s4283_s25 }
  0x8a   : > { %v282_v27 = vpop.permute.xlu0 %281  ;;  %v284_v28 = vpop.permute.xlu1 %283 }
  0x8b   : > { %v307_v31 = vmax.bf16 %v282_v27, %v257_v4  ;;  %v308_v32 = vmax.bf16 %v284_v28, %v258_v5 }
  0x8d   : > { %329 = vrot.lane.b32.xlu1 %v306_v25, %s4283_s25  ;;  %331 = vrot.lane.b32.xlu0 %v307_v31, %s4283_s25 }
  0x8e   : > { %v286_v33 = vpop.permute.xlu0 %285  ;;  %v288_v34 = vpop.permute.xlu1 %287 }
  0x8f   : > { %v4394_v35 = vmax.bf16 %v286_v33, %v259_v6  ;;  %v4399_v36 = vmax.bf16 %v288_v34, %v260_v7 }
  0x91   : > { %333 = vrot.lane.b32.xlu1 %v308_v32, %s4283_s25  ;;  %335 = vrot.lane.b32.xlu0 %v4394_v35, %s4283_s25 }
  0x92   : > { %v290_v37 = vpop.permute.xlu0 %289  ;;  %v292_v38 = vpop.permute.xlu1 %291 }
  0x93   : > { %v4401_v39 = vmax.bf16 %v290_v37, %v261_v15  ;;  %v4407_v40 = vmax.bf16 %v292_v38, %v262_v16 }
  0x95   : > { %337 = vrot.lane.b32.xlu1 %v4399_v36, %s4283_s25  ;;  %339 = vrot.lane.b32.xlu0 %v4401_v39, %s4283_s25 }
  0x99   : > { %341 = vrot.lane.b32.xlu1 %v4407_v40, %s4283_s25 }
  0xf7   : > { %v324_v43 = vpop.permute.xlu0 %323 }
  0xf8   : > { %v353_v44 = vmax.bf16 %v324_v43, %v303_v20 }
  0xfa   : > { %v366_v45 = vshrl.u32 %v353_v44, 16  ;;  %v369_v46 = vshll.u32 %v353_v44, 16 }
  0xfb   : > { %v326_v47 = vpop.permute.xlu1 %325  ;;  %v328_v48 = vpop.permute.xlu0 %327 }
  0xfc   : > { %v368_v49 = vrot.slane %v366_v45, 6  ;;  %v371_v50 = vrot.slane %v369_v46, 7  ;;  %v354_v51 = vmax.bf16 %v326_v47, %v304_v24  ;;  %v355_v52 = vmax.bf16 %v328_v48, %v305_v21 }
  0xfe   : > { %v372_v54 = vor.u32 %v371_v50, %v368_v49  ;;  %v375_v55 = vshrl.u32 %v354_v51, 16  ;;  %v378_v56 = vshll.u32 %v354_v51, 16  ;;  %v385_v57 = vshrl.u32 %v355_v52, 16  ;;  %v674_v49 = vld [vmem:[#allocation2] sm:$0xf] }
  0xff   : > { %v388_v58 = vshll.u32 %v355_v52, 16  ;;  %v330_v59 = vpop.permute.xlu1 %329  ;;  %v332_v60 = vpop.permute.xlu0 %331 }
 0x100   : > { %v479_v61 = vsel %vm477_vm13, %v372_v54, %v478_v53  ;;  %v377_v62 = vrot.slane %v375_v55, 6  ;;  %v380_v63 = vrot.slane %v378_v56, 7  ;;  %v387_v1 = vrot.slane %v385_v57, 6  ;;  %v3542_v55 = vld [vmem:[%s5664_s1 + $0x6] sm:$0x3] }
 0x101   : > { %480 = vst [vmem:[#allocation2 + $0x4] sm:$0xe] %v479_v61  ;;  %v390_v2 = vrot.slane %v388_v58, 7  ;;  %v356_v3 = vmax.bf16 %v330_v59, %v306_v25  ;;  %v357_v4 = vmax.bf16 %v332_v60, %v307_v31  ;;  %v373_v5 = vrot.slane %v372_v54, 4 }
 0x102   : > { %v381_v6 = vor.u32 %v380_v63, %v377_v62 }
 0x103   : > { %v391_v7 = vor.u32 %v390_v2, %v387_v1  ;;  %v395_v8 = vshrl.u32 %v356_v3, 16  ;;  %v398_v10 = vshll.u32 %v356_v3, 16  ;;  %v405_v11 = vshrl.u32 %v357_v4, 16  ;;  %v334_v14 = vpop.permute.xlu1 %333  ;;  %v336_v15 = vpop.permute.xlu0 %335 }
 0x104   : > { %v382_v16 = vsel %vm4419_vm14, %v373_v5, %v381_v6  ;;  %v383_v18 = vrot.slane %v381_v6, 4  ;;  %v408_v19 = vshll.u32 %v357_v4, 16  ;;  %v358_v20 = vmax.bf16 %v334_v14, %v308_v32 }
 0x105   : > { %481 = vst.msk [vmem:[#allocation2 + $0x8] sm:$0xf] %vm228_vm9, %v382_v16  ;;  %v397_v21 = vrot.slane %v395_v8, 6  ;;  %v400_v22 = vrot.slane %v398_v10, 7  ;;  %v407_v23 = vrot.slane %v405_v11, 6  ;;  %v393_v28 = vrot.slane %v391_v7, 4 }
 0x106   : > { %v392_v24 = vsel %vm4419_vm14, %v383_v18, %v391_v7  ;;  %v410_v25 = vrot.slane %v408_v19, 7  ;;  %v415_v26 = vshrl.u32 %v358_v20, 16  ;;  %v418_v27 = vshll.u32 %v358_v20, 16  ;;  %v3535_v20 = vld [vmem:[%s5664_s1 + $0x4] sm:$0x3] }
 0x107   : > { %482 = vst.msk [vmem:[#allocation2 + $0xc] sm:$0xf] %vm228_vm9, %v392_v24  ;;  %v401_v30 = vor.u32 %v400_v22, %v397_v21  ;;  %v359_v31 = vmax.bf16 %v336_v15, %v4394_v35  ;;  %v338_v33 = vpop.permute.xlu1 %337  ;;  %v340_v41 = vpop.permute.xlu0 %339  ;;  %v1127_v3 = vsel %vm777_vm10, %v3542_v55, 0 }
 0x108   : > { %v411_v32 = vor.u32 %v410_v25, %v407_v23  ;;  %v417_v34 = vrot.slane %v415_v26, 6  ;;  %v420_v37 = vrot.slane %v418_v27, 7  ;;  %v360_v38 = vmax.bf16 %v338_v33, %v4399_v36  ;;  %v4437_v54 = vld [vmem:[#allocation2 + $0x4] sm:$0xf] }
 0x109   : > { %v402_v42 = vsel %vm4419_vm14, %v393_v28, %v401_v30  ;;  %v403_v43 = vrot.slane %v401_v30, 4  ;;  %v425_v44 = vshrl.u32 %v359_v31, 16  ;;  %v428_v45 = vshll.u32 %v359_v31, 16  ;;  %v490_v28 = vld [vmem:[#allocation2 + $0x2c] sm:$0x3] }
 0x10a   : > { %483 = vst.msk [vmem:[#allocation2 + $0x10] sm:$0xf] %vm228_vm9, %v402_v42  ;;  %v413_v46 = vrot.slane %v411_v32, 4  ;;  %v421_v47 = vor.u32 %v420_v37, %v417_v34  ;;  %v435_v48 = vshrl.u32 %v360_v38, 16  ;;  %v438_v35 = vshll.u32 %v360_v38, 16 }
 0x10b   : > { %v412_v50 = vsel %vm4419_vm14, %v403_v43, %v411_v32  ;;  %v427_v51 = vrot.slane %v425_v44, 6  ;;  %v430_v52 = vrot.slane %v428_v45, 7  ;;  %v361_v36 = vmax.bf16 %v340_v41, %v4401_v39  ;;  %v342_v53 = vpop.permute.xlu1 %341 }
 0x10c   : > { %484 = vst.msk [vmem:[#allocation2 + $0x14] sm:$0xf] %vm228_vm9, %v412_v50  ;;  %v422_v56 = vsel %vm4419_vm14, %v413_v46, %v421_v47  ;;  %v423_v57 = vrot.slane %v421_v47, 4  ;;  %v437_v58 = vrot.slane %v435_v48, 6  ;;  %v440_v59 = vrot.slane %v438_v35, 7 }
 0x10d   : > { %485 = vst.msk [vmem:[#allocation2 + $0x18] sm:$0xf] %vm228_vm9, %v422_v56  ;;  %v431_v60 = vor.u32 %v430_v52, %v427_v51  ;;  %v445_v61 = vshrl.u32 %v361_v36, 16  ;;  %v448_v39 = vshll.u32 %v361_v36, 16  ;;  %v362_v62 = vmax.bf16 %v342_v53, %v4407_v40  ;;  %v4513_v55 = vld [vmem:[#allocation2 + $0x8] sm:$0xf] }
 0x10e   : > { %v441_v63 = vor.u32 %v440_v59, %v437_v58  ;;  %v3519_v1 = vcombine.low %v674_v49, %v4437_v54  ;;  %v4448_v2 = vld [vmem:[#allocation2 + $0x8] sm:$0xff]   ;;  %v974_v32 = vsel %vm777_vm10, %v3535_v20, 0  ;;  %v1059_v59 = vld [vmem:[#allocation2 + $0x4] sm:$0xe] }
 0x10f   : > { %v432_v4 = vsel %vm4419_vm14, %v423_v57, %v431_v60  ;;  %v433_v5 = vrot.slane %v431_v60, 4  ;;  %v447_v6 = vrot.slane %v445_v61, 6  ;;  %v450_v7 = vrot.slane %v448_v39, 7 }
 0x110   : > { %486 = vst.msk [vmem:[#allocation2 + $0x1c] sm:$0xf] %vm228_vm9, %v432_v4  ;;  %v443_v8 = vrot.slane %v441_v63, 4  ;;  %v455_v10 = vshrl.u32 %v362_v62, 16  ;;  %v458_v11 = vshll.u32 %v362_v62, 16  ;;  %3822 = vmatmul.mubr.msk.bf16.vlgmr.msra.gmra.mxu1 %vm761_vm15, %v3519_v1  ;;  %v720_v15 = vshll.u32 %v3519_v1, 16 }
 0x111   : > { %v442_v40 = vsel %vm4419_vm14, %v433_v5, %v441_v63  ;;  %v451_v14 = vor.u32 %v450_v7, %v447_v6  ;;  %3825 = vmatprep.mubr.msk.bf16.mxu1 %vm5675_vm11, %v4284_v29  ;;  %3864 = vmatpush3.bf16.msra.mxu1 %v1127_v3  ;;  %v725_v19 = vshll.u32 %v4448_v2, 16  ;;  %v718_v22 = vshrl.u32 %v3519_v1, 16  ;;  %v4516_v57 = vld [vmem:[#allocation2 + $0xc] sm:$0xff]   ;;  %v3561_v1 = vld [vmem:[%s5664_s1 + $0xa] sm:$0x3] }
 0x112   : > { %487 = vst.msk [vmem:[#allocation2 + $0x20] sm:$0xf] %vm228_vm9, %v442_v40  ;;  %v457_v16 = vrot.slane %v455_v10, 6  ;;  %v460_v18 = vrot.slane %v458_v11, 7  ;;  %3907 = vmatprep.subr.bf16.mxu1 %v4284_v29  ;;  %v722_v23 = vrot.slane %v720_v15, 1  ;;  %v729_v41 = vshrl.u32 %v4448_v2, 16 }
 0x113   : > { %v452_v21 = vsel %vm4419_vm14, %v443_v8, %v451_v14  ;;  %v4467_v24 = vld [vmem:[#allocation2 + $0x10] sm:$0xff]   ;;  %v453_v25 = vrot.slane %v451_v14, 4  ;;  %v727_v27 = vrot.slane %v725_v19, 1  ;;  %v4525_v60 = vcombine.low %v1059_v59, %v4513_v55  ;;  %v940_v4 = vld [vmem:[#allocation2] sm:$0xe] }
 0x114   : > { %488 = vst.msk [vmem:[#allocation2 + $0x24] sm:$0xf] %vm228_vm9, %v452_v21  ;;  %v461_v26 = vor.u32 %v460_v18, %v457_v16  ;;  %v723_v30 = vor.u32 %v722_v23, %v718_v22  ;;  %v733_v37 = vshll.u32 %v4467_v24, 16  ;;  %v737_v46 = vshrl.u32 %v4467_v24, 16  ;;  %v4537_v7 = vld [vmem:[#allocation2 + $0x14] sm:$0xff]  }
 0x115   : > { %v731_v43 = vor.u32 %v729_v41, %v727_v27  ;;  %v1101_v39 = vrot.slane %v4516_v57, 1  ;;  %v1100_v3 = vrot.slane %v4525_v60, 1  ;;  %v1407_v8 = vsel %vm777_vm10, %v3561_v1, 0  ;;  %v3554_v14 = vld [vmem:[%s5664_s1 + $0x8] sm:$0x3] }
 0x116   : > { %v462_v31 = vsel %vm4419_vm14, %v453_v25, %v461_v26  ;;  %v463_v33 = vrot.slane %v461_v26, 4  ;;  %v728_v34 = vsel %vm5674_vm0, %v723_v30, %v727_v27  ;;  %v735_v42 = vrot.slane %v733_v37, 1 }
 0x117   : > { %489 = vst.msk [vmem:[#allocation2 + $0x28] sm:$0xf] %vm228_vm9, %v462_v31  ;;  %3800 = vmatmul.mubr.msk.bf16.vlgmr.msra.gmra.mxu0 %vm761_vm15, %v728_v34  ;;  %v4487_v9 = vld [vmem:[#allocation2 + $0x18] sm:$0xff]   ;;  %v1102_v5 = vsel %vm5673_vm1, %v1100_v3, %v1101_v39  ;;  %v3536_v10 = vcombine.low %v940_v4, %v4437_v54  ;;  %v1103_v11 = vrot.slane %v4537_v7, 1  ;;  %v948_v40 = vrot.slane %v4448_v2, 1 }
 0x118   : > { %v491_v38 = vsel %vm4347_vm2, %v463_v33, %v490_v28  ;;  %3826 = vmatmul.mubr.msk.bf16.gmra.mxu1 %vm761_vm15, %v4448_v2  ;;  %3842 = vmatpush3.bf16.msra.mxu0 %v974_v32  ;;  %v736_v44 = vsel %vm5674_vm0, %v731_v43, %v735_v42  ;;  %v741_v45 = vshll.u32 %v4487_v9, 16  ;;  %v739_v35 = vor.u32 %v737_v46, %v735_v42  ;;  %v1373_v34 = vld [vmem:[#allocation2 + $0x4] sm:$0xc]  ;;  %v3580_v43 = vld [vmem:[%s5664_s1 + $0xe] sm:$0x3] }
 0x119   : > { %492 = vst [vmem:[#allocation2 + $0x2c] sm:$0x3] %v491_v38  ;;  %3829 = vmatprep.mubr.msk.bf16.mxu1 %vm5675_vm11, %v4284_v29  ;;  %3803 = vmatprep.mubr.msk.bf16.mxu0 %vm5675_vm11, %v4284_v29  ;;  %v745_v51 = vshrl.u32 %v4487_v9, 16  ;;  %v947_v15 = vrot.slane %v3536_v10, 1  ;;  %v1288_v54 = vsel %vm777_vm10, %v3554_v14, 0  ;;  %v1104_v16 = vsel %vm5673_vm1, %v1101_v39, %v1103_v11  ;;  %v4556_v19 = vld [vmem:[#allocation2 + $0x1c] sm:$0xff]  }
 0x11a   : > { %3885 = vmatprep.subr.bf16.mxu0 %v4284_v29  ;;  %v743_v47 = vrot.slane %v741_v45, 1  ;;  %v1105_v2 = vrot.slane %v4556_v19, 1  ;;  %v950_v20 = vrot.slane %v4467_v24, 1  ;;  %v3562_v37 = vcombine.low %v1373_v34, %v4513_v55  ;;  %v3568_v55 = vld [vmem:[%s5664_s1 + $0xc] sm:$0x3] }
 0x11b   : > { %v4499_v48 = vld [vmem:[#allocation2 + $0x20] sm:$0xff]   ;;  %v949_v18 = vsel %vm5673_vm1, %v947_v15, %v948_v40  ;;  %v1381_v38 = vrot.slane %v4516_v57, 2  ;;  %v1228_v42 = vshrl.u32 %v4516_v57, 16  ;;  %vm5672_vm2 = vcmask 1045504  }
 0x11c   : > { %v744_v49 = vsel %vm5674_vm0, %v739_v35, %v743_v47  ;;  %v749_v50 = vshll.u32 %v4499_v48, 16  ;;  %v747_v53 = vor.u32 %v745_v51, %v743_v47  ;;  %v753_v61 = vshrl.u32 %v4499_v48, 16 }
 0x11d   : > { %v1106_v21 = vsel %vm5673_vm1, %v1103_v11, %v1105_v2  ;;  %v951_v22 = vsel %vm5673_vm1, %v948_v40, %v950_v20  ;;  %v954_v31 = vrot.slane %v4499_v48, 1  ;;  %v1220_v45 = vshrl.u32 %v4525_v60, 16 }
 0x11e   : > { %v751_v52 = vrot.slane %v749_v50, 1  ;;  %v4511_v36 = vld [vmem:[#allocation2 + $0x28] ss:$0 sps:$4 sm:$0x11]   ;;  %v1223_v46 = vshll.u32 %v4525_v60, 16  ;;  %v1721_v47 = vsel %vm777_vm10, %v3580_v43, 0 }
 0x11f   : > { %3804 = vmatmul.mubr.msk.bf16.gmra.mxu0 %vm761_vm15, %v736_v44  ;;  %v757_v58 = vshll.u32 %v4511_v36, 16  ;;  %v4569_v23 = vld [vmem:[#allocation2 + $0x24] sm:$0xff]   ;;  %v956_v41 = vrot.slane %v4511_v36, 1  ;;  %v1380_v44 = vrot.slane %v3562_v37, 2  ;;  %v1222_v51 = vrot.slane %v1220_v45, 1 }
 0x120   : > { %3830 = vmatmul.mubr.msk.bf16.gmra.mxu1 %vm761_vm15, %v4467_v24  ;;  %3807 = vmatprep.mubr.msk.bf16.mxu0 %vm5675_vm11, %v4284_v29  ;;  %v752_v56 = vsel %vm5674_vm0, %v747_v53, %v751_v52  ;;  %v755_v62 = vor.u32 %v753_v61, %v751_v52  ;;  %v1107_v25 = vrot.slane %v4569_v23, 1  ;;  %v952_v24 = vrot.slane %v4487_v9, 1  ;;  %v4240_v28 = vld [vmem:[#allocation2 + $0x2c] ss:$0 sps:$4 sm:$0x11]  }
 0x121   : > { %3833 = vmatprep.mubr.msk.bf16.mxu1 %vm5675_vm11, %v4284_v29  ;;  %v759_v63 = vrot.slane %v757_v58, 1  ;;  %v1109_v30 = vrot.slane %v4240_v28, 1  ;;  %v957_v35 = vsel %vm5673_vm1, %v954_v31, %v956_v41  ;;  %v1225_v52 = vrot.slane %v1223_v46, 2  ;;  %v4242_v15 = vld [vmem:[#allocation2 + $0x2c] ss:$0 sps:$4 sm:$0x33]  }
 0x122   : > { %v1108_v26 = vsel %vm5673_vm1, %v1105_v2, %v1107_v25  ;;  %v953_v27 = vsel %vm5673_vm1, %v950_v20, %v952_v24  ;;  %v955_v32 = vsel %vm5673_vm1, %v952_v24, %v954_v31  ;;  %v1383_v36 = vrot.slane %v4537_v7, 2 }
 0x123   : > { %v760_v6 = vsel %vm5674_vm0, %v755_v62, %v759_v63  ;;  %v1110_v33 = vsel %vm5673_vm1, %v1107_v25, %v1109_v30  ;;  %v1226_v58 = vor.u32 %v1225_v52, %v1222_v51  ;;  %v1560_v59 = vsel %vm777_vm10, %v3568_v55, 0  ;;  %v4675_v52 = vld [vmem:[#allocation2 + $0x20] sm:$0xff]   ;;  %v3587_v55 = vld [vmem:[%s5664_s1 + $0x10] sm:$0x3] }
 0x124   : > { %v1384_v60 = vsel %vm5672_vm2, %v1381_v38, %v1383_v36  ;;  %v1385_v63 = vrot.slane %v4556_v19, 2  ;;  %v1246_v3 = vshrl.u32 %v4556_v19, 16  ;;  %v1249_v4 = vshll.u32 %v4556_v19, 16 }
 0x125   : > { %v1387_v10 = vrot.slane %v4569_v23, 2  ;;  %v1255_v40 = vshrl.u32 %v4569_v23, 16  ;;  %v1258_v14 = vshll.u32 %v4569_v23, 16  ;;  %v1389_v23 = vrot.slane %v4242_v15, 2 }
 0x126   : > { %v1267_v28 = vshll.u32 %v4242_v15, 16  ;;  %vm5677_vm9 = vcmask 1043456  }
 0x127   : > { %3808 = vmatmul.mubr.msk.bf16.gmra.mxu0 %vm761_vm15, %v744_v49  ;;  %v1230_v49 = vrot.slane %v1228_v42, 1  ;;  %v1257_v2 = vrot.slane %v1255_v40, 1  ;;  %v1260_v20 = vrot.slane %v1258_v14, 2  ;;  %v4663_v42 = vld [vmem:[#allocation2 + $0x18] sm:$0xff]   ;;  %v1538_v14 = vrot.slane %v4675_v52, 2 }
 0x128   : > { %3834 = vmatmul.mubr.msk.bf16.gmra.mxu1 %vm761_vm15, %v4487_v9  ;;  %3811 = vmatprep.mubr.msk.bf16.mxu0 %vm5675_vm11, %v4284_v29  ;;  %v1231_v9 = vshll.u32 %v4516_v57, 16  ;;  %v1240_v57 = vshll.u32 %v4537_v7, 16  ;;  %v1269_v41 = vrot.slane %v1267_v28, 2  ;;  %v1670_v46 = vshrl.u32 %v4663_v42, 16 }
 0x129   : > { %3837 = vmatprep.mubr.msk.bf16.mxu1 %vm5675_vm11, %v4284_v29  ;;  %v1261_v24 = vor.u32 %v1260_v20, %v1257_v2 }
 0x12a   : > { %v1233_v50 = vrot.slane %v1231_v9, 2  ;;  %v1242_v62 = vrot.slane %v1240_v57, 2  ;;  %v1682_v57 = vshll.u32 %v4675_v52, 16 }
 0x12c   : > { %v1234_v53 = vor.u32 %v1233_v50, %v1230_v49  ;;  %v1672_v50 = vrot.slane %v1670_v46, 2 }
 0x12e   : > { %v1235_v61 = vsel %vm5671_vm3, %v1226_v58, %v1234_v53 }
 0x12f   : > { %3812 = vmatmul.mubr.msk.bf16.gmra.mxu0 %vm761_vm15, %v752_v56  ;;  %v1237_v56 = vshrl.u32 %v4537_v7, 16  ;;  %v1248_v7 = vrot.slane %v1246_v3, 1  ;;  %v1536_v3 = vrot.slane %v4663_v42, 2 }
 0x130   : > { %3838 = vmatmul.mubr.msk.bf16.gmra.mxu1 %vm761_vm15, %v4499_v48  ;;  %3815 = vmatprep.mubr.msk.bf16.mxu0 %vm5675_vm11, %v4284_v29  ;;  %v1382_v48 = vsel %vm5672_vm2, %v1380_v44, %v1381_v38 }
 0x131   : > { %3865 = vmatprep.mubr.msk.bf16.mxu1 %vm5675_vm11, %v4284_v29  ;;  %v1239_v39 = vrot.slane %v1237_v56, 1  ;;  %v1679_v56 = vshrl.u32 %v4675_v52, 16  ;;  %v1539_v2 = vsel %vm5672_vm2, %v1536_v3, %v1538_v14 }
 0x133   : > { %v1243_v1 = vor.u32 %v1242_v62, %v1239_v39  ;;  %v1681_v39 = vrot.slane %v1679_v56, 2  ;;  %v1684_v62 = vrot.slane %v1682_v57, 3 }
 0x137   : > { %3816 = vmatmul.mubr.msk.bf16.gmra.mxu0 %vm761_vm15, %v760_v6  ;;  %v1244_v6 = vsel %vm5671_vm3, %v1234_v53, %v1243_v1 }
 0x138   : > { %3866 = vmatmul.mubr.msk.bf16.vlgmr.msra.gmra.mxu1 %vm761_vm15, %v1102_v5  ;;  %3843 = vmatprep.mubr.msk.bf16.mxu0 %vm5675_vm11, %v4284_v29  ;;  %v1386_v5 = vsel %vm5672_vm2, %v1383_v36, %v1385_v63 }
 0x139   : > { %3869 = vmatprep.mubr.msk.bf16.mxu1 %vm5675_vm11, %v4284_v29  ;;  %3908 = vmatpush3.bf16.msra.mxu1 %v1407_v8  ;;  %v1251_v8 = vrot.slane %v1249_v4, 2 }
 0x13a   : > { %3951 = vmatprep.subr.bf16.mxu1 %v4284_v29 }
 0x13b   : > { %v1252_v11 = vor.u32 %v1251_v8, %v1248_v7 }
 0x13d   : > { %v1253_v19 = vsel %vm5671_vm3, %v1243_v1, %v1252_v11  ;;  %v1262_v34 = vsel %vm5671_vm3, %v1252_v11, %v1261_v24  ;;  %v1685_v1 = vor.u32 %v1684_v62, %v1681_v39  ;;  %v4248_v11 = vld [vmem:[#allocation2 + $0x30] ss:$0 sps:$4 sm:$0x77]  }
 0x13f   : > { %3844 = vmatmul.mubr.msk.bf16.vlgmr.msra.gmra.mxu0 %vm761_vm15, %v949_v18  ;;  %v1388_v18 = vsel %vm5672_vm2, %v1385_v63, %v1387_v10  ;;  %v4692_v63 = vld [vmem:[#allocation2 + $0x28] sm:$0xff]  }
 0x140   : > { %3870 = vmatmul.mubr.msk.bf16.gmra.mxu1 %vm761_vm15, %v1104_v16  ;;  %3886 = vmatpush3.bf16.msra.mxu0 %v1288_v54  ;;  %v4646_v54 = vld [vmem:[#allocation2 + $0xc] sm:$0xf]  ;;  %v4648_v16 = vld [vmem:[#allocation2 + $0x10] sm:$0xff]   ;;  %v1688_v4 = vshrl.u32 %v4692_v63, 16 }
 0x141   : > { %3873 = vmatprep.mubr.msk.bf16.mxu1 %vm5675_vm11, %v4284_v29  ;;  %3847 = vmatprep.mubr.msk.bf16.mxu0 %vm5675_vm11, %v4284_v29  ;;  %v1661_v25 = vshrl.u32 %v4648_v16, 16  ;;  %v1534_v53 = vrot.slane %v4648_v16, 2 }
 0x142   : > { %3929 = vmatprep.subr.bf16.mxu0 %v4284_v29  ;;  %v1690_v8 = vrot.slane %v1688_v4, 2 }
 0x143   : > { %v1537_v7 = vsel %vm5672_vm2, %v1534_v53, %v1536_v3 }
 0x147   : > { %3848 = vmatmul.mubr.msk.bf16.gmra.mxu0 %vm761_vm15, %v951_v22 }
 0x148   : > { %3874 = vmatmul.mubr.msk.bf16.gmra.mxu1 %vm761_vm15, %v1106_v21  ;;  %3851 = vmatprep.mubr.msk.bf16.mxu0 %vm5675_vm11, %v4284_v29  ;;  %v1492_v21 = vld [vmem:[#allocation2 + $0x8] sm:$0xc] }
 0x149   : > { %3877 = vmatprep.mubr.msk.bf16.mxu1 %vm5675_vm11, %v4284_v29  ;;  %v3569_v22 = vcombine.low %v1492_v21, %v4646_v54 }
 0x14b   : > { %v1653_v30 = vshrl.u32 %v3569_v22, 16  ;;  %v1656_v31 = vshll.u32 %v3569_v22, 16  ;;  %v1533_v58 = vrot.slane %v3569_v22, 2 }
 0x14d   : > { %v1655_v9 = vrot.slane %v1653_v30, 2  ;;  %v1658_v43 = vrot.slane %v1656_v31, 3  ;;  %v1806_v30 = vld [vmem:[#allocation2 + $0x8] sm:$0x8] }
 0x14e   : > { %v3588_v31 = vcombine.low %v1806_v30, %v4646_v54  ;;  %v1818_v54 = vrot.slane %v4675_v52, 3 }
 0x14f   : > { %3852 = vmatmul.mubr.msk.bf16.gmra.mxu0 %vm761_vm15, %v953_v27  ;;  %v1264_v27 = vshrl.u32 %v4242_v15, 16  ;;  %v1697_v15 = vshrl.u32 %v4248_v11, 16 }
 0x150   : > { %3878 = vmatmul.mubr.msk.bf16.gmra.mxu1 %vm761_vm15, %v1108_v26  ;;  %3855 = vmatprep.mubr.msk.bf16.mxu0 %vm5675_vm11, %v4284_v29  ;;  %v1664_v26 = vshll.u32 %v4648_v16, 16 }
 0x151   : > { %3881 = vmatprep.mubr.msk.bf16.mxu1 %vm5675_vm11, %v4284_v29  ;;  %v1266_v38 = vrot.slane %v1264_v27, 1  ;;  %v1699_v20 = vrot.slane %v1697_v15, 2 }
 0x152   : > { %v1666_v37 = vrot.slane %v1664_v26, 3  ;;  %v4249_v26 = vld [vmem:[#allocation2 + $0x30] ss:$0 sps:$4 sm:$0x33]  }
 0x153   : > { %v1270_v45 = vor.u32 %v1269_v41, %v1266_v38  ;;  %v1542_v27 = vrot.slane %v4249_v26, 2  ;;  %v1820_v41 = vrot.slane %v4692_v63, 3 }
 0x155   : > { %v1271_v49 = vsel %vm5671_vm3, %v1261_v24, %v1270_v45 }
 0x157   : > { %3856 = vmatmul.mubr.msk.bf16.gmra.mxu0 %vm761_vm15, %v955_v32  ;;  %v1663_v32 = vrot.slane %v1661_v25, 2 }
 0x158   : > { %3882 = vmatmul.mubr.msk.bf16.gmra.mxu1 %vm761_vm15, %v1110_v33  ;;  %3859 = vmatprep.mubr.msk.bf16.mxu0 %vm5675_vm11, %v4284_v29  ;;  %v1390_v33 = vsel %vm5672_vm2, %v1387_v10, %v1389_v23  ;;  %v1540_v23 = vrot.slane %v4692_v63, 2 }
 0x159   : > { %3909 = vmatprep.mubr.msk.bf16.mxu1 %vm5675_vm11, %v4284_v29  ;;  %v1667_v44 = vor.u32 %v1666_v37, %v1663_v32  ;;  %v1813_v32 = vrot.slane %v3588_v31, 3  ;;  %v1816_v37 = vrot.slane %v4663_v42, 3 }
 0x15a   : > { %v1541_v24 = vsel %vm5672_vm2, %v1538_v14, %v1540_v23  ;;  %v1543_v28 = vsel %vm5672_vm2, %v1540_v23, %v1542_v27 }
 0x15f   : > { %3860 = vmatmul.mubr.msk.bf16.gmra.mxu0 %vm761_vm15, %v957_v35 }
 0x160   : > { %3910 = vmatmul.mubr.msk.bf16.vlgmr.msra.gmra.mxu1 %vm761_vm15, %v1382_v48  ;;  %3887 = vmatprep.mubr.msk.bf16.mxu0 %vm5675_vm11, %v4284_v29  ;;  %v1659_v48 = vor.u32 %v1658_v43, %v1655_v9 }
 0x161   : > { %3913 = vmatprep.mubr.msk.bf16.mxu1 %vm5675_vm11, %v4284_v29  ;;  %3952 = vmatpush3.bf16.msra.mxu1 %v1721_v47  ;;  %v1673_v47 = vshll.u32 %v4663_v42, 16  ;;  %v1821_v42 = vsel %vm5669_vm5, %v1818_v54, %v1820_v41 }
 0x162   : > { %3995 = vmatprep.subr.bf16.mxu1 %v4284_v29  ;;  %v1668_v35 = vsel %vm5670_vm4, %v1659_v48, %v1667_v44 }
 0x163   : > { %v1675_v51 = vrot.slane %v1673_v47, 3 }
 0x165   : > { %v1676_v36 = vor.u32 %v1675_v51, %v1672_v50 }
 0x167   : > { %3888 = vmatmul.mubr.msk.bf16.vlgmr.msra.gmra.mxu0 %vm761_vm15, %v1235_v61  ;;  %v1535_v61 = vsel %vm5672_vm2, %v1533_v58, %v1534_v53 }
 0x168   : > { %3914 = vmatmul.mubr.msk.bf16.gmra.mxu1 %vm761_vm15, %v1384_v60  ;;  %3930 = vmatpush3.bf16.msra.mxu0 %v1560_v59  ;;  %v1840_v59 = vsel %vm777_vm10, %v3587_v55, 0  ;;  %v1677_v60 = vsel %vm5670_vm4, %v1667_v44, %v1676_v36  ;;  %v1822_v44 = vrot.slane %v4248_v11, 3 }
 0x169   : > { %3917 = vmatprep.mubr.msk.bf16.mxu1 %vm5675_vm11, %v4284_v29  ;;  %3891 = vmatprep.mubr.msk.bf16.mxu0 %vm5675_vm11, %v4284_v29 }
 0x16a   : > { %3973 = vmatprep.subr.bf16.mxu0 %v4284_v29  ;;  %v1823_v47 = vsel %vm5669_vm5, %v1820_v41, %v1822_v44 }
 0x16f   : > { %3892 = vmatmul.mubr.msk.bf16.gmra.mxu0 %vm761_vm15, %v1244_v6  ;;  %v1686_v6 = vsel %vm5670_vm4, %v1676_v36, %v1685_v1 }
 0x170   : > { %3918 = vmatmul.mubr.msk.bf16.gmra.mxu1 %vm761_vm15, %v1386_v5  ;;  %3895 = vmatprep.mubr.msk.bf16.mxu0 %vm5675_vm11, %v4284_v29  ;;  %v1691_v5 = vshll.u32 %v4692_v63, 16 }
 0x171   : > { %3921 = vmatprep.mubr.msk.bf16.mxu1 %vm5675_vm11, %v4284_v29 }
 0x172   : > { %v1693_v10 = vrot.slane %v1691_v5, 3 }
 0x174   : > { %v1694_v40 = vor.u32 %v1693_v10, %v1690_v8 }
 0x177   : > { %3896 = vmatmul.mubr.msk.bf16.gmra.mxu0 %vm761_vm15, %v1253_v19  ;;  %v1695_v19 = vsel %vm5670_vm4, %v1685_v1, %v1694_v40 }
 0x178   : > { %3922 = vmatmul.mubr.msk.bf16.gmra.mxu1 %vm761_vm15, %v1388_v18  ;;  %3899 = vmatprep.mubr.msk.bf16.mxu0 %vm5675_vm11, %v4284_v29  ;;  %v1700_v18 = vshll.u32 %v4248_v11, 16 }
 0x179   : > { %3925 = vmatprep.mubr.msk.bf16.mxu1 %vm5675_vm11, %v4284_v29 }
 0x17a   : > { %v1702_v21 = vrot.slane %v1700_v18, 3 }
 0x17c   : > { %v1703_v22 = vor.u32 %v1702_v21, %v1699_v20 }
 0x17e   : > { %v1704_v25 = vsel %vm5670_vm4, %v1694_v40, %v1703_v22 }
 0x17f   : > { %3900 = vmatmul.mubr.msk.bf16.gmra.mxu0 %vm761_vm15, %v1262_v34 }
 0x180   : > { %3926 = vmatmul.mubr.msk.bf16.gmra.mxu1 %vm761_vm15, %v1390_v33  ;;  %3903 = vmatprep.mubr.msk.bf16.mxu0 %vm5675_vm11, %v4284_v29  ;;  %v1814_v33 = vrot.slane %v4648_v16, 3  ;;  %v1819_v16 = vsel %vm5669_vm5, %v1816_v37, %v1818_v54 }
 0x181   : > { %3953 = vmatprep.mubr.msk.bf16.mxu1 %vm5675_vm11, %v4284_v29 }
 0x182   : > { %v1815_v34 = vsel %vm5669_vm5, %v1813_v32, %v1814_v33  ;;  %v1817_v38 = vsel %vm5669_vm5, %v1814_v33, %v1816_v37 }
 0x187   : > { %3904 = vmatmul.mubr.msk.bf16.gmra.mxu0 %vm761_vm15, %v1271_v49 }
 0x188   : > { %3954 = vmatmul.mubr.msk.bf16.vlgmr.msra.gmra.mxu1 %vm761_vm15, %v1668_v35  ;;  %3931 = vmatprep.mubr.msk.bf16.mxu0 %vm5675_vm11, %v4284_v29 }
 0x189   : > { %3957 = vmatprep.mubr.msk.bf16.mxu1 %vm5675_vm11, %v4284_v29 }
 0x18f   : > { %3932 = vmatmul.mubr.msk.bf16.vlgmr.msra.gmra.mxu0 %vm761_vm15, %v1535_v61 }
 0x190   : > { %3958 = vmatmul.mubr.msk.bf16.gmra.mxu1 %vm761_vm15, %v1677_v60  ;;  %3974 = vmatpush3.bf16.msra.mxu0 %v1840_v59 }
 0x191   : > { %3961 = vmatprep.mubr.msk.bf16.mxu1 %vm5675_vm11, %v4284_v29  ;;  %3935 = vmatprep.mubr.msk.bf16.mxu0 %vm5675_vm11, %v4284_v29 }
 0x192   : > { %4017 = vmatprep.subr.bf16.mxu0 %v4284_v29 }
 0x197   : > { %3936 = vmatmul.mubr.msk.bf16.gmra.mxu0 %vm761_vm15, %v1537_v7 }
 0x198   : > { %3962 = vmatmul.mubr.msk.bf16.gmra.mxu1 %vm761_vm15, %v1686_v6  ;;  %3939 = vmatprep.mubr.msk.bf16.mxu0 %vm5675_vm11, %v4284_v29 }
 0x199   : > { %3965 = vmatprep.mubr.msk.bf16.mxu1 %vm5675_vm11, %v4284_v29 }
 0x19f   : > { %3940 = vmatmul.mubr.msk.bf16.gmra.mxu0 %vm761_vm15, %v1539_v2 }
 0x1a0   : > { %3966 = vmatmul.mubr.msk.bf16.gmra.mxu1 %vm761_vm15, %v1695_v19  ;;  %3943 = vmatprep.mubr.msk.bf16.mxu0 %vm5675_vm11, %v4284_v29 }
 0x1a1   : > { %3969 = vmatprep.mubr.msk.bf16.mxu1 %vm5675_vm11, %v4284_v29 }
 0x1a7   : > { %3944 = vmatmul.mubr.msk.bf16.gmra.mxu0 %vm761_vm15, %v1541_v24 }
 0x1a8   : > { %3970 = vmatmul.mubr.msk.bf16.gmra.mxu1 %vm761_vm15, %v1704_v25  ;;  %3947 = vmatprep.mubr.msk.bf16.mxu0 %vm5675_vm11, %v4284_v29 }
 0x1a9   : > { %3997 = vmatprep.mubr.msk.bf16.mxu1 %vm5675_vm11, %v4284_v29 }
 0x1af   : > { %3948 = vmatmul.mubr.msk.bf16.gmra.mxu0 %vm761_vm15, %v1543_v28 }
 0x1b0   : > { %3975 = vmatprep.mubr.msk.bf16.mxu0 %vm5675_vm11, %v4284_v29 }
 0x1b7   : > { %3976 = vmatmul.mubr.msk.bf16.vlgmr.msra.gmra.mxu0 %vm761_vm15, %v1815_v34 }
 0x1b8   : > { %3979 = vmatprep.mubr.msk.bf16.mxu0 %vm5675_vm11, %v4284_v29 }
 0x1bf   : > { %3980 = vmatmul.mubr.msk.bf16.gmra.mxu0 %vm761_vm15, %v1817_v38 }
 0x1c0   : > { %3983 = vmatprep.mubr.msk.bf16.mxu0 %vm5675_vm11, %v4284_v29 }
 0x1c7   : > { %3984 = vmatmul.mubr.msk.bf16.gmra.mxu0 %vm761_vm15, %v1819_v16 }
 0x1c8   : > { %3987 = vmatprep.mubr.msk.bf16.mxu0 %vm5675_vm11, %v4284_v29 }
 0x1cf   : > { %3988 = vmatmul.mubr.msk.bf16.gmra.mxu0 %vm761_vm15, %v1821_v42 }
 0x1d0   : > { %v901_v9 = vpop.f32.mrf.mxu1  ;;  %3991 = vmatprep.mubr.msk.bf16.mxu0 %vm5675_vm11, %v4284_v29 }
 0x1d2   : > { %v3823_v43 = vpop.f32.mrf.mxu1 }
 0x1d4   : > { %v904_v45 = vpop.f32.mrf.mxu1 }
 0x1d6   : > { %v3824_v46 = vpop.f32.mrf.mxu1 }
 0x1d7   : > { %v815_v35 = vpop.f32.mrf.mxu0  ;;  %3992 = vmatmul.mubr.msk.bf16.gmra.mxu0 %vm761_vm15, %v1823_v47 }
 0x1d8   : > { %v909_v48 = vpop.f32.mrf.mxu1  ;;  %v902_v49 = vadd.f32 %v901_v9, %v815_v35  ;;  %4019 = vmatprep.mubr.msk.bf16.mxu0 %vm5675_vm11, %v4284_v29 }
 0x1d9   : > { %v3801_v51 = vpop.f32.mrf.mxu0 }
 0x1da   : > { %v3827_v50 = vpop.f32.mrf.mxu1 }
 0x1db   : > { %v818_v36 = vpop.f32.mrf.mxu0 }
 0x1dc   : > { %v912_v52 = vpop.f32.mrf.mxu1  ;;  %v905_v53 = vadd.f32 %v904_v45, %v818_v36 }
 0x1dd   : > { %v3802_v56 = vpop.f32.mrf.mxu0 }
 0x1de   : > { %v3828_v55 = vpop.f32.mrf.mxu1 }
 0x1df   : > { %v823_v58 = vpop.f32.mrf.mxu0 }
 0x1e0   : > { %v917_v57 = vpop.f32.mrf.mxu1  ;;  %v910_v59 = vadd.f32 %v909_v48, %v823_v58 }
 0x1e1   : > { %v3805_v61 = vpop.f32.mrf.mxu0 }
 0x1e2   : > { %v3831_v60 = vpop.f32.mrf.mxu1 }
 0x1e3   : > { %v826_v62 = vpop.f32.mrf.mxu0 }
 0x1e4   : > { %v920_v39 = vpop.f32.mrf.mxu1  ;;  %v913_v63 = vadd.f32 %v912_v52, %v826_v62 }
 0x1e5   : > { %v3806_v3 = vpop.f32.mrf.mxu0 }
 0x1e6   : > { %v3832_v1 = vpop.f32.mrf.mxu1 }
 0x1e7   : > { %v831_v5 = vpop.f32.mrf.mxu0 }
 0x1e8   : > { %v925_v4 = vpop.f32.mrf.mxu1  ;;  %v918_v6 = vadd.f32 %v917_v57, %v831_v5 }
 0x1e9   : > { %v3809_v8 = vpop.f32.mrf.mxu0 }
 0x1ea   : > { %v3835_v7 = vpop.f32.mrf.mxu1 }
 0x1eb   : > { %v834_v11 = vpop.f32.mrf.mxu0 }
 0x1ec   : > { %v928_v10 = vpop.f32.mrf.mxu1  ;;  %v4759_v40 = vadd.f32 %v920_v39, %v834_v11 }
 0x1ed   : > { %v3810_v15 = vpop.f32.mrf.mxu0 }
 0x1ee   : > { %v3836_v14 = vpop.f32.mrf.mxu1 }
 0x1ef   : > { %v839_v19 = vpop.f32.mrf.mxu0 }
 0x1f0   : > { %v933_v18 = vpop.f32.mrf.mxu1  ;;  %v4761_v2 = vadd.f32 %v925_v4, %v839_v19  ;;  %v3610_v4 = vld [vmem:[%s5666_s3 + $0x4] sm:$0xf] }
 0x1f1   : > { %v3813_v21 = vpop.f32.mrf.mxu0  ;;  %v2278_v7 = vsel %vm5677_vm9, %v3610_v4, 0 }
 0x1f2   : > { %v3839_v20 = vpop.f32.mrf.mxu1  ;;  %3996 = vmatpush3.bf16.msra.mxu1 %v2278_v7 }
 0x1f3   : > { %v842_v23 = vpop.f32.mrf.mxu0  ;;  %4039 = vmatprep.subr.bf16.mxu1 %v4284_v29 }
 0x1f4   : > { %v936_v22 = vpop.f32.mrf.mxu1  ;;  %v4763_v25 = vadd.f32 %v928_v10, %v842_v23 }
 0x1f5   : > { %v3814_v26 = vpop.f32.mrf.mxu0 }
 0x1f6   : > { %v3840_v24 = vpop.f32.mrf.mxu1 }
 0x1f7   : > { %v847_v28 = vpop.f32.mrf.mxu0 }
 0x1f8   : > { %v1163_v27 = vpop.f32.mrf.mxu1  ;;  %v4765_v30 = vadd.f32 %v933_v18, %v847_v28 }
 0x1f9   : > { %v3817_v33 = vpop.f32.mrf.mxu0 }
 0x1fa   : > { %v3867_v31 = vpop.f32.mrf.mxu1 }
 0x1fb   : > { %v850_v34 = vpop.f32.mrf.mxu0 }
 0x1fc   : > { %v1166_v32 = vpop.f32.mrf.mxu1  ;;  %v4767_v37 = vadd.f32 %v936_v22, %v850_v34 }
 0x1fd   : > { %v3818_v54 = vpop.f32.mrf.mxu0 }
 0x1fe   : > { %v3868_v38 = vpop.f32.mrf.mxu1 }
 0x1ff   : > { %v1010_v41 = vpop.f32.mrf.mxu0 }
 0x200   : > { %v1171_v16 = vpop.f32.mrf.mxu1  ;;  %v1049_v42 = vadd.f32 %v1010_v41, %v902_v49 }
 0x201   : > { %v3845_v43 = vpop.f32.mrf.mxu0 }
 0x202   : > { %v3871_v9 = vpop.f32.mrf.mxu1  ;;  %v1202_v44 = vadd.f32 %v1163_v27, %v1049_v42 }
 0x203   : > { %v1013_v46 = vpop.f32.mrf.mxu0 }
 0x204   : > { %v1174_v45 = vpop.f32.mrf.mxu1  ;;  %v1050_v47 = vadd.f32 %v1013_v46, %v905_v53 }
 0x205   : > { %v3846_v35 = vpop.f32.mrf.mxu0 }
 0x206   : > { %v3872_v48 = vpop.f32.mrf.mxu1  ;;  %v4773_v50 = vadd.f32 %v1166_v32, %v1050_v47 }
 0x207   : > { %v1018_v52 = vpop.f32.mrf.mxu0  ;;  %v2184_v48 = vld [vmem:[%s5666_s3] sm:$0xf] }
 0x208   : > { %v1179_v51 = vpop.f32.mrf.mxu1  ;;  %v1051_v36 = vadd.f32 %v1018_v52, %v910_v59 }
 0x209   : > { %v3849_v56 = vpop.f32.mrf.mxu0 }
 0x20a   : > { %v3875_v55 = vpop.f32.mrf.mxu1  ;;  %v4775_v57 = vadd.f32 %v1171_v16, %v1051_v36 }
 0x20b   : > { %v1021_v60 = vpop.f32.mrf.mxu0 }
 0x20c   : > { %v1182_v58 = vpop.f32.mrf.mxu1  ;;  %v1052_v49 = vadd.f32 %v1021_v60, %v913_v63 }
 0x20d   : > { %v3850_v39 = vpop.f32.mrf.mxu0 }
 0x20e   : > { %v3876_v61 = vpop.f32.mrf.mxu1  ;;  %v4777_v62 = vadd.f32 %v1174_v45, %v1052_v49 }
 0x20f   : > { %v1026_v53 = vpop.f32.mrf.mxu0 }
 0x210   : > { %v1187_v1 = vpop.f32.mrf.mxu1  ;;  %v1053_v3 = vadd.f32 %v1026_v53, %v918_v6 }
 0x211   : > { %v3853_v5 = vpop.f32.mrf.mxu0 }
 0x212   : > { %v3879_v59 = vpop.f32.mrf.mxu1  ;;  %v4783_v8 = vadd.f32 %v1179_v51, %v1053_v3  ;;  %v2364_v51 = vsel %vm5677_vm9, %v2184_v48, 0 }
 0x213   : > { %v1029_v10 = vpop.f32.mrf.mxu0  ;;  %4018 = vmatpush3.bf16.msra.mxu0 %v2364_v51 }
 0x214   : > { %v1190_v63 = vpop.f32.mrf.mxu1  ;;  %v1054_v11 = vadd.f32 %v1029_v10, %v4759_v40  ;;  %4061 = vmatprep.subr.bf16.mxu0 %v4284_v29 }
 0x215   : > { %v3854_v6 = vpop.f32.mrf.mxu0 }
 0x216   : > { %v3880_v14 = vpop.f32.mrf.mxu1  ;;  %v1207_v15 = vadd.f32 %v1182_v58, %v1054_v11 }
 0x217   : > { %v1034_v19 = vpop.f32.mrf.mxu0 }
 0x218   : > { %v1195_v18 = vpop.f32.mrf.mxu1  ;;  %v1055_v20 = vadd.f32 %v1034_v19, %v4761_v2 }
 0x219   : > { %v3857_v22 = vpop.f32.mrf.mxu0 }
 0x21a   : > { %v3883_v21 = vpop.f32.mrf.mxu1  ;;  %v1208_v23 = vadd.f32 %v1187_v1, %v1055_v20 }
 0x21b   : > { %v1037_v26 = vpop.f32.mrf.mxu0 }
 0x21c   : > { %v1198_v24 = vpop.f32.mrf.mxu1  ;;  %v1056_v27 = vadd.f32 %v1037_v26, %v4763_v25 }
 0x21d   : > { %v3858_v31 = vpop.f32.mrf.mxu0 }
 0x21e   : > { %v3884_v28 = vpop.f32.mrf.mxu1  ;;  %v1209_v33 = vadd.f32 %v1190_v63, %v1056_v27 }
 0x21f   : > { %v1042_v34 = vpop.f32.mrf.mxu0 }
 0x220   : > { %v1443_v32 = vpop.f32.mrf.mxu1  ;;  %v1057_v40 = vadd.f32 %v1042_v34, %v4765_v30 }
 0x221   : > { %v3861_v54 = vpop.f32.mrf.mxu0 }
 0x222   : > { %v3911_v38 = vpop.f32.mrf.mxu1  ;;  %v4790_v16 = vadd.f32 %v1195_v18, %v1057_v40  ;;  %v493_v40 = vlaneseq }
 0x223   : > { %v1045_v2 = vpop.f32.mrf.mxu0 }
 0x224   : > { %v1446_v41 = vpop.f32.mrf.mxu1  ;;  %v1058_v42 = vadd.f32 %v1045_v2, %v4767_v37 }
 0x225   : > { %v3862_v43 = vpop.f32.mrf.mxu0 }
 0x226   : > { %v3912_v9 = vpop.f32.mrf.mxu1  ;;  %v4793_v45 = vadd.f32 %v1198_v24, %v1058_v42 }
 0x227   : > { %v1324_v46 = vpop.f32.mrf.mxu0  ;;  %v4822_v9 = vshrl.u32 %v493_v40, 7 }
 0x228   : > { %v1451_v25 = vpop.f32.mrf.mxu1  ;;  %v1363_v47 = vadd.f32 %v1324_v46, %v1202_v44 }
 0x229   : > { %v3889_v35 = vpop.f32.mrf.mxu0 }
 0x22a   : > { %v3915_v30 = vpop.f32.mrf.mxu1  ;;  %v4799_v52 = vadd.f32 %v1443_v32, %v1363_v47 }
 0x22b   : > { %v1327_v37 = vpop.f32.mrf.mxu0 }
 0x22c   : > { %v1454_v36 = vpop.f32.mrf.mxu1  ;;  %v1364_v55 = vadd.f32 %v1327_v37, %v4773_v50 }
 0x22d   : > { %v3890_v58 = vpop.f32.mrf.mxu0 }
 0x22e   : > { %v3916_v56 = vpop.f32.mrf.mxu1  ;;  %v4803_v44 = vadd.f32 %v1446_v41, %v1364_v55 }
 0x22f   : > { %v1332_v49 = vpop.f32.mrf.mxu0 }
 0x230   : > { %v1459_v60 = vpop.f32.mrf.mxu1  ;;  %v1365_v61 = vadd.f32 %v1332_v49, %v4775_v57 }
 0x231   : > { %v3893_v1 = vpop.f32.mrf.mxu0 }
 0x232   : > { %v3919_v39 = vpop.f32.mrf.mxu1  ;;  %v4806_v53 = vadd.f32 %v1451_v25, %v1365_v61  ;;  %v496_v1 = vadd.s32 16, %v4822_v9 }
 0x233   : > { %v1335_v4 = vpop.f32.mrf.mxu0 }
 0x234   : > { %v1462_v3 = vpop.f32.mrf.mxu1  ;;  %v1366_v59 = vadd.f32 %v1335_v4, %v4777_v62 }
 0x235   : > { %v3894_v7 = vpop.f32.mrf.mxu0 }
 0x236   : > { %v3920_v5 = vpop.f32.mrf.mxu1  ;;  %v4809_v63 = vadd.f32 %v1454_v36, %v1366_v59 }
 0x237   : > { %v1340_v10 = vpop.f32.mrf.mxu0 }
 0x238   : > { %v1467_v50 = vpop.f32.mrf.mxu1  ;;  %v1367_v11 = vadd.f32 %v1340_v10, %v4783_v8 }
 0x239   : > { %v3897_v6 = vpop.f32.mrf.mxu0 }
 0x23a   : > { %v3923_v14 = vpop.f32.mrf.mxu1  ;;  %v4812_v18 = vadd.f32 %v1459_v60, %v1367_v11  ;;  %v498_v11 = vadd.s32 32, %v4822_v9 }
 0x23b   : > { %v1343_v19 = vpop.f32.mrf.mxu0  ;;  %v4857_v14 = vmul.u32.u64.low 3435973837, %v496_v1  ;;  %v4858_v6 = vmul.u32.u64.high 3435973837, %v496_v1, %v4857_v14 }
 0x23c   : > { %v1470_v57 = vpop.f32.mrf.mxu1  ;;  %v1368_v20 = vadd.f32 %v1343_v19, %v1207_v15 }
 0x23d   : > { %v3898_v22 = vpop.f32.mrf.mxu0 }
 0x23e   : > { %v3924_v21 = vpop.f32.mrf.mxu1  ;;  %v4814_v24 = vadd.f32 %v1462_v3, %v1368_v20  ;;  %v497_v3 = vadd.s32 24, %v4822_v9  ;;  %v4864_v22 = vadd.s32 40, %v4822_v9 }
 0x23f   : > { %v1348_v26 = vpop.f32.mrf.mxu0 }
 0x240   : > { %v1475_v62 = vpop.f32.mrf.mxu1  ;;  %v1369_v27 = vadd.f32 %v1348_v26, %v1208_v23 }
 0x241   : > { %v3901_v31 = vpop.f32.mrf.mxu0 }
 0x242   : > { %v3927_v28 = vpop.f32.mrf.mxu1  ;;  %v4816_v32 = vadd.f32 %v1467_v50, %v1369_v27 }
 0x243   : > { %v1351_v8 = vpop.f32.mrf.mxu0  ;;  %v4870_v28 = vmul.u32.u64.low 3435973837, %v498_v11  ;;  %v4871_v31 = vmul.u32.u64.high 3435973837, %v498_v11, %v4870_v28 }
 0x244   : > { %v1478_v34 = vpop.f32.mrf.mxu1  ;;  %v1370_v38 = vadd.f32 %v1351_v8, %v1209_v33  ;;  %v495_v33 = vadd.s32 8, %v4822_v9 }
 0x245   : > { %v3902_v41 = vpop.f32.mrf.mxu0 }
 0x246   : > { %v3928_v54 = vpop.f32.mrf.mxu1  ;;  %v4818_v2 = vadd.f32 %v1470_v57, %v1370_v38  ;;  %v4841_v58 = vmul.u32.u64.low 3435973837, %v495_v33  ;;  %v4842_v60 = vmul.u32.u64.high 3435973837, %v495_v33, %v4841_v58 }
 0x247   : > { %v1356_v42 = vpop.f32.mrf.mxu0  ;;  %v4860_v57 = vmul.u32.u64.low 3435973837, %v497_v3  ;;  %v4861_v19 = vmul.u32.u64.high 3435973837, %v497_v3, %v4860_v57  ;;  %v4874_v38 = vmul.u32.u64.low 3435973837, %v4864_v22  ;;  %v4875_v54 = vmul.u32.u64.high 3435973837, %v4864_v22, %v4874_v38 }
 0x248   : > { %v4820_v15 = vpop.f32.mrf.mxu1  ;;  %v1371_v43 = vadd.f32 %v1356_v42, %v4790_v16  ;;  %v4838_v16 = vmul.u32.u64.low 3435973837, %v4822_v9  ;;  %v4839_v56 = vmul.u32.u64.high 3435973837, %v4822_v9, %v4838_v16  ;;  %v521_v10 = vshrl.u32 %v4842_v60, 3 }
 0x249   : > { %v3905_v25 = vpop.f32.mrf.mxu0  ;;  %v554_v58 = vshrl.u32 %v4871_v31, 3  ;;  %v4893_v60 = vadd.s32 56, %v4822_v9  ;;  %v4914_v31 = vadd.s32 64, %v4822_v9 }
 0x24a   : > { %v3955_v23 = vpop.f32.mrf.mxu1  ;;  %v4825_v46 = vadd.f32 %v1475_v62, %v1371_v43  ;;  %v510_v50 = vshrl.u32 %v4839_v56, 3  ;;  %v532_v25 = vshrl.u32 %v4858_v6, 3 }
 0x24b   : > { %v1359_v48 = vpop.f32.mrf.mxu0 }
 0x24c   : > { %v4827_v47 = vpop.f32.mrf.mxu1  ;;  %v1372_v30 = vadd.f32 %v1359_v48, %v4793_v45  ;;  %v511_v27 = vmul.u32 10, %v510_v50  ;;  %v543_v48 = vshrl.u32 %v4861_v19, 3 }
 0x24d   : > { %v3906_v51 = vpop.f32.mrf.mxu0 }
 0x24e   : > { %v3956_v35 = vpop.f32.mrf.mxu1  ;;  %v4831_v36 = vadd.f32 %v1478_v34, %v1372_v30  ;;  %v522_v34 = vmul.u32 10, %v521_v10  ;;  %v512_v43 = vsub.s32 %v4822_v9, %v511_v27  ;;  %v4885_v51 = vadd.s32 48, %v4822_v9 }
 0x24f   : > { %v4835_v55 = vpop.f32.mrf.mxu0  ;;  %v4910_v27 = vmul.u32.u64.low 3435973837, %v4893_v60  ;;  %v4911_v28 = vmul.u32.u64.high 3435973837, %v4893_v60, %v4910_v27 }
 0x250   : > { %v4833_v37 = vpop.f32.mrf.mxu1  ;;  %v523_v23 = vsub.s32 %v495_v33, %v522_v34  ;;  %vm614_vm10 = vcmp.ne.s32.totalorder %v512_v43, 0  ;;  %vm624_vm13 = vcmp.lt.s32.totalorder %v512_v43, 0  ;;  %v533_v33 = vmul.u32 10, %v532_v25 }
 0x251   : > { %v3933_v61 = vpop.f32.mrf.mxu0  ;;  %v4897_v50 = vmul.u32.u64.low 3435973837, %v4885_v51  ;;  %v4898_v10 = vmul.u32.u64.high 3435973837, %v4885_v51, %v4897_v50  ;;  %v644_v14 = vadd.s32 10, %v512_v43  ;;  %vm4905_vm5 = vmand %vm624_vm13, %vm614_vm10 }
 0x252   : > { %v3959_v49 = vpop.f32.mrf.mxu1  ;;  %vm615_vm12 = vcmp.ne.s32.totalorder %v523_v23, 0  ;;  %vm625_vm15 = vcmp.lt.s32.totalorder %v523_v23, 0  ;;  %v645_v6 = vadd.s32 10, %v523_v23 }
 0x253   : > { %v4846_v45 = vpop.f32.mrf.mxu0  ;;  %v544_v49 = vmul.u32 10, %v543_v48  ;;  %vm4917_vm4 = vmand %vm625_vm15, %vm615_vm12  ;;  %v4922_v48 = vadd.s32 72, %v4822_v9 }
 0x254   : > { %v4844_v39 = vpop.f32.mrf.mxu1 }
 0x255   : > { %v3934_v59 = vpop.f32.mrf.mxu0 }
 0x256   : > { %v3960_v4 = vpop.f32.mrf.mxu1  ;;  %v565_v59 = vshrl.u32 %v4875_v54, 3 }
 0x257   : > { %v4852_v7 = vpop.f32.mrf.mxu0 }
 0x258   : > { %v4850_v5 = vpop.f32.mrf.mxu1  ;;  %v566_v25 = vmul.u32 10, %v565_v59  ;;  %v4939_v59 = vmul.u32.u64.low 3435973837, %v4922_v48  ;;  %v4940_v50 = vmul.u32.u64.high 3435973837, %v4922_v48, %v4939_v59 }
 0x259   : > { %v3937_v21 = vpop.f32.mrf.mxu0 }
 0x25a   : > { %v3963_v20 = vpop.f32.mrf.mxu1  ;;  %v555_v21 = vmul.u32 10, %v554_v58 }
 0x25b   : > { %v4868_v26 = vpop.f32.mrf.mxu0 }
 0x25c   : > { %v4866_v62 = vpop.f32.mrf.mxu1 }
 0x25d   : > { %v3938_v40 = vpop.f32.mrf.mxu0 }
 0x25e   : > { %v3964_v8 = vpop.f32.mrf.mxu1  ;;  %v545_v40 = vsub.s32 %v497_v3, %v544_v49  ;;  %v576_v49 = vshrl.u32 %v4898_v10, 3 }
 0x25f   : > { %v4879_v42 = vpop.f32.mrf.mxu0  ;;  %v534_v8 = vsub.s32 %v496_v1, %v533_v33  ;;  %v4933_v1 = vmul.u32.u64.low 3435973837, %v4914_v31  ;;  %v4934_v3 = vmul.u32.u64.high 3435973837, %v4914_v31, %v4933_v1 }
 0x260   : > { %v4877_v41 = vpop.f32.mrf.mxu1  ;;  %vm617_vm12 = vcmp.ne.s32.totalorder %v545_v40, 0  ;;  %vm627_vm15 = vcmp.lt.s32.totalorder %v545_v40, 0  ;;  %v647_v20 = vadd.s32 10, %v545_v40 }
 0x261   : > { %v3941_v35 = vpop.f32.mrf.mxu0  ;;  %vm616_vm10 = vcmp.ne.s32.totalorder %v534_v8, 0  ;;  %vm626_vm13 = vcmp.lt.s32.totalorder %v534_v8, 0  ;;  %vm4959_vm0 = vmand %vm627_vm15, %vm617_vm12 }
 0x262   : > { %v3967_v30 = vpop.f32.mrf.mxu1 }
 0x263   : > { %v4889_v56 = vpop.f32.mrf.mxu0  ;;  %v654_v30 = vsel %vm4905_vm5, %v644_v14, %v512_v43  ;;  %v567_v43 = vsub.s32 %v4864_v22, %v566_v25  ;;  %vm4948_vm5 = vmand %vm626_vm13, %vm616_vm10  ;;  %v587_v22 = vshrl.u32 %v4911_v28, 3  ;;  %v1635_v28 = vadd.f32 %v4835_v55, %v4799_v52 }
 0x264   : > { %v4887_v16 = vpop.f32.mrf.mxu1  ;;  %v598_v52 = vshrl.u32 %v4934_v3, 3  ;;  %v1636_v3 = vadd.f32 %v4846_v45, %v4803_v44 }
 0x265   : > { %v3942_v4 = vpop.f32.mrf.mxu0  ;;  %vm619_vm13 = vcmp.ne.s32.totalorder %v567_v43, 0  ;;  %vm629_vm11 = vcmp.lt.s32.totalorder %v567_v43, 0  ;;  %v649_v1 = vadd.s32 10, %v567_v43 }
 0x266   : > { %v3968_v61 = vpop.f32.mrf.mxu1  ;;  %v556_v4 = vsub.s32 %v498_v11, %v555_v21  ;;  %vm4983_vm9 = vmand %vm629_vm11, %vm619_vm13  ;;  %v1797_v21 = vadd.f32 %v4827_v47, %v1636_v3 }
 0x267   : > { %v4902_v19 = vpop.f32.mrf.mxu0  ;;  %v655_v61 = vsel %vm4917_vm4, %v645_v6, %v523_v23  ;;  %vm4942_vm4 = vcmp.lt.s32.totalorder %v654_v30, 8  ;;  %v646_v23 = vadd.s32 10, %v534_v8 }
 0x268   : > { %v4900_v57 = vpop.f32.mrf.mxu1  ;;  %vm618_vm3 = vcmp.ne.s32.totalorder %v556_v4, 0  ;;  %vm628_vm2 = vcmp.lt.s32.totalorder %v556_v4, 0  ;;  %vm4953_vm1 = vcmp.lt.s32.totalorder %v655_v61, 8  ;;  %vm1977_vm10 = vmpackc.low %vm4942_vm4, %vm4942_vm4  ;;  %v648_v34 = vadd.s32 10, %v556_v4 }
 0x269   : > { %v3945_v54 = vpop.f32.mrf.mxu0  ;;  %vm4971_vm12 = vmand %vm628_vm2, %vm618_vm3  ;;  %v657_v61 = vsel %vm4959_vm0, %v647_v20, %v545_v40  ;;  %v609_v40 = vshrl.u32 %v4940_v50, 3  ;;  %v1987_v6 = vsel %vm1977_vm10, 65537, %v4282_v12 }
 0x26a   : > { %v3971_v38 = vpop.f32.mrf.mxu1  ;;  %v656_v54 = vsel %vm4948_vm5, %v646_v23, %v534_v8  ;;  %vm1978_vm15 = vmpackc.low %vm4953_vm1, %vm4953_vm1  ;;  %v1796_v23 = vadd.f32 %v4820_v15, %v1635_v28  ;;  %vm5006_vm11 = vcmp.lt.s32.totalorder %v657_v61, 8  ;;  %v659_v15 = vsel %vm4983_vm9, %v649_v1, %v567_v43 }
 0x26b   : > { %v4928_v58 = vpop.f32.mrf.mxu0  ;;  %v577_v38 = vmul.u32 10, %v576_v49  ;;  %vm4987_vm2 = vcmp.lt.s32.totalorder %v656_v54, 8  ;;  %v658_v49 = vsel %vm4971_vm12, %v648_v34, %v556_v4  ;;  %v1988_v44 = vsel %vm1978_vm15, 65537, %v4282_v12  ;;  %vm1980_vm1 = vmpackc.low %vm5006_vm11, %vm5006_vm11 }
 0x26c   : > { %v4926_v35 = vpop.f32.mrf.mxu1  ;;  %v599_v4 = vmul.u32 10, %v598_v52  ;;  %vm1979_vm0 = vmpackc.low %vm4987_vm2, %vm4987_vm2  ;;  %vm5024_vm3 = vcmp.lt.s32.totalorder %v658_v49, 8  ;;  %v1637_v43 = vadd.f32 %v4852_v7, %v4806_v53  ;;  %vm5041_vm5 = vcmp.lt.s32.totalorder %v659_v15, 8 }
 0x26d   : > { %v3946_v33 = vpop.f32.mrf.mxu0  ;;  %v4994_v59 = vsub.s32 %v4885_v51, %v577_v38  ;;  %vm1981_vm10 = vmpackc.low %vm5024_vm3, %vm5024_vm3  ;;  %v1989_v54 = vsel %vm1979_vm0, 65537, %v4282_v12  ;;  %v1990_v25 = vsel %vm1980_vm1, 65537, %v4282_v12  ;;  %v1638_v52 = vadd.f32 %v4868_v26, %v4809_v63 }
 0x26e   : > { %v3972_v9 = vpop.f32.mrf.mxu1  ;;  %v5052_v53 = vsub.s32 %v4914_v31, %v599_v4  ;;  %vm1982_vm2 = vmpackc.low %vm5041_vm5, %vm5041_vm5  ;;  %v1798_v33 = vadd.f32 %v4833_v37, %v1637_v43  ;;  %v1991_v63 = vsel %vm1981_vm10, 65537, %v4282_v12 }
 0x26f   : > { %v4946_v14 = vpop.f32.mrf.mxu0  ;;  %v588_v9 = vmul.u32 10, %v587_v22  ;;  %v5031_v22 = vld [vmem:[%s5665_s2] ss:$0 sm:$0xff]  ;;  %vm620_vm9 = vcmp.ne.s32.totalorder %v4994_v59, 0  ;;  %vm630_vm4 = vcmp.lt.s32.totalorder %v4994_v59, 0  ;;  %v650_v28 = vadd.s32 10, %v4994_v59 }
 0x270   : > { %vm5071_vm15 = vmand %vm630_vm4, %vm620_vm9  ;;  %vm622_vm1 = vcmp.ne.s32.totalorder %v5052_v53, 0  ;;  %vm632_vm9 = vcmp.lt.s32.totalorder %v5052_v53, 0  ;;  %v1992_v20 = vsel %vm1982_vm2, 65537, %v4282_v12  ;;  %v1799_v4 = vadd.f32 %v4844_v39, %v1638_v52 }
 0x271   : > { %v3949_v27 = vpop.f32.mrf.mxu0  ;;  %v5019_v45 = vsub.s32 %v4893_v60, %v588_v9  ;;  %v610_v60 = vmul.u32 10, %v609_v40  ;;  %v3596_v40 = vcombine.low %v1989_v54, %v1990_v25  ;;  %v660_v37 = vsel %vm5071_vm15, %v650_v28, %v4994_v59  ;;  %v3634_v28 = vld [vmem:[%s5666_s3 + $0xc] sm:$0xf] }
 0x272   : > { %v3595_v27 = vcombine.low %v1987_v6, %v1988_v44  ;;  %v652_v59 = vadd.s32 10, %v5052_v53  ;;  %v1639_v44 = vadd.f32 %v4879_v42, %v4812_v18  ;;  %vm5128_vm5 = vcmp.lt.s32.totalorder %v660_v37, 8 }
 0x273   : > { %v4975_v30 = vpop.f32.mrf.mxu0  ;;  %vm621_vm13 = vcmp.ne.s32.totalorder %v5019_v45, 0  ;;  %vm631_vm12 = vcmp.lt.s32.totalorder %v5019_v45, 0  ;;  %v651_v1 = vadd.s32 10, %v5019_v45  ;;  %v5080_v9 = vsub.s32 %v4922_v48, %v610_v60  ;;  %vm1983_vm2 = vmpackc.low %vm5128_vm5, %vm5128_vm5 }
 0x274   : > { %vm5085_vm11 = vcmp.ne.s16.totalorder %v3595_v27, 0  ;;  %vm5094_vm0 = vmand %vm631_vm12, %vm621_vm13  ;;  %vm5124_vm10 = vcmp.ne.s16.totalorder %v3596_v40, 0  ;;  %v3597_v34 = vcombine.low %v1991_v63, %v1992_v20  ;;  %v1800_v54 = vadd.f32 %v4850_v5, %v1639_v44 }
 0x275   : > { %v3950_v8 = vpop.f32.mrf.mxu0  ;;  %vm623_vm3 = vcmp.ne.s32.totalorder %v5080_v9, 0  ;;  %vm633_vm4 = vcmp.lt.s32.totalorder %v5080_v9, 0  ;;  %vm5134_vm13 = vmand %vm632_vm9, %vm622_vm1  ;;  %v653_v60 = vadd.s32 10, %v5080_v9  ;;  %v1641_v37 = vadd.f32 %v4902_v19, %v4816_v32 }
 0x276   : > { %vm5148_vm15 = vmand %vm633_vm4, %vm623_vm3  ;;  %v662_v25 = vsel %vm5134_vm13, %v652_v59, %v5052_v53  ;;  %v1642_v19 = vadd.f32 %v4928_v58, %v4818_v2  ;;  %vm2260_vm3 = vcmask 64512   ;;  %vm5733_vm13 = vmmov 0  }
 0x277   : > { %v1876_v51 = vpop.f32.mrf.mxu0  ;;  %v663_v5 = vsel %vm5148_vm15, %v653_v60, %v5080_v9  ;;  %v5181_v9 = vsel %vm1983_vm2, 65537, %v4282_v12  ;;  %vm5192_vm1 = vcmp.lt.s32.totalorder %v662_v25, 8  ;;  %v1802_v58 = vadd.f32 %v4877_v41, %v1641_v37 }
 0x278   : > { %v1915_v50 = vadd.f32 %v1876_v51, %v1796_v23  ;;  %v661_v51 = vsel %vm5094_vm0, %v651_v1, %v5019_v45  ;;  %vm5168_vm0 = vcmp.ne.s16.totalorder %v3597_v34, 0  ;;  %vm5200_vm9 = vcmp.lt.s32.totalorder %v663_v5, 8  ;;  %vm1985_vm4 = vmpackc.low %vm5192_vm1, %vm5192_vm1  ;;  %v2174_v5 = vld [vmem:[#allocation3] sm:$0xf] }
 0x279   : > { %v3977_v10 = vpop.f32.mrf.mxu0  ;;  %vm5142_vm12 = vcmp.lt.s32.totalorder %v661_v51, 8  ;;  %v1803_v25 = vadd.f32 %v4887_v16, %v1642_v19  ;;  %vm5735_vm2 = vsmask.f32 7424 }
 0x27a   : > { %v1932_v47 = vadd.f32 %v5031_v22, %v1915_v50 }
 0x27b   : > { %v1879_v38 = vpop.f32.mrf.mxu0 }
 0x27c   : > { %v1916_v7 = vadd.f32 %v1879_v38, %v1797_v21  ;;  %v1942_v26 = vmax.f32 %v1932_v47, 0.0  ;;  %v1640_v47 = vadd.f32 %v4889_v56, %v4814_v24 }
 0x27d   : > { %v3978_v61 = vpop.f32.mrf.mxu0 }
 0x27e   : > { %v1933_v55 = vadd.f32 %v5031_v22, %v1916_v7 }
 0x27f   : > { %v1884_v48 = vpop.f32.mrf.mxu0 }
 0x280   : > { %v1943_v3 = vmax.f32 %v1933_v55, 0.0  ;;  %v1917_v23 = vadd.f32 %v1884_v48, %v1798_v33 }
 0x281   : > { %v3981_v6 = vpop.f32.mrf.mxu0 }
 0x282   : > { %v1952_v15 = vpack.c.bf16 %v1943_v3, %v1942_v26  ;;  %v1934_v39 = vadd.f32 %v5031_v22, %v1917_v23  ;;  %v2159_v26 = vld [vmem:[#allocation3 + $0x4] sm:$0xe]  ;;  %v1801_v23 = vadd.f32 %v4866_v62, %v1640_v47 }
 0x283   : > { %v1887_v50 = vpop.f32.mrf.mxu0 }
 0x284   : > { %v2017_v18 = vsel %vm5085_vm11, %v1952_v15, 0  ;;  %v1918_v42 = vadd.f32 %v1887_v50, %v1799_v4  ;;  %v1944_v8 = vmax.f32 %v1934_v39, 0.0  ;;  %vm1984_vm11 = vmpackc.low %vm5142_vm12, %vm5142_vm12 }
 0x285   : > { %v3600_v43 = vcombine.low %v2017_v18, %v2017_v18  ;;  %v3601_v21 = vcombine.high %v2017_v18, %v2017_v18  ;;  %v3982_v27 = vpop.f32.mrf.mxu0  ;;  %v5190_v32 = vsel %vm1984_vm11, 65537, %v4282_v12  ;;  %vm5736_vm11 = vmmov %vm5735_vm2 }
 0x286   : > { %v1935_v7 = vadd.f32 %v5031_v22, %v1918_v42  ;;  %v3598_v11 = vcombine.low %v5181_v9, %v5190_v32 }
 0x287   : > { %v2048_v31 = vshrl.u32 %v3600_v43, 16  ;;  %v2051_v61 = vshll.u32 %v3600_v43, 16  ;;  %v2057_v1 = vshrl.u32 %v3601_v21, 16  ;;  %v2060_v52 = vshll.u32 %v3601_v21, 16  ;;  %v1892_v55 = vpop.f32.mrf.mxu0 }
 0x288   : > { %v1945_v33 = vmax.f32 %v1935_v7, 0.0  ;;  %v1919_v24 = vadd.f32 %v1892_v55, %v1800_v54  ;;  %vm2015_vm5 = vcmp.ne.s16.totalorder %v3598_v11, 0 }
 0x289   : > { %v2050_v56 = vrot.slane %v2048_v31, 6  ;;  %v2053_v53 = vrot.slane %v2051_v61, 7  ;;  %v2059_v49 = vrot.slane %v2057_v1, 6  ;;  %v2062_v48 = vrot.slane %v2060_v52, 7  ;;  %v3985_v40 = vpop.f32.mrf.mxu0 }
 0x28a   : > { %v1953_v3 = vpack.c.bf16 %v1945_v33, %v1944_v8  ;;  %v1936_v20 = vadd.f32 %v5031_v22, %v1919_v24  ;;  %v5229_v31 = vsel %vm1985_vm4, 65537, %v4282_v12  ;;  %v1643_v61 = vadd.f32 %v4946_v14, %v4825_v46 }
 0x28b   : > { %v2054_v6 = vor.u32 %v2053_v53, %v2050_v56  ;;  %v1895_v51 = vpop.f32.mrf.mxu0  ;;  %v2063_v50 = vor.u32 %v2062_v48, %v2059_v49 }
 0x28c   : > { %v2018_v59 = vsel %vm5124_vm10, %v1953_v3, 0  ;;  %v1920_v44 = vadd.f32 %v1895_v51, %v1801_v23  ;;  %v1946_v43 = vmax.f32 %v1936_v20, 0.0  ;;  %vm5732_vm10 = vcmask 1043456  }
 0x28d   : > { %v2055_v4 = vrot.slane %v2054_v6, 4  ;;  %v2160_v10 = vsel %vm4368_vm8, %v2054_v6, %v2159_v26  ;;  %v3602_v45 = vcombine.low %v2018_v59, %v2018_v59  ;;  %v3986_v18 = vpop.f32.mrf.mxu0  ;;  %v3603_v39 = vcombine.high %v2018_v59, %v2018_v59  ;;  %vm1986_vm8 = vmpackc.low %vm5200_vm9, %vm5200_vm9 }
 0x28e   : > { %2161 = vst [vmem:[#allocation3 + $0x4] sm:$0xe] %v2160_v10  ;;  %v1937_v2 = vadd.f32 %v5031_v22, %v1920_v44  ;;  %v2065_v8 = vrot.slane %v2063_v50, 4  ;;  %v5234_v16 = vsel %vm1986_vm8, 65537, %v4282_v12  ;;  %v2625_v56 = vsel %vm5732_vm10, %v3634_v28, 0  ;;  %vm5734_vm15 = vmmov %vm5732_vm10 }
 0x28f   : > { %v2064_v17 = vsel %vm4419_vm14, %v2055_v4, %v2063_v50  ;;  %v2067_v42 = vshrl.u32 %v3602_v45, 16  ;;  %v2070_v60 = vshll.u32 %v3602_v45, 16  ;;  %v1900_v21 = vpop.f32.mrf.mxu0  ;;  %v2077_v27 = vshrl.u32 %v3603_v39, 16  ;;  %vm5743_vm4 = vmmov %vm5732_vm10 }
 0x290   : > { %2162 = vst.msk [vmem:[#allocation3 + $0x8] sm:$0xf] %vm241_vm7, %v2064_v17  ;;  %v2080_v34 = vshll.u32 %v3603_v39, 16  ;;  %v1947_v38 = vmax.f32 %v1937_v2, 0.0  ;;  %v1921_v41 = vadd.f32 %v1900_v21, %v1802_v58  ;;  %v1644_v12 = vadd.f32 %v4975_v30, %v4831_v36 }
 0x291   : > { %v2069_v47 = vrot.slane %v2067_v42, 6  ;;  %v2072_v7 = vrot.slane %v2070_v60, 7  ;;  %v3989_v54 = vpop.f32.mrf.mxu0  ;;  %v2079_v1 = vrot.slane %v2077_v27, 6  ;;  %v1804_v9 = vadd.f32 %v4900_v57, %v1643_v61 }
 0x292   : > { %v2082_v52 = vrot.slane %v2080_v34, 7  ;;  %v1954_v55 = vpack.c.bf16 %v1947_v38, %v1946_v43  ;;  %v1938_v48 = vadd.f32 %v5031_v22, %v1921_v41  ;;  %v1805_v18 = vadd.f32 %v4926_v35, %v1644_v12 }
 0x293   : > { %v2073_v33 = vor.u32 %v2072_v7, %v2069_v47  ;;  %v1903_v24 = vpop.f32.mrf.mxu0  ;;  %v3599_v42 = vcombine.low %v5229_v31, %v5234_v16 }
 0x294   : > { %v2083_v53 = vor.u32 %v2082_v52, %v2079_v1  ;;  %v2019_v49 = vsel %vm5168_vm0, %v1954_v55, 0  ;;  %v1922_v40 = vadd.f32 %v1903_v24, %v1803_v25  ;;  %v1948_v44 = vmax.f32 %v1938_v48, 0.0  ;;  %v3627_v25 = vld [vmem:[%s5666_s3 + $0x8] sm:$0xf]  ;;  %vm5737_vm0 = vmmov %vm5735_vm2 }
 0x295   : > { %v2074_v46 = vsel %vm4419_vm14, %v2065_v8, %v2073_v33  ;;  %v2075_v14 = vrot.slane %v2073_v33, 4  ;;  %v3604_v37 = vcombine.low %v2019_v49, %v2019_v49  ;;  %v3605_v26 = vcombine.high %v2019_v49, %v2019_v49  ;;  %v3990_v3 = vpop.f32.mrf.mxu0  ;;  %v5242_v23 = vld [vmem:[#allocation3 + $0x4] sm:$0xf]  ;;  %vm5741_vm1 = vmmov %vm5737_vm0 }
 0x296   : > { %2163 = vst.msk [vmem:[#allocation3 + $0xc] sm:$0xf] %vm241_vm7, %v2074_v46  ;;  %v1939_v63 = vadd.f32 %v5031_v22, %v1922_v40  ;;  %v3611_v6 = vcombine.low %v2174_v5, %v5242_v23  ;;  %v2085_v2 = vrot.slane %v2083_v53, 4  ;;  %vm2016_vm12 = vcmp.ne.s16.totalorder %v3599_v42, 0 }
 0x297   : > { %v2084_v20 = vsel %vm4419_vm14, %v2075_v14, %v2083_v53  ;;  %v2087_v51 = vshrl.u32 %v3604_v37, 16  ;;  %v2090_v32 = vshll.u32 %v3604_v37, 16  ;;  %v2097_v62 = vshrl.u32 %v3605_v26, 16  ;;  %v1908_v19 = vpop.f32.mrf.mxu0 }
 0x298   : > { %2164 = vst.msk [vmem:[#allocation3 + $0x10] sm:$0xf] %vm241_vm7, %v2084_v20  ;;  %v2100_v59 = vshll.u32 %v3605_v26, 16  ;;  %v1949_v36 = vmax.f32 %v1939_v63, 0.0  ;;  %v1923_v30 = vadd.f32 %v1908_v19, %v1804_v9  ;;  %4020 = vmatmul.mubr.msk.bf16.vlgmr.msra.gmra.mxu0 %vm2260_vm3, %v3611_v6  ;;  %v2219_v39 = vshll.u32 %v3611_v6, 16 }
 0x299   : > { %v2089_v15 = vrot.slane %v2087_v51, 6  ;;  %v2092_v4 = vrot.slane %v2090_v32, 7  ;;  %v2099_v57 = vrot.slane %v2097_v62, 6  ;;  %v3993_v50 = vpop.f32.mrf.mxu0  ;;  %4023 = vmatprep.mubr.msk.bf16.mxu0 %vm5733_vm13, %v4284_v29  ;;  %4062 = vmatpush3.bf16.msra.mxu0 %v2625_v56  ;;  %v2217_v7 = vshrl.u32 %v3611_v6, 16 }
 0x29a   : > { %v2102_v10 = vrot.slane %v2100_v59, 7  ;;  %v1955_v45 = vpack.c.bf16 %v1949_v36, %v1948_v44  ;;  %4105 = vmatprep.subr.bf16.mxu0 %v4284_v29  ;;  %v1940_v43 = vadd.f32 %v5031_v22, %v1923_v30  ;;  %v2221_v54 = vrot.slane %v2219_v39, 1 }
 0x29b   : > { %v2093_v58 = vor.u32 %v2092_v4, %v2089_v15  ;;  %v1911_v17 = vpop.f32.mrf.mxu0  ;;  %v2472_v14 = vsel %vm5734_vm15, %v3627_v25, 0 }
 0x29c   : > { %v2103_v60 = vor.u32 %v2102_v10, %v2099_v57  ;;  %v2020_v11 = vsel %vm2015_vm5, %v1955_v45, 0  ;;  %v1924_v21 = vadd.f32 %v1911_v17, %v1805_v18  ;;  %v1950_v8 = vmax.f32 %v1940_v43, 0.0 }
 0x29d   : > { %v2094_v27 = vsel %vm4419_vm14, %v2085_v2, %v2093_v58  ;;  %v2095_v34 = vrot.slane %v2093_v58, 4  ;;  %v3606_v38 = vcombine.low %v2020_v11, %v2020_v11  ;;  %v3607_v35 = vcombine.high %v2020_v11, %v2020_v11  ;;  %v3994_v41 = vpop.f32.mrf.mxu0  ;;  %v5263_v28 = vld [vmem:[#allocation3 + $0x8] sm:$0xff]  }
 0x29e   : > { %2165 = vst.msk [vmem:[#allocation3 + $0x14] sm:$0xf] %vm241_vm7, %v2094_v27  ;;  %v1941_v47 = vadd.f32 %v5031_v22, %v1924_v21  ;;  %v2224_v22 = vshll.u32 %v5263_v28, 16  ;;  %v2222_v49 = vor.u32 %v2221_v54, %v2217_v7  ;;  %v2105_v40 = vrot.slane %v2103_v60, 4  ;;  %v2171_v2 = vld [vmem:[#allocation3 + $0x2c] sm:$0x3] }
 0x29f   : > { %v2104_v31 = vsel %vm4419_vm14, %v2095_v34, %v2103_v60  ;;  %v2107_v61 = vshrl.u32 %v3606_v38, 16  ;;  %v2110_v1 = vshll.u32 %v3606_v38, 16  ;;  %v2117_v52 = vshrl.u32 %v3607_v35, 16  ;;  %v5327_v7 = vld [vmem:[#allocation3 + $0xc] sm:$0xff]  }
 0x2a0   : > { %2166 = vst.msk [vmem:[#allocation3 + $0x18] sm:$0xf] %vm241_vm7, %v2104_v31  ;;  %v2120_v55 = vshll.u32 %v3607_v35, 16  ;;  %v1951_v33 = vmax.f32 %v1941_v47, 0.0  ;;  %4024 = vmatmul.mubr.msk.bf16.gmra.mxu0 %vm2260_vm3, %v5263_v28  ;;  %v2226_v48 = vrot.slane %v2224_v22, 1  ;;  %v2228_v44 = vshrl.u32 %v5263_v28, 16 }
 0x2a1   : > { %v2109_v24 = vrot.slane %v2107_v61, 6  ;;  %v2112_v5 = vrot.slane %v2110_v1, 7  ;;  %v2119_v16 = vrot.slane %v2117_v52, 6  ;;  %4027 = vmatprep.mubr.msk.bf16.mxu0 %vm5733_vm13, %v4284_v29  ;;  %v5325_v47 = vld [vmem:[#allocation3 + $0x8] sm:$0xf] }
 0x2a2   : > { %v2122_v56 = vrot.slane %v2120_v55, 7  ;;  %v1956_v53 = vpack.c.bf16 %v1951_v33, %v1950_v8  ;;  %v2227_v3 = vsel %vm5735_vm2, %v2222_v49, %v2226_v48  ;;  %v2230_v50 = vor.u32 %v2228_v44, %v2226_v48  ;;  %v2557_v31 = vld [vmem:[#allocation3 + $0x4] sm:$0xe]  ;;  %v3653_v33 = vld [vmem:[%s5666_s3 + $0x14] sm:$0xf] }
 0x2a3   : > { %v2113_v46 = vor.u32 %v2112_v5, %v2109_v24  ;;  %3998 = vmatmul.mubr.msk.bf16.vlgmr.msra.gmra.mxu1 %vm2260_vm3, %v2227_v3  ;;  %v5337_v52 = vcombine.low %v2557_v31, %v5325_v47  ;;  %v2599_v8 = vrot.slane %v5327_v7, 1 }
 0x2a4   : > { %v2123_v37 = vor.u32 %v2122_v56, %v2119_v16  ;;  %v2021_v26 = vsel %vm2016_vm12, %v1956_v53, 0  ;;  %4040 = vmatpush3.bf16.msra.mxu1 %v2472_v14  ;;  %4001 = vmatprep.mubr.msk.bf16.mxu1 %vm5733_vm13, %v4284_v29 }
 0x2a5   : > { %v2114_v12 = vsel %vm4419_vm14, %v2105_v40, %v2113_v46  ;;  %v2115_v63 = vrot.slane %v2113_v46, 4  ;;  %v3608_v9 = vcombine.low %v2021_v26, %v2021_v26  ;;  %v3609_v6 = vcombine.high %v2021_v26, %v2021_v26  ;;  %v5283_v20 = vld [vmem:[#allocation3 + $0x10] sm:$0xff]   ;;  %4083 = vmatprep.subr.bf16.mxu1 %v4284_v29  ;;  %v2439_v46 = vld [vmem:[#allocation3] sm:$0xe] }
 0x2a6   : > { %2167 = vst.msk [vmem:[#allocation3 + $0x1c] sm:$0xf] %vm241_vm7, %v2114_v12  ;;  %v2232_v36 = vshll.u32 %v5283_v20, 16  ;;  %v2125_v45 = vrot.slane %v2123_v37, 4  ;;  %v2236_v21 = vshrl.u32 %v5283_v20, 16  ;;  %v2598_v24 = vrot.slane %v5337_v52, 1 }
 0x2a7   : > { %v2124_v51 = vsel %vm4419_vm14, %v2115_v63, %v2123_v37  ;;  %v2127_v32 = vshrl.u32 %v3608_v9, 16  ;;  %v2130_v62 = vshll.u32 %v3608_v9, 16  ;;  %v2137_v19 = vshrl.u32 %v3609_v6, 16  ;;  %v5352_v53 = vld [vmem:[#allocation3 + $0x14] sm:$0xff]  }
 0x2a8   : > { %2168 = vst.msk [vmem:[#allocation3 + $0x20] sm:$0xf] %vm241_vm7, %v2124_v51  ;;  %v2140_v59 = vshll.u32 %v3609_v6, 16  ;;  %4028 = vmatmul.mubr.msk.bf16.gmra.mxu0 %vm2260_vm3, %v5283_v20  ;;  %v2234_v10 = vrot.slane %v2232_v36, 1  ;;  %v2601_v40 = vrot.slane %v5352_v53, 1  ;;  %v3628_v37 = vcombine.low %v2439_v46, %v5242_v23 }
 0x2a9   : > { %v2129_v30 = vrot.slane %v2127_v32, 6  ;;  %v2132_v15 = vrot.slane %v2130_v62, 7  ;;  %v2139_v4 = vrot.slane %v2137_v19, 6  ;;  %4031 = vmatprep.mubr.msk.bf16.mxu0 %vm5733_vm13, %v4284_v29  ;;  %v2446_v12 = vrot.slane %v5263_v28, 1  ;;  %v3646_v63 = vld [vmem:[%s5666_s3 + $0x10] sm:$0xf] }
 0x2aa   : > { %v2142_v57 = vrot.slane %v2140_v59, 7  ;;  %v2235_v58 = vsel %vm5736_vm11, %v2230_v50, %v2234_v10  ;;  %v2238_v38 = vor.u32 %v2236_v21, %v2234_v10  ;;  %v2445_v9 = vrot.slane %v3628_v37, 1  ;;  %v2870_v50 = vld [vmem:[#allocation3 + $0x4] sm:$0xc] }
 0x2ab   : > { %v2133_v18 = vor.u32 %v2132_v15, %v2129_v30  ;;  %4002 = vmatmul.mubr.msk.bf16.gmra.mxu1 %vm2260_vm3, %v2235_v58  ;;  %v2785_v6 = vsel %vm5743_vm4, %v3646_v63, 0  ;;  %v2448_v62 = vrot.slane %v5283_v20, 1  ;;  %v3654_v10 = vcombine.low %v2870_v50, %v5325_v47 }
 0x2ac   : > { %v2143_v39 = vor.u32 %v2142_v57, %v2139_v4  ;;  %4005 = vmatprep.mubr.msk.bf16.mxu1 %vm5733_vm13, %v4284_v29  ;;  %v2720_v21 = vshll.u32 %v5337_v52, 16 }
 0x2ad   : > { %v2134_v17 = vsel %vm4419_vm14, %v2125_v45, %v2133_v18  ;;  %v2135_v42 = vrot.slane %v2133_v18, 4  ;;  %v5302_v60 = vld [vmem:[#allocation3 + $0x18] sm:$0xff]   ;;  %v2877_v45 = vrot.slane %v5327_v7, 2  ;;  %v3672_v18 = vld [vmem:[%s5666_s3 + $0x1c] sm:$0xf] }
 0x2ae   : > { %v2145_v11 = vrot.slane %v2143_v39, 4  ;;  %2169 = vst.msk [vmem:[#allocation3 + $0x24] sm:$0xf] %vm241_vm7, %v2134_v17  ;;  %v2240_v27 = vshll.u32 %v5302_v60, 16  ;;  %v2244_v13 = vshrl.u32 %v5302_v60, 16  ;;  %v2450_v30 = vrot.slane %v5302_v60, 1 }
 0x2af   : > { %v2144_v43 = vsel %vm4419_vm14, %v2135_v42, %v2143_v39  ;;  %vm5739_vm14 = vmmov %vm5732_vm10  ;;  %v5365_v3 = vld [vmem:[#allocation3 + $0x1c] sm:$0xff]  }
 0x2b0   : > { %2170 = vst.msk [vmem:[#allocation3 + $0x28] sm:$0xf] %vm241_vm7, %v2144_v43  ;;  %v2172_v34 = vsel %vm4356_vm6, %v2145_v11, %v2171_v2  ;;  %4032 = vmatmul.mubr.msk.bf16.gmra.mxu0 %vm2260_vm3, %v5302_v60  ;;  %v2242_v35 = vrot.slane %v2240_v27, 1  ;;  %vm5738_vm6 = vmmov %vm5737_vm0  ;;  %v2903_v16 = vsel %vm5739_vm14, %v3653_v33, 0  ;;  %vm5740_vm7 = vcmask 1046528  }
 0x2b1   : > { %2173 = vst [vmem:[#allocation3 + $0x2c] sm:$0x3] %v2172_v34  ;;  %4035 = vmatprep.mubr.msk.bf16.mxu0 %vm5733_vm13, %v4284_v29  ;;  %v2600_v56 = vsel %vm5740_vm7, %v2598_v24, %v2599_v8  ;;  %vm5742_vm9 = vmmov %vm5740_vm7  ;;  %v2603_v23 = vrot.slane %v5365_v3, 1  ;;  %v2876_v2 = vrot.slane %v3654_v10, 2  ;;  %v2725_v60 = vshrl.u32 %v5327_v7, 16 }
 0x2b2   : > { %v2243_v0 = vsel %vm5737_vm0, %v2238_v38, %v2242_v35  ;;  %v2246_v61 = vor.u32 %v2244_v13, %v2242_v35  ;;  %v2602_v26 = vsel %vm5742_vm9, %v2599_v8, %v2601_v40  ;;  %vm5744_vm8 = vmmov %vm5740_vm7  ;;  %v2728_v11 = vshll.u32 %v5327_v7, 16  ;;  %v3660_v7 = vld [vmem:[%s5666_s3 + $0x18] sm:$0xf] }
 0x2b3   : > { %4006 = vmatmul.mubr.msk.bf16.gmra.mxu1 %vm2260_vm3, %v2243_v0  ;;  %v2447_v51 = vsel %vm5744_vm8, %v2445_v9, %v2446_v12  ;;  %vm5745_vm10 = vmmov %vm5740_vm7  ;;  %v2717_v43 = vshrl.u32 %v5337_v52, 16  ;;  %v2879_v27 = vrot.slane %v5352_v53, 2  ;;  %v2727_v38 = vrot.slane %v2725_v60, 1 }
 0x2b4   : > { %4009 = vmatprep.mubr.msk.bf16.mxu1 %vm5733_vm13, %v4284_v29  ;;  %v2604_v28 = vsel %vm5745_vm10, %v2601_v40, %v2603_v23  ;;  %vm5746_vm5 = vmmov %vm5740_vm7  ;;  %v2730_v35 = vrot.slane %v2728_v11, 2  ;;  %vm5756_vm9 = vsmask.f32 6400  ;;  %v2743_v24 = vshrl.u32 %v5365_v3, 16 }
 0x2b5   : > { %v5320_v41 = vld [vmem:[#allocation3 + $0x20] sm:$0xff]   ;;  %v2449_v59 = vsel %vm5746_vm5, %v2446_v12, %v2448_v62  ;;  %vm5747_vm12 = vmmov %vm5746_vm5  ;;  %v2719_v0 = vrot.slane %v2717_v43, 1  ;;  %v2988_v12 = vld [vmem:[#allocation3 + $0x8] sm:$0xc] }
 0x2b6   : > { %v2248_v54 = vshll.u32 %v5320_v41, 16  ;;  %v2252_v5 = vshrl.u32 %v5320_v41, 16  ;;  %vm5748_vm15 = vmmov %vm5746_vm5  ;;  %v2452_v57 = vrot.slane %v5320_v41, 1  ;;  %v2731_v47 = vor.u32 %v2730_v35, %v2727_v38  ;;  %v5488_v43 = vld [vmem:[#allocation3 + $0x20] sm:$0xff]  }
 0x2b7   : > { %v5330_v25 = vld [vmem:[#allocation3 + $0x28] ss:$0 sps:$4 sm:$0x11]   ;;  %v2451_v15 = vsel %vm5748_vm15, %v2448_v62, %v2450_v30  ;;  %vm5749_vm2 = vmmov %vm5746_vm5  ;;  %v3177_v38 = vshll.u32 %v5488_v43, 16 }
 0x2b8   : > { %4036 = vmatmul.mubr.msk.bf16.gmra.mxu0 %vm2260_vm3, %v5320_v41  ;;  %v2250_v1 = vrot.slane %v2248_v54, 1  ;;  %v2256_v22 = vshll.u32 %v5330_v25, 16  ;;  %v5381_v32 = vld [vmem:[#allocation3 + $0x24] sm:$0xff]   ;;  %v4262_v36 = vld [vmem:[#allocation3 + $0x2c] ss:$0 sps:$4 sm:$0x11]   ;;  %vm5750_vm11 = vmmov %vm5749_vm2 }
 0x2b9   : > { %4063 = vmatprep.mubr.msk.bf16.mxu0 %vm5733_vm13, %v4284_v29  ;;  %v2605_v19 = vrot.slane %v5381_v32, 1  ;;  %v2607_v20 = vrot.slane %v4262_v36, 1  ;;  %v2453_v39 = vsel %vm5750_vm11, %v2450_v30, %v2452_v57  ;;  %vm5751_vm0 = vmmov %vm5743_vm4  ;;  %v2454_v42 = vrot.slane %v5330_v25, 1  ;;  %v4264_v46 = vld [vmem:[#allocation3 + $0x2c] ss:$0 sps:$4 sm:$0x33]  }
 0x2ba   : > { %v2251_v55 = vsel %vm5738_vm6, %v2246_v61, %v2250_v1  ;;  %v2254_v49 = vor.u32 %v2252_v5, %v2250_v1  ;;  %v2258_v48 = vrot.slane %v2256_v22, 1  ;;  %v3216_v58 = vsel %vm5751_vm0, %v3672_v18, 0  ;;  %vm5753_vm14 = vmmov %vm5749_vm2  ;;  %v5476_v30 = vld [vmem:[#allocation3 + $0x18] sm:$0xff]  }
 0x2bb   : > { %4010 = vmatmul.mubr.msk.bf16.gmra.mxu1 %vm2260_vm3, %v2251_v55  ;;  %v2606_v44 = vsel %vm5747_vm12, %v2603_v23, %v2605_v19  ;;  %v2608_v4 = vsel %vm5749_vm2, %v2605_v19, %v2607_v20  ;;  %vm5752_vm6 = vcmask 1045504   ;;  %v2455_v34 = vsel %vm5753_vm14, %v2452_v57, %v2454_v42  ;;  %vm5758_vm8 = vmmov %vm5756_vm9 }
 0x2bc   : > { %4013 = vmatprep.mubr.msk.bf16.mxu1 %vm5733_vm13, %v4284_v29  ;;  %v2259_v14 = vsel %vm5741_vm1, %v2254_v49, %v2258_v48  ;;  %v2878_v17 = vsel %vm5752_vm6, %v2876_v2, %v2877_v45  ;;  %v2722_v41 = vrot.slane %v2720_v21, 2  ;;  %vm5754_vm7 = vmmov %vm5752_vm6  ;;  %v2734_v54 = vshrl.u32 %v5352_v53, 16  ;;  %v5458_v48 = vld [vmem:[#allocation3 + $0xc] sm:$0xf] }
 0x2bd   : > { %v2880_v13 = vsel %vm5754_vm7, %v2877_v45, %v2879_v27  ;;  %v2737_v25 = vshll.u32 %v5352_v53, 16  ;;  %vm5755_vm1 = vmmov %vm5751_vm0  ;;  %v2881_v1 = vrot.slane %v5365_v3, 2  ;;  %v2746_v5 = vshll.u32 %v5365_v3, 16 }
 0x2be   : > { %v2723_v31 = vor.u32 %v2722_v41, %v2719_v0  ;;  %v3056_v61 = vsel %vm5755_vm1, %v3660_v7, 0  ;;  %v2736_v55 = vrot.slane %v2734_v54, 1  ;;  %vm5757_vm4 = vmmov %vm5752_vm6  ;;  %v2745_v53 = vrot.slane %v2743_v24, 1  ;;  %v3679_v54 = vld [vmem:[%s5666_s3 + $0x20] sm:$0xf] }
 0x2bf   : > { %v2739_v8 = vrot.slane %v2737_v25, 2  ;;  %v2882_v33 = vsel %vm5757_vm4, %v2879_v27, %v2881_v1  ;;  %v2748_v49 = vrot.slane %v2746_v5, 2  ;;  %vm5759_vm10 = vmmov %vm5757_vm4  ;;  %v2755_v3 = vshll.u32 %v5381_v32, 16  ;;  %v4270_v24 = vld [vmem:[#allocation3 + $0x30] ss:$0 sps:$4 sm:$0x77]  }
 0x2c0   : > { %4064 = vmatmul.mubr.msk.bf16.vlgmr.msra.gmra.mxu0 %vm2260_vm3, %v2600_v56  ;;  %v2732_v52 = vsel %vm5756_vm9, %v2723_v31, %v2731_v47  ;;  %v3661_v63 = vcombine.low %v2988_v12, %v5458_v48  ;;  %v2885_v9 = vrot.slane %v4264_v46, 2  ;;  %vm5760_vm5 = vmmov %vm5758_vm8  ;;  %v3165_v45 = vshrl.u32 %v5476_v30, 16 }
 0x2c1   : > { %4067 = vmatprep.mubr.msk.bf16.mxu0 %vm5733_vm13, %v4284_v29  ;;  %4106 = vmatpush3.bf16.msra.mxu0 %v2903_v16  ;;  %v2740_v22 = vor.u32 %v2739_v8, %v2736_v55  ;;  %v2883_v16 = vrot.slane %v5381_v32, 2  ;;  %v2749_v37 = vor.u32 %v2748_v49, %v2745_v53  ;;  %v2757_v62 = vrot.slane %v2755_v3, 2  ;;  %vm5761_vm12 = vmmov %vm5757_vm4 }
 0x2c2   : > { %4149 = vmatprep.subr.bf16.mxu0 %v4284_v29  ;;  %v3148_v19 = vshrl.u32 %v3661_v63, 16  ;;  %v3168_v18 = vshll.u32 %v5476_v30, 16  ;;  %vm5762_vm15 = vmmov %vm5760_vm5  ;;  %vm5763_vm2 = vsmask.f32 5376  ;;  %v3167_v60 = vrot.slane %v3165_v45, 2 }
 0x2c3   : > { %4014 = vmatmul.mubr.msk.bf16.gmra.mxu1 %vm2260_vm3, %v2259_v14  ;;  %v2741_v56 = vsel %vm5758_vm8, %v2731_v47, %v2740_v22  ;;  %v2884_v40 = vsel %vm5759_vm10, %v2881_v1, %v2883_v16  ;;  %v5461_v14 = vld [vmem:[#allocation3 + $0x10] sm:$0xff]   ;;  %vm5764_vm11 = vmmov %vm5760_vm5  ;;  %v5500_v47 = vld [vmem:[#allocation3 + $0x28] sm:$0xff]   ;;  %v3029_v25 = vrot.slane %v3661_v63, 2  ;;  %v3032_v5 = vrot.slane %v5476_v30, 2 }
 0x2c4   : > { %4041 = vmatprep.mubr.msk.bf16.mxu1 %vm5733_vm13, %v4284_v29  ;;  %v3159_v23 = vshll.u32 %v5461_v14, 16  ;;  %v3150_v57 = vrot.slane %v3148_v19, 2  ;;  %v3170_v11 = vrot.slane %v3168_v18, 3  ;;  %vm5765_vm0 = vmmov %vm5763_vm2  ;;  %v3030_v7 = vrot.slane %v5461_v14, 2 }
 0x2c5   : > { %vm5766_vm6 = vmmov %vm5755_vm1  ;;  %v3183_v1 = vshrl.u32 %v5500_v47, 16  ;;  %v3195_v53 = vshll.u32 %v4270_v24, 16  ;;  %v3316_v18 = vrot.slane %v4270_v24, 3 }
 0x2c6   : > { %v3161_v36 = vrot.slane %v3159_v23, 3  ;;  %v3171_v27 = vor.u32 %v3170_v11, %v3167_v60  ;;  %v3334_v31 = vsel %vm5766_vm6, %v3679_v54, 0  ;;  %vm5767_vm14 = vmmov %vm5757_vm4  ;;  %v4271_v23 = vld [vmem:[#allocation3 + $0x30] ss:$0 sps:$4 sm:$0x33]  }
 0x2c7   : > { %v3031_v55 = vsel %vm5767_vm14, %v3029_v25, %v3030_v7  ;;  %vm5768_vm7 = vmmov %vm5765_vm0 }
 0x2c8   : > { %4068 = vmatmul.mubr.msk.bf16.gmra.mxu0 %vm2260_vm3, %v2602_v26  ;;  %v2752_v26 = vshrl.u32 %v5381_v32, 16  ;;  %v2886_v32 = vsel %vm5761_vm12, %v2883_v16, %v2885_v9  ;;  %vm5769_vm1 = vmmov %vm5757_vm4  ;;  %v3036_v9 = vrot.slane %v5500_v47, 2  ;;  %vm5775_vm12 = vcmask 1044480  }
 0x2c9   : > { %4071 = vmatprep.mubr.msk.bf16.mxu0 %vm5733_vm13, %v4284_v29  ;;  %v3033_v49 = vsel %vm5769_vm1, %v3030_v7, %v3032_v5  ;;  %vm5770_vm9 = vmmov %vm5765_vm0 }
 0x2ca   : > { %vm5771_vm4 = vmmov %vm5769_vm1 }
 0x2cb   : > { %4042 = vmatmul.mubr.msk.bf16.vlgmr.msra.gmra.mxu1 %vm2260_vm3, %v2447_v51  ;;  %v2750_v51 = vsel %vm5760_vm5, %v2740_v22, %v2749_v37  ;;  %vm5772_vm8 = vmmov %vm5765_vm0 }
 0x2cc   : > { %4084 = vmatpush3.bf16.msra.mxu1 %v2785_v6  ;;  %4045 = vmatprep.mubr.msk.bf16.mxu1 %vm5733_vm13, %v4284_v29  ;;  %v3156_v6 = vshrl.u32 %v5461_v14, 16  ;;  %vm5773_vm10 = vmmov %vm5769_vm1 }
 0x2cd   : > { %4127 = vmatprep.subr.bf16.mxu1 %v4284_v29  ;;  %vm5774_vm5 = vmmov %vm5769_vm1 }
 0x2d0   : > { %4072 = vmatmul.mubr.msk.bf16.gmra.mxu0 %vm2260_vm3, %v2604_v28  ;;  %v2754_v28 = vrot.slane %v2752_v26, 1  ;;  %v3034_v26 = vrot.slane %v5488_v43, 2 }
 0x2d1   : > { %4075 = vmatprep.mubr.msk.bf16.mxu0 %vm5733_vm13, %v4284_v29 }
 0x2d2   : > { %v2758_v20 = vor.u32 %v2757_v62, %v2754_v28  ;;  %v3035_v12 = vsel %vm5771_vm4, %v3032_v5, %v3034_v26  ;;  %v3301_v62 = vld [vmem:[#allocation3 + $0x8] sm:$0x8] }
 0x2d3   : > { %4046 = vmatmul.mubr.msk.bf16.gmra.mxu1 %vm2260_vm3, %v2449_v59  ;;  %v3151_v59 = vshll.u32 %v3661_v63, 16  ;;  %v3680_v19 = vcombine.low %v3301_v62, %v5458_v48  ;;  %v3312_v48 = vrot.slane %v5488_v43, 3 }
 0x2d4   : > { %4049 = vmatprep.mubr.msk.bf16.mxu1 %vm5733_vm13, %v4284_v29 }
 0x2d5   : > { %v3153_v50 = vrot.slane %v3151_v59, 3  ;;  %v3308_v59 = vrot.slane %v5461_v14, 3 }
 0x2d8   : > { %4076 = vmatmul.mubr.msk.bf16.gmra.mxu0 %vm2260_vm3, %v2606_v44  ;;  %v3158_v44 = vrot.slane %v3156_v6, 2  ;;  %v3037_v6 = vsel %vm5773_vm10, %v3034_v26, %v3036_v9 }
 0x2d9   : > { %4079 = vmatprep.mubr.msk.bf16.mxu0 %vm5733_vm13, %v4284_v29 }
 0x2da   : > { %v3162_v10 = vor.u32 %v3161_v36, %v3158_v44  ;;  %v3310_v36 = vrot.slane %v5476_v30, 3 }
 0x2db   : > { %4050 = vmatmul.mubr.msk.bf16.gmra.mxu1 %vm2260_vm3, %v2451_v15  ;;  %v2761_v15 = vshrl.u32 %v4264_v46, 16 }
 0x2dc   : > { %4053 = vmatprep.mubr.msk.bf16.mxu1 %vm5733_vm13, %v4284_v29  ;;  %v3172_v0 = vsel %vm5765_vm0, %v3162_v10, %v3171_v27 }
 0x2dd   : > { %v2763_v2 = vrot.slane %v2761_v15, 1 }
 0x2e0   : > { %4080 = vmatmul.mubr.msk.bf16.gmra.mxu0 %vm2260_vm3, %v2608_v4  ;;  %v2764_v4 = vshll.u32 %v4264_v46, 16 }
 0x2e1   : > { %4107 = vmatprep.mubr.msk.bf16.mxu0 %vm5733_vm13, %v4284_v29 }
 0x2e3   : > { %4054 = vmatmul.mubr.msk.bf16.gmra.mxu1 %vm2260_vm3, %v2453_v39  ;;  %v2759_v39 = vsel %vm5762_vm15, %v2749_v37, %v2758_v20  ;;  %v3197_v37 = vrot.slane %v3195_v53, 3  ;;  %vm5776_vm15 = vmmov %vm5775_vm12 }
 0x2e4   : > { %4057 = vmatprep.mubr.msk.bf16.mxu1 %vm5733_vm13, %v4284_v29 }
 0x2e8   : > { %4108 = vmatmul.mubr.msk.bf16.vlgmr.msra.gmra.mxu0 %vm2260_vm3, %v2878_v17  ;;  %v3154_v17 = vor.u32 %v3153_v50, %v3150_v57 }
 0x2e9   : > { %4111 = vmatprep.mubr.msk.bf16.mxu0 %vm5733_vm13, %v4284_v29  ;;  %4150 = vmatpush3.bf16.msra.mxu0 %v3216_v58  ;;  %v2766_v58 = vrot.slane %v2764_v4, 2  ;;  %v3314_v4 = vrot.slane %v5500_v47, 3 }
 0x2ea   : > { %v3163_v42 = vsel %vm5763_vm2, %v3154_v17, %v3162_v10  ;;  %vm5777_vm2 = vmmov %vm5775_vm12 }
 0x2eb   : > { %4058 = vmatmul.mubr.msk.bf16.gmra.mxu1 %vm2260_vm3, %v2455_v34  ;;  %v2767_v21 = vor.u32 %v2766_v58, %v2763_v2  ;;  %v3174_v34 = vshrl.u32 %v5488_v43, 16  ;;  %v3313_v14 = vsel %vm5777_vm2, %v3310_v36, %v3312_v48  ;;  %vm5779_vm0 = vmmov %vm5777_vm2 }
 0x2ec   : > { %4085 = vmatprep.mubr.msk.bf16.mxu1 %vm5733_vm13, %v4284_v29  ;;  %v3317_v58 = vsel %vm5779_vm0, %v3314_v4, %v3316_v18 }
 0x2ed   : > { %v2768_v35 = vsel %vm5764_vm11, %v2758_v20, %v2767_v21  ;;  %v3176_v41 = vrot.slane %v3174_v34, 2  ;;  %v3311_v20 = vsel %vm5776_vm15, %v3308_v59, %v3310_v36  ;;  %vm5778_vm11 = vmmov %vm5777_vm2 }
 0x2ee   : > { %v3315_v50 = vsel %vm5778_vm11, %v3312_v48, %v3314_v4 }
 0x2f0   : > { %4112 = vmatmul.mubr.msk.bf16.gmra.mxu0 %vm2260_vm3, %v2880_v13  ;;  %v3179_v13 = vrot.slane %v3177_v38, 3 }
 0x2f1   : > { %4115 = vmatprep.mubr.msk.bf16.mxu0 %vm5733_vm13, %v4284_v29 }
 0x2f3   : > { %4086 = vmatmul.mubr.msk.bf16.vlgmr.msra.gmra.mxu1 %vm2260_vm3, %v2732_v52  ;;  %v3186_v52 = vshll.u32 %v5500_v47, 16 }
 0x2f4   : > { %4128 = vmatpush3.bf16.msra.mxu1 %v3056_v61  ;;  %4089 = vmatprep.mubr.msk.bf16.mxu1 %vm5733_vm13, %v4284_v29  ;;  %v3180_v61 = vor.u32 %v3179_v13, %v3176_v41 }
 0x2f5   : > { %4171 = vmatprep.subr.bf16.mxu1 %v4284_v29  ;;  %v3188_v22 = vrot.slane %v3186_v52, 3 }
 0x2f6   : > { %v3181_v8 = vsel %vm5768_vm7, %v3171_v27, %v3180_v61 }
 0x2f8   : > { %4116 = vmatmul.mubr.msk.bf16.gmra.mxu0 %vm2260_vm3, %v2882_v33  ;;  %v3185_v33 = vrot.slane %v3183_v1, 2 }
 0x2f9   : > { %4119 = vmatprep.mubr.msk.bf16.mxu0 %vm5733_vm13, %v4284_v29 }
 0x2fa   : > { %v3189_v16 = vor.u32 %v3188_v22, %v3185_v33 }
 0x2fb   : > { %4090 = vmatmul.mubr.msk.bf16.gmra.mxu1 %vm2260_vm3, %v2741_v56  ;;  %v3192_v56 = vshrl.u32 %v4270_v24, 16 }
 0x2fc   : > { %4093 = vmatprep.mubr.msk.bf16.mxu1 %vm5733_vm13, %v4284_v29 }
 0x2fd   : > { %v3194_v46 = vrot.slane %v3192_v56, 2 }
 0x2ff   : > { %v3198_v3 = vor.u32 %v3197_v37, %v3194_v46 }
 0x300   : > { %4120 = vmatmul.mubr.msk.bf16.gmra.mxu0 %vm2260_vm3, %v2884_v40  ;;  %v3190_v40 = vsel %vm5770_vm9, %v3180_v61, %v3189_v16 }
 0x301   : > { %4123 = vmatprep.mubr.msk.bf16.mxu0 %vm5733_vm13, %v4284_v29  ;;  %v3199_v63 = vsel %vm5772_vm8, %v3189_v16, %v3198_v3 }
 0x303   : > { %4094 = vmatmul.mubr.msk.bf16.gmra.mxu1 %vm2260_vm3, %v2750_v51  ;;  %v3038_v51 = vrot.slane %v4271_v23, 2 }
 0x304   : > { %4097 = vmatprep.mubr.msk.bf16.mxu1 %vm5733_vm13, %v4284_v29 }
 0x305   : > { %v3039_v28 = vsel %vm5774_vm5, %v3036_v9, %v3038_v51 }
 0x308   : > { %4124 = vmatmul.mubr.msk.bf16.gmra.mxu0 %vm2260_vm3, %v2886_v32  ;;  %v3307_v32 = vrot.slane %v3680_v19, 3 }
 0x309   : > { %4151 = vmatprep.mubr.msk.bf16.mxu0 %vm5733_vm13, %v4284_v29 }
 0x30a   : > { %v3309_v44 = vsel %vm5775_vm12, %v3307_v32, %v3308_v59 }
 0x30b   : > { %4098 = vmatmul.mubr.msk.bf16.gmra.mxu1 %vm2260_vm3, %v2759_v39 }
 0x30c   : > { %4101 = vmatprep.mubr.msk.bf16.mxu1 %vm5733_vm13, %v4284_v29 }
 0x310   : > { %4152 = vmatmul.mubr.msk.bf16.vlgmr.msra.gmra.mxu0 %vm2260_vm3, %v3163_v42 }
 0x311   : > { %4155 = vmatprep.mubr.msk.bf16.mxu0 %vm5733_vm13, %v4284_v29 }
 0x313   : > { %4102 = vmatmul.mubr.msk.bf16.gmra.mxu1 %vm2260_vm3, %v2768_v35 }
 0x314   : > { %4129 = vmatprep.mubr.msk.bf16.mxu1 %vm5733_vm13, %v4284_v29 }
 0x318   : > { %4156 = vmatmul.mubr.msk.bf16.gmra.mxu0 %vm2260_vm3, %v3172_v0 }
 0x319   : > { %4159 = vmatprep.mubr.msk.bf16.mxu0 %vm5733_vm13, %v4284_v29 }
 0x31b   : > { %4130 = vmatmul.mubr.msk.bf16.vlgmr.msra.gmra.mxu1 %vm2260_vm3, %v3031_v55 }
 0x31c   : > { %4172 = vmatpush3.bf16.msra.mxu1 %v3334_v31  ;;  %4133 = vmatprep.mubr.msk.bf16.mxu1 %vm5733_vm13, %v4284_v29 }
 0x320   : > { %4160 = vmatmul.mubr.msk.bf16.gmra.mxu0 %vm2260_vm3, %v3181_v8 }
 0x321   : > { %4163 = vmatprep.mubr.msk.bf16.mxu0 %vm5733_vm13, %v4284_v29 }
 0x323   : > { %4134 = vmatmul.mubr.msk.bf16.gmra.mxu1 %vm2260_vm3, %v3033_v49 }
 0x324   : > { %4137 = vmatprep.mubr.msk.bf16.mxu1 %vm5733_vm13, %v4284_v29 }
 0x328   : > { %4164 = vmatmul.mubr.msk.bf16.gmra.mxu0 %vm2260_vm3, %v3190_v40 }
 0x329   : > { %4167 = vmatprep.mubr.msk.bf16.mxu0 %vm5733_vm13, %v4284_v29 }
 0x32b   : > { %4138 = vmatmul.mubr.msk.bf16.gmra.mxu1 %vm2260_vm3, %v3035_v12 }
 0x32c   : > { %4141 = vmatprep.mubr.msk.bf16.mxu1 %vm5733_vm13, %v4284_v29 }
 0x330   : > { %4168 = vmatmul.mubr.msk.bf16.gmra.mxu0 %vm2260_vm3, %v3199_v63 }
 0x333   : > { %4142 = vmatmul.mubr.msk.bf16.gmra.mxu1 %vm2260_vm3, %v3037_v6 }
 0x334   : > { %4145 = vmatprep.mubr.msk.bf16.mxu1 %vm5733_vm13, %v4284_v29 }
 0x33b   : > { %4146 = vmatmul.mubr.msk.bf16.gmra.mxu1 %vm2260_vm3, %v3039_v28 }
 0x33c   : > { %4173 = vmatprep.mubr.msk.bf16.mxu1 %vm5733_vm13, %v4284_v29 }
 0x343   : > { %4174 = vmatmul.mubr.msk.bf16.vlgmr.msra.gmra.mxu1 %vm2260_vm3, %v3309_v44 }
 0x344   : > { %4177 = vmatprep.mubr.msk.bf16.mxu1 %vm5733_vm13, %v4284_v29 }
 0x34b   : > { %4178 = vmatmul.mubr.msk.bf16.gmra.mxu1 %vm2260_vm3, %v3311_v20 }
 0x34c   : > { %4181 = vmatprep.mubr.msk.bf16.mxu1 %vm5733_vm13, %v4284_v29 }
 0x353   : > { %4182 = vmatmul.mubr.msk.bf16.gmra.mxu1 %vm2260_vm3, %v3313_v14 }
 0x354   : > { %4185 = vmatprep.mubr.msk.bf16.mxu1 %vm5733_vm13, %v4284_v29 }
 0x358   : > { %v2400_v15 = vpop.f32.mrf.mxu0 }
 0x35a   : > { %v4021_v30 = vpop.f32.mrf.mxu0 }
 0x35b   : > { %4186 = vmatmul.mubr.msk.bf16.gmra.mxu1 %vm2260_vm3, %v3315_v50 }
 0x35c   : > { %v2403_v57 = vpop.f32.mrf.mxu0  ;;  %4189 = vmatprep.mubr.msk.bf16.mxu1 %vm5733_vm13, %v4284_v29 }
 0x35e   : > { %v4022_v10 = vpop.f32.mrf.mxu0 }
 0x360   : > { %v2408_v45 = vpop.f32.mrf.mxu0 }
 0x362   : > { %v4025_v39 = vpop.f32.mrf.mxu0 }
 0x363   : > { %v2314_v17 = vpop.f32.mrf.mxu1  ;;  %4190 = vmatmul.mubr.msk.bf16.gmra.mxu1 %vm2260_vm3, %v3317_v58 }
 0x364   : > { %v2411_v2 = vpop.f32.mrf.mxu0  ;;  %v2401_v42 = vadd.f32 %v2400_v15, %v2314_v17 }
 0x365   : > { %v3999_v11 = vpop.f32.mrf.mxu1 }
 0x366   : > { %v4026_v60 = vpop.f32.mrf.mxu0 }
 0x367   : > { %v2317_v21 = vpop.f32.mrf.mxu1 }
 0x368   : > { %v2416_v43 = vpop.f32.mrf.mxu0  ;;  %v2404_v27 = vadd.f32 %v2403_v57, %v2317_v21 }
 0x369   : > { %v4000_v38 = vpop.f32.mrf.mxu1 }
 0x36a   : > { %v4029_v34 = vpop.f32.mrf.mxu0 }
 0x36b   : > { %v2322_v0 = vpop.f32.mrf.mxu1 }
 0x36c   : > { %v2419_v35 = vpop.f32.mrf.mxu0  ;;  %v2409_v29 = vadd.f32 %v2408_v45, %v2322_v0 }
 0x36d   : > { %v4003_v13 = vpop.f32.mrf.mxu1 }
 0x36e   : > { %v4030_v41 = vpop.f32.mrf.mxu0 }
 0x36f   : > { %v2325_v7 = vpop.f32.mrf.mxu1 }
 0x370   : > { %v2424_v47 = vpop.f32.mrf.mxu0  ;;  %v2412_v54 = vadd.f32 %v2411_v2, %v2325_v7 }
 0x371   : > { %v4004_v31 = vpop.f32.mrf.mxu1 }
 0x372   : > { %v4033_v25 = vpop.f32.mrf.mxu0 }
 0x373   : > { %v2330_v1 = vpop.f32.mrf.mxu1 }
 0x374   : > { %v2427_v61 = vpop.f32.mrf.mxu0  ;;  %v2417_v52 = vadd.f32 %v2416_v43, %v2330_v1 }
 0x375   : > { %v4007_v8 = vpop.f32.mrf.mxu1 }
 0x376   : > { %v4034_v55 = vpop.f32.mrf.mxu0 }
 0x377   : > { %v2333_v22 = vpop.f32.mrf.mxu1 }
 0x378   : > { %v2432_v33 = vpop.f32.mrf.mxu0  ;;  %v2420_v24 = vadd.f32 %v2419_v35, %v2333_v22 }
 0x379   : > { %v4008_v16 = vpop.f32.mrf.mxu1 }
 0x37a   : > { %v4037_v5 = vpop.f32.mrf.mxu0 }
 0x37b   : > { %v2338_v53 = vpop.f32.mrf.mxu1 }
 0x37c   : > { %v2435_v56 = vpop.f32.mrf.mxu0  ;;  %v2425_v49 = vadd.f32 %v2424_v47, %v2338_v53 }
 0x37d   : > { %v4011_v46 = vpop.f32.mrf.mxu1 }
 0x37e   : > { %v4038_v40 = vpop.f32.mrf.mxu0 }
 0x37f   : > { %v2341_v26 = vpop.f32.mrf.mxu1 }
 0x380   : > { %v2661_v37 = vpop.f32.mrf.mxu0  ;;  %v2428_v3 = vadd.f32 %v2427_v61, %v2341_v26 }
 0x381   : > { %v4012_v63 = vpop.f32.mrf.mxu1 }
 0x382   : > { %v4065_v12 = vpop.f32.mrf.mxu0 }
 0x383   : > { %v2346_v6 = vpop.f32.mrf.mxu1 }
 0x384   : > { %v2664_v9 = vpop.f32.mrf.mxu0  ;;  %v2433_v23 = vadd.f32 %v2432_v33, %v2346_v6 }
 0x385   : > { %v4015_v28 = vpop.f32.mrf.mxu1 }
 0x386   : > { %v4066_v51 = vpop.f32.mrf.mxu0 }
 0x387   : > { %v2349_v19 = vpop.f32.mrf.mxu1 }
 0x388   : > { %v2669_v62 = vpop.f32.mrf.mxu0  ;;  %v2436_v59 = vadd.f32 %v2435_v56, %v2349_v19 }
 0x389   : > { %v4016_v44 = vpop.f32.mrf.mxu1 }
 0x38a   : > { %v4069_v32 = vpop.f32.mrf.mxu0 }
 0x38b   : > { %v2508_v20 = vpop.f32.mrf.mxu1 }
 0x38c   : > { %v2672_v36 = vpop.f32.mrf.mxu0  ;;  %v2547_v48 = vadd.f32 %v2508_v20, %v2401_v42 }
 0x38d   : > { %v4043_v15 = vpop.f32.mrf.mxu1 }
 0x38e   : > { %v4070_v14 = vpop.f32.mrf.mxu0  ;;  %v2700_v30 = vadd.f32 %v2661_v37, %v2547_v48 }
 0x38f   : > { %v2511_v57 = vpop.f32.mrf.mxu1 }
 0x390   : > { %v2677_v4 = vpop.f32.mrf.mxu0  ;;  %v2548_v50 = vadd.f32 %v2511_v57, %v2404_v27 }
 0x391   : > { %v4044_v45 = vpop.f32.mrf.mxu1 }
 0x392   : > { %v4073_v10 = vpop.f32.mrf.mxu0  ;;  %v2701_v39 = vadd.f32 %v2664_v9, %v2548_v50 }
 0x393   : > { %v2516_v2 = vpop.f32.mrf.mxu1 }
 0x394   : > { %v2680_v18 = vpop.f32.mrf.mxu0  ;;  %v2549_v58 = vadd.f32 %v2516_v2, %v2409_v29 }
 0x395   : > { %v4047_v60 = vpop.f32.mrf.mxu1 }
 0x396   : > { %v4074_v17 = vpop.f32.mrf.mxu0  ;;  %v2702_v43 = vadd.f32 %v2669_v62, %v2549_v58 }
 0x397   : > { %v2519_v21 = vpop.f32.mrf.mxu1 }
 0x398   : > { %v2685_v11 = vpop.f32.mrf.mxu0  ;;  %v2550_v34 = vadd.f32 %v2519_v21, %v2412_v54 }
 0x399   : > { %v4048_v42 = vpop.f32.mrf.mxu1 }
 0x39a   : > { %v4077_v38 = vpop.f32.mrf.mxu0  ;;  %v2703_v0 = vadd.f32 %v2672_v36, %v2550_v34 }
 0x39b   : > { %v2524_v41 = vpop.f32.mrf.mxu1 }
 0x39c   : > { %v2688_v35 = vpop.f32.mrf.mxu0  ;;  %v2551_v13 = vadd.f32 %v2524_v41, %v2417_v52 }
 0x39d   : > { %v4051_v27 = vpop.f32.mrf.mxu1 }
 0x39e   : > { %v4078_v47 = vpop.f32.mrf.mxu0  ;;  %v2704_v25 = vadd.f32 %v2677_v4, %v2551_v13 }
 0x39f   : > { %v2527_v31 = vpop.f32.mrf.mxu1 }
 0x3a0   : > { %v2693_v7 = vpop.f32.mrf.mxu0  ;;  %v2552_v61 = vadd.f32 %v2527_v31, %v2420_v24 }
 0x3a1   : > { %v4052_v29 = vpop.f32.mrf.mxu1 }
 0x3a2   : > { %v4081_v1 = vpop.f32.mrf.mxu0  ;;  %v2705_v8 = vadd.f32 %v2680_v18, %v2552_v61 }
 0x3a3   : > { %v2532_v33 = vpop.f32.mrf.mxu1 }
 0x3a4   : > { %v2696_v55 = vpop.f32.mrf.mxu0  ;;  %v2553_v22 = vadd.f32 %v2532_v33, %v2425_v49 }
 0x3a5   : > { %v4055_v54 = vpop.f32.mrf.mxu1 }
 0x3a6   : > { %v4082_v5 = vpop.f32.mrf.mxu0  ;;  %v2706_v56 = vadd.f32 %v2685_v11, %v2553_v22 }
 0x3a7   : > { %v2535_v53 = vpop.f32.mrf.mxu1 }
 0x3a8   : > { %v2939_v16 = vpop.f32.mrf.mxu0  ;;  %v2554_v40 = vadd.f32 %v2535_v53, %v2428_v3 }
 0x3a9   : > { %v4056_v52 = vpop.f32.mrf.mxu1 }
 0x3aa   : > { %v4109_v46 = vpop.f32.mrf.mxu0  ;;  %v2707_v26 = vadd.f32 %v2688_v35, %v2554_v40 }
 0x3ab   : > { %v2540_v12 = vpop.f32.mrf.mxu1 }
 0x3ac   : > { %v2942_v37 = vpop.f32.mrf.mxu0  ;;  %v2555_v63 = vadd.f32 %v2540_v12, %v2433_v23 }
 0x3ad   : > { %v4059_v24 = vpop.f32.mrf.mxu1 }
 0x3ae   : > { %v4110_v9 = vpop.f32.mrf.mxu0  ;;  %v2708_v51 = vadd.f32 %v2693_v7, %v2555_v63 }
 0x3af   : > { %v2543_v28 = vpop.f32.mrf.mxu1 }
 0x3b0   : > { %v2947_v6 = vpop.f32.mrf.mxu0  ;;  %v2556_v62 = vadd.f32 %v2543_v28, %v2436_v59 }
 0x3b1   : > { %v4060_v49 = vpop.f32.mrf.mxu1 }
 0x3b2   : > { %v4113_v19 = vpop.f32.mrf.mxu0  ;;  %v2709_v44 = vadd.f32 %v2696_v55, %v2556_v62 }
 0x3b3   : > { %v2821_v36 = vpop.f32.mrf.mxu1 }
 0x3b4   : > { %v2950_v32 = vpop.f32.mrf.mxu0  ;;  %v2860_v20 = vadd.f32 %v2821_v36, %v2700_v30 }
 0x3b5   : > { %v4087_v3 = vpop.f32.mrf.mxu1 }
 0x3b6   : > { %v4114_v48 = vpop.f32.mrf.mxu0  ;;  %v5568_v15 = vadd.f32 %v2939_v16, %v2860_v20 }
 0x3b7   : > { %v2824_v4 = vpop.f32.mrf.mxu1 }
 0x3b8   : > { %v2955_v14 = vpop.f32.mrf.mxu0  ;;  %v2861_v57 = vadd.f32 %v2824_v4, %v2701_v39 }
 0x3b9   : > { %v4088_v50 = vpop.f32.mrf.mxu1 }
 0x3ba   : > { %v4117_v23 = vpop.f32.mrf.mxu0  ;;  %v5570_v45 = vadd.f32 %v2942_v37, %v2861_v57 }
 0x3bb   : > { %v2829_v18 = vpop.f32.mrf.mxu1 }
 0x3bc   : > { %v2958_v10 = vpop.f32.mrf.mxu0  ;;  %v2862_v59 = vadd.f32 %v2829_v18, %v2702_v43 }
 0x3bd   : > { %v4091_v58 = vpop.f32.mrf.mxu1 }
 0x3be   : > { %v4118_v2 = vpop.f32.mrf.mxu0  ;;  %v5572_v60 = vadd.f32 %v2947_v6, %v2862_v59 }
 0x3bf   : > { %v2832_v30 = vpop.f32.mrf.mxu1 }
 0x3c0   : > { %v2963_v17 = vpop.f32.mrf.mxu0  ;;  %v2863_v11 = vadd.f32 %v2832_v30, %v2703_v0 }
 0x3c1   : > { %v4092_v34 = vpop.f32.mrf.mxu1 }
 0x3c2   : > { %v4121_v21 = vpop.f32.mrf.mxu0  ;;  %v5574_v42 = vadd.f32 %v2950_v32, %v2863_v11 }
 0x3c3   : > { %v2837_v39 = vpop.f32.mrf.mxu1 }
 0x3c4   : > { %v2966_v38 = vpop.f32.mrf.mxu0  ;;  %v2864_v35 = vadd.f32 %v2837_v39, %v2704_v25 }
 0x3c5   : > { %v4095_v13 = vpop.f32.mrf.mxu1 }
 0x3c6   : > { %v4122_v41 = vpop.f32.mrf.mxu0  ;;  %v5576_v27 = vadd.f32 %v2955_v14, %v2864_v35 }
 0x3c7   : > { %v2840_v43 = vpop.f32.mrf.mxu1 }
 0x3c8   : > { %v2971_v47 = vpop.f32.mrf.mxu0  ;;  %v2865_v7 = vadd.f32 %v2840_v43, %v2705_v8 }
 0x3c9   : > { %v4096_v61 = vpop.f32.mrf.mxu1 }
 0x3ca   : > { %v4125_v31 = vpop.f32.mrf.mxu0  ;;  %v5578_v29 = vadd.f32 %v2958_v10, %v2865_v7 }
 0x3cb   : > { %v2845_v0 = vpop.f32.mrf.mxu1 }
 0x3cc   : > { %v2974_v1 = vpop.f32.mrf.mxu0  ;;  %v2866_v55 = vadd.f32 %v2845_v0, %v2706_v56 }
 0x3cd   : > { %v4099_v22 = vpop.f32.mrf.mxu1 }
 0x3ce   : > { %v4126_v33 = vpop.f32.mrf.mxu0  ;;  %v5580_v54 = vadd.f32 %v2963_v17, %v2866_v55  ;;  %v5608_v22 = vld [vmem:[%s5667_s4] ss:$0 sm:$0xff] }
 0x3cf   : > { %v2848_v25 = vpop.f32.mrf.mxu1 }
 0x3d0   : > { %v3252_v5 = vpop.f32.mrf.mxu0  ;;  %v2867_v16 = vadd.f32 %v2848_v25, %v2707_v26 }
 0x3d1   : > { %v4100_v40 = vpop.f32.mrf.mxu1 }
 0x3d2   : > { %v4153_v53 = vpop.f32.mrf.mxu0  ;;  %v5582_v52 = vadd.f32 %v2966_v38, %v2867_v16 }
 0x3d3   : > { %v2853_v8 = vpop.f32.mrf.mxu1 }
 0x3d4   : > { %v3255_v46 = vpop.f32.mrf.mxu0  ;;  %v2868_v37 = vadd.f32 %v2853_v8, %v2708_v51 }
 0x3d5   : > { %v4103_v63 = vpop.f32.mrf.mxu1 }
 0x3d6   : > { %v4154_v12 = vpop.f32.mrf.mxu0  ;;  %v5584_v24 = vadd.f32 %v2971_v47, %v2868_v37 }
 0x3d7   : > { %v2856_v56 = vpop.f32.mrf.mxu1 }
 0x3d8   : > { %v3260_v9 = vpop.f32.mrf.mxu0  ;;  %v2869_v6 = vadd.f32 %v2856_v56, %v2709_v44 }
 0x3d9   : > { %v4104_v62 = vpop.f32.mrf.mxu1 }
 0x3da   : > { %v4157_v28 = vpop.f32.mrf.mxu0  ;;  %v5586_v49 = vadd.f32 %v2974_v1, %v2869_v6 }
 0x3db   : > { %v3092_v26 = vpop.f32.mrf.mxu1 }
 0x3dc   : > { %v3263_v19 = vpop.f32.mrf.mxu0  ;;  %v3131_v31 = vadd.f32 %v3092_v26, %v5568_v15 }
 0x3dd   : > { %v4131_v36 = vpop.f32.mrf.mxu1 }
 0x3de   : > { %v4158_v32 = vpop.f32.mrf.mxu0  ;;  %v3291_v55 = vadd.f32 %v3252_v5, %v3131_v31 }
 0x3df   : > { %v3095_v48 = vpop.f32.mrf.mxu1 }
 0x3e0   : > { %v5588_v20 = vpop.f32.mrf.mxu0  ;;  %v3132_v0 = vadd.f32 %v3095_v48, %v5570_v45 }
 0x3e1   : > { %v4132_v51 = vpop.f32.mrf.mxu1 }
 0x3e2   : > { %v4161_v3 = vpop.f32.mrf.mxu0  ;;  %v3292_v15 = vadd.f32 %v3255_v46, %v3132_v0 }
 0x3e3   : > { %v3100_v4 = vpop.f32.mrf.mxu1 }
 0x3e4   : > { %v5590_v14 = vpop.f32.mrf.mxu0  ;;  %v3133_v53 = vadd.f32 %v3100_v4, %v5572_v60 }
 0x3e5   : > { %v4135_v23 = vpop.f32.mrf.mxu1 }
 0x3e6   : > { %v4162_v57 = vpop.f32.mrf.mxu0  ;;  %v3293_v63 = vadd.f32 %v3260_v9, %v3133_v53 }
 0x3e7   : > { %v3103_v44 = vpop.f32.mrf.mxu1 }
 0x3e8   : > { %v5592_v50 = vpop.f32.mrf.mxu0  ;;  %v3134_v12 = vadd.f32 %v3103_v44, %v5574_v42 }
 0x3e9   : > { %v4136_v18 = vpop.f32.mrf.mxu1 }
 0x3ea   : > { %v4165_v10 = vpop.f32.mrf.mxu0  ;;  %v3294_v32 = vadd.f32 %v3263_v19, %v3134_v12 }
 0x3eb   : > { %v3108_v2 = vpop.f32.mrf.mxu1 }
 0x3ec   : > { %v5594_v59 = vpop.f32.mrf.mxu0  ;;  %v3135_v62 = vadd.f32 %v3108_v2, %v5576_v27 }
 0x3ed   : > { %v4139_v17 = vpop.f32.mrf.mxu1 }
 0x3ee   : > { %v4166_v58 = vpop.f32.mrf.mxu0  ;;  %v3295_v4 = vadd.f32 %v5588_v20, %v3135_v62 }
 0x3ef   : > { %v3111_v11 = vpop.f32.mrf.mxu1 }
 0x3f0   : > { %v5596_v30 = vpop.f32.mrf.mxu0  ;;  %v3136_v51 = vadd.f32 %v3111_v11, %v5578_v29 }
 0x3f1   : > { %v4140_v34 = vpop.f32.mrf.mxu1 }
 0x3f2   : > { %v4169_v21 = vpop.f32.mrf.mxu0  ;;  %v3296_v29 = vadd.f32 %v5590_v14, %v3136_v51 }
 0x3f3   : > { %v3116_v39 = vpop.f32.mrf.mxu1 }
 0x3f4   : > { %v5598_v38 = vpop.f32.mrf.mxu0  ;;  %v3137_v10 = vadd.f32 %v3116_v39, %v5580_v54 }
 0x3f5   : > { %v4143_v41 = vpop.f32.mrf.mxu1 }
 0x3f6   : > { %v4170_v35 = vpop.f32.mrf.mxu0  ;;  %v3297_v54 = vadd.f32 %v5592_v50, %v3137_v10 }
 0x3f7   : > { %v3119_v13 = vpop.f32.mrf.mxu1 }
 0x3f8   : > { %v3138_v11 = vadd.f32 %v3119_v13, %v5582_v52 }
 0x3f9   : > { %v4144_v47 = vpop.f32.mrf.mxu1 }
 0x3fa   : > { %v3298_v52 = vadd.f32 %v5594_v59, %v3138_v11 }
 0x3fb   : > { %v3124_v43 = vpop.f32.mrf.mxu1 }
 0x3fc   : > { %v3139_v41 = vadd.f32 %v3124_v43, %v5584_v24 }
 0x3fd   : > { %v4147_v7 = vpop.f32.mrf.mxu1 }
 0x3fe   : > { %v3299_v24 = vadd.f32 %v5596_v30, %v3139_v41 }
 0x3ff   : > { %v5601_v61 = vpop.f32.mrf.mxu1 }
 0x400   : > { %v3140_v50 = vadd.f32 %v5601_v61, %v5586_v49 }
 0x401   : > { %v4148_v1 = vpop.f32.mrf.mxu1 }
 0x403   : > { %v3370_v33 = vpop.f32.mrf.mxu1 }
 0x404   : > { %v3409_v25 = vadd.f32 %v3370_v33, %v3291_v55 }
 0x405   : > { %v4175_v16 = vpop.f32.mrf.mxu1 }
 0x406   : > { %v3426_v40 = vadd.f32 %v5608_v22, %v3409_v25  ;;  %v3300_v25 = vadd.f32 %v5598_v38, %v3140_v50 }
 0x407   : > { %v3373_v45 = vpop.f32.mrf.mxu1 }
 0x408   : > { %v3436_v5 = vmax.f32 %v3426_v40, 0.0  ;;  %v3410_v8 = vadd.f32 %v3373_v45, %v3292_v15 }
 0x409   : > { %v4176_v37 = vpop.f32.mrf.mxu1 }
 0x40a   : > { %3446 = vst.msk [vmem:[%s5615_s23] sm:$0xff] %vm2260_vm3, %v3436_v5  ;;  %v3427_v60 = vadd.f32 %v5608_v22, %v3410_v8 }
 0x40b   : > { %v3378_v46 = vpop.f32.mrf.mxu1 }
 0x40c   : > { %v3437_v56 = vmax.f32 %v3427_v60, 0.0  ;;  %v3411_v6 = vadd.f32 %v3378_v46, %v3293_v63 }
 0x40d   : > { %v4179_v28 = vpop.f32.mrf.mxu1 }
 0x40e   : > { %3447 = vst.msk [vmem:[%s5615_s23 + $0x8] sm:$0xff] %vm2260_vm3, %v3437_v56  ;;  %v3428_v26 = vadd.f32 %v5608_v22, %v3411_v6 }
 0x40f   : > { %v3381_v36 = vpop.f32.mrf.mxu1 }
 0x410   : > { %v3438_v42 = vmax.f32 %v3428_v26, 0.0  ;;  %v3412_v48 = vadd.f32 %v3381_v36, %v3294_v32 }
 0x411   : > { %v4180_v3 = vpop.f32.mrf.mxu1 }
 0x412   : > { %3448 = vst.msk [vmem:[%s5615_s23 + $0x10] sm:$0xff] %vm2260_vm3, %v3438_v42  ;;  %v3429_v9 = vadd.f32 %v5608_v22, %v3412_v48 }
 0x413   : > { %v3386_v27 = vpop.f32.mrf.mxu1 }
 0x414   : > { %v3439_v57 = vmax.f32 %v3429_v9, 0.0  ;;  %v3413_v23 = vadd.f32 %v3386_v27, %v3295_v4 }
 0x415   : > { %v4183_v44 = vpop.f32.mrf.mxu1 }
 0x416   : > { %3449 = vst.msk [vmem:[%s5615_s23 + $0x18] sm:$0xff] %vm2260_vm3, %v3439_v57  ;;  %v3430_v19 = vadd.f32 %v5608_v22, %v3413_v23 }
 0x417   : > { %v3389_v18 = vpop.f32.mrf.mxu1 }
 0x418   : > { %v3440_v2 = vmax.f32 %v3430_v19, 0.0  ;;  %v3414_v58 = vadd.f32 %v3389_v18, %v3296_v29 }
 0x419   : > { %v4184_v17 = vpop.f32.mrf.mxu1 }
 0x41a   : > { %3450 = vst.msk [vmem:[%s5615_s23 + $0x20] sm:$0xff] %vm2260_vm3, %v3440_v2  ;;  %v3431_v20 = vadd.f32 %v5608_v22, %v3414_v58 }
 0x41b   : > { %v3394_v21 = vpop.f32.mrf.mxu1 }
 0x41c   : > { %v3441_v34 = vmax.f32 %v3431_v20, 0.0  ;;  %v3415_v39 = vadd.f32 %v3394_v21, %v3297_v54 }
 0x41d   : > { %v4187_v35 = vpop.f32.mrf.mxu1 }
 0x41e   : > { %3451 = vst.msk [vmem:[%s5615_s23 + $0x28] sm:$0xff] %vm2260_vm3, %v3441_v34  ;;  %v3432_v14 = vadd.f32 %v5608_v22, %v3415_v39 }
 0x41f   : > { %v3397_v13 = vpop.f32.mrf.mxu1 }
 0x420   : > { %v3442_v47 = vmax.f32 %v3432_v14, 0.0  ;;  %v3416_v7 = vadd.f32 %v3397_v13, %v3298_v52 }
 0x421   : > { %v4188_v31 = vpop.f32.mrf.mxu1 }
 0x422   : > { %3452 = vst.msk [vmem:[%s5615_s23 + $0x30] sm:$0xff] %vm2260_vm3, %v3442_v47  ;;  %v3433_v1 = vadd.f32 %v5608_v22, %v3416_v7 }
 0x423   : > { %v3402_v43 = vpop.f32.mrf.mxu1 }
 0x424   : > { %v3443_v0 = vmax.f32 %v3433_v1, 0.0  ;;  %v3417_v55 = vadd.f32 %v3402_v43, %v3299_v24 }
 0x425   : > { %v4191_v33 = vpop.f32.mrf.mxu1 }
 0x426   : > { %3453 = vst.msk [vmem:[%s5615_s23 + $0x38] sm:$0xff] %vm2260_vm3, %v3443_v0  ;;  %v3434_v59 = vadd.f32 %v5608_v22, %v3417_v55 }
 0x427   : > { %v3405_v16 = vpop.f32.mrf.mxu1 }
 0x428   : > { %v3444_v53 = vmax.f32 %v3434_v59, 0.0  ;;  %v3418_v49 = vadd.f32 %v3405_v16, %v3300_v25 }
 0x429   : > { %v4192_v61 = vpop.f32.mrf.mxu1 }
 0x42a   : > { %3454 = vst.msk [vmem:[%s5615_s23 + $0x40] sm:$0xff] %vm2260_vm3, %v3444_v53  ;;  %v3435_v40 = vadd.f32 %v5608_v22, %v3418_v49 }
 0x42c   : > { %v3445_v15 = vmax.f32 %v3435_v40, 0.0 }
 0x42e   : > { %3455 = vst.msk [vmem:[%s5615_s23 + $0x48] sm:$0xff] %vm2260_vm3, %v3445_v15 }
 0x42f PF: > { %s15_s18 = sadd.s32 1, %s4279_s18  }
 0x430   : > { %p12_p4 = scmp.ge.s32.totalorder %s15_s18, 4  }
 0x432   :  { %14 = sbr.rel (!%p12_p4) target bundleno = 1 (0x1), region = 86 }

</bundles_post_ra>
